<compile_context>
chip_gen: v6e
topology: v6e:2x2x1
jax: 0.10.0
libtpu: 0.0.40
codegen_flags: <defaults>
</compile_context>

<pallas_src>
import jax
import jax.numpy as jnp
import numpy as np
from jax import lax
from jax.experimental import pallas as pl
from jax.experimental.pallas import tpu as pltpu

NUM_LAYERS = 5  # nn.LSTM(..., 5)


def _make_kernel(T, B, D, hidden, classes, num_layers):
    H = hidden

    def kernel(x_ref, wx0_ref, wh0_ref, wxr_ref, whr_ref,
               b0_ref, br_ref, wc_ref, bc_ref, out_ref):
        zero = jnp.zeros((B, H), jnp.float32)
        h = [zero] * num_layers          # init_hidden(): zero h/c state
        c = [zero] * num_layers
        rows = [None] * T                # per-timestep classifier rows (1, C)

        # Hoisted bias broadcasts (JAX does not CSE broadcast_in_dim; do it once
        # per layer instead of once per cell).
        b_full = [jnp.broadcast_to(b0_ref[...], (B, 4 * H))]
        for l in range(1, num_layers):
            b_full.append(jnp.broadcast_to(br_ref[l - 1], (B, 4 * H)))
        # Hoisted classifier weights: one (B, H) tile per class (tiny).
        wcs = [wc_ref[cls] for cls in range(classes)]

        def lstm_cell(inp, wx, wh, b, h_prev, c_prev):
            # Two accumulated MXU dots; no lane-concatenate of [x | h].
            gates = (jnp.dot(inp, wx, preferred_element_type=jnp.float32)
                     + jnp.dot(h_prev, wh, preferred_element_type=jnp.float32)
                     + b)
            # One full-width (B, 4H) sigmoid; g columns were pre-scaled by 2 in
            # the wrapper so tanh(g) = 2 * sigmoid(2 g) - 1.
            s = jax.nn.sigmoid(gates)
            i_g = s[:, 0 * H:1 * H]
            f_g = s[:, 1 * H:2 * H]
            g_g = 2.0 * s[:, 2 * H:3 * H] - 1.0
            o_g = s[:, 3 * H:4 * H]
            c_new = f_g * c_prev + i_g * g_g
            h_new = o_g * jnp.tanh(c_new)
            return h_new, c_new

        # Wavefront schedule: at wave w, cell (layer l, time t = w - l).  Every
        # cell in a wave reads only previous-wave state (snapshot), so the (up
        # to num_layers) cells of a wave are independent and can overlap.
        for wave in range(T + num_layers - 1):
            h_prev = list(h)
            c_prev = list(c)
            for l in range(num_layers):
                t = wave - l
                if not (0 <= t < T):
                    continue
                if l == 0:
                    inp = x_ref[t]                        # (B, D)
                    wx, wh = wx0_ref[...], wh0_ref[...]
                else:
                    inp = h_prev[l - 1]                   # layer below, prev wave
                    wx, wh = wxr_ref[l - 1], whr_ref[l - 1]
                h_new, c_new = lstm_cell(inp, wx, wh, b_full[l],
                                         h_prev[l], c_prev[l])
                h[l] = h_new
                c[l] = c_new
                if l == num_layers - 1:
                    # Incremental classifier: out[t, c] = sum_{b,h} h_new * wc[c]
                    # (equals classify(lstm_out.view(T, -1))[t, c]).  Multiply +
                    # lane/sublane reduce; overlaps with remaining LSTM matmuls.
                    parts = []
                    for cls in range(classes):
                        p = h_new * wcs[cls]                        # (B, H)
                        v = jnp.sum(p, axis=1, keepdims=True)       # (B, 1)
                        parts.append(jnp.sum(v, axis=0, keepdims=True))  # (1, 1)
                    rows[t] = jnp.concatenate(parts, axis=1)        # (1, C)

        # Single output store of the assembled (T, classes) result.
        out_ref[...] = jnp.concatenate(rows, axis=0) + bc_ref[...]

    return kernel


def _split_layer(w_ih, w_hh, b_ih, b_hh, hidden):
    """Pack one LSTM layer: pre-transposed Wx / Wh plus summed bias, with the
    g-gate block pre-scaled by 2 for the single-sigmoid tanh trick."""
    g_scale = jnp.concatenate([
        jnp.ones((2 * hidden,), jnp.float32),
        jnp.full((hidden,), 2.0, jnp.float32),
        jnp.ones((hidden,), jnp.float32)])
    wx = w_ih.T.astype(jnp.float32) * g_scale[None, :]          # (K_in, 4H)
    wh = w_hh.T.astype(jnp.float32) * g_scale[None, :]          # (H, 4H)
    b = ((b_ih + b_hh).astype(jnp.float32) * g_scale).reshape(1, 4 * hidden)
    return wx, wh, b


def timeseries_forward(features, lstm_params, w_c, b_c, hidden, classes):
    T, B, D = features.shape
    num_layers = len(lstm_params)

    wx0, wh0, b0 = _split_layer(*lstm_params[0], hidden)        # (D,4H),(H,4H),(1,4H)
    rest = [_split_layer(*p, hidden) for p in lstm_params[1:]]
    wxr = jnp.stack([wx for wx, _, _ in rest])                  # (L-1, H, 4H)
    whr = jnp.stack([wh for _, wh, _ in rest])                  # (L-1, H, 4H)
    br = jnp.stack([b for _, _, b in rest])                     # (L-1, 1, 4H)
    # Classifier weight laid out so flatten order matches lstm_out.view(T, -1):
    # wc[c, b, h] = w_c[c, b*H + h].
    wc = w_c.reshape(classes, B, hidden).astype(jnp.float32)    # (C, B, H)
    bc = b_c.reshape(1, classes).astype(jnp.float32)

    kernel = _make_kernel(T, B, D, hidden, classes, num_layers)

    grid_spec = pltpu.PrefetchScalarGridSpec(
        num_scalar_prefetch=0,
        grid=(1,),                     # single step: the time loop lives in-kernel
        in_specs=[
            pl.BlockSpec((T, B, D), lambda i: (0, 0, 0)),                        # x
            pl.BlockSpec((D, 4 * hidden), lambda i: (0, 0)),                     # Wx layer 0
            pl.BlockSpec((hidden, 4 * hidden), lambda i: (0, 0)),                # Wh layer 0
            pl.BlockSpec((num_layers - 1, hidden, 4 * hidden),
                         lambda i: (0, 0, 0)),                                   # Wx layers 1..4
            pl.BlockSpec((num_layers - 1, hidden, 4 * hidden),
                         lambda i: (0, 0, 0)),                                   # Wh layers 1..4
            pl.BlockSpec((1, 4 * hidden), lambda i: (0, 0)),                     # bias layer 0
            pl.BlockSpec((num_layers - 1, 1, 4 * hidden), lambda i: (0, 0, 0)),  # bias layers 1..4
            pl.BlockSpec((classes, B, hidden), lambda i: (0, 0, 0)),             # classifier W
            pl.BlockSpec((1, classes), lambda i: (0, 0)),                        # classifier b
        ],
        out_specs=pl.BlockSpec((T, classes), lambda i: (0, 0)),
    )

    return pl.pallas_call(
        kernel,
        out_shape=jax.ShapeDtypeStruct((T, classes), jnp.float32),
        grid_spec=grid_spec,
        compiler_params=pltpu.CompilerParams(dimension_semantics=("arbitrary",)),
    )(features.astype(jnp.float32), wx0, wh0, wxr, whr, b0, br, wc, bc)


def make_params(key, input_size, hidden, window_size, classes, num_layers=NUM_LAYERS):
    """Deterministic parameter init mirroring PyTorch's default U(-1/sqrt(fan), 1/sqrt(fan))."""
    keys = jax.random.split(key, num_layers * 4 + 2)
    bound = 1.0 / np.sqrt(hidden)

    def u(kk, shape, b):
        return jax.random.uniform(kk, shape, jnp.float32, -b, b)

    params = []
    idx = 0
    for l in range(num_layers):
        in_sz = input_size if l == 0 else hidden
        w_ih = u(keys[idx], (4 * hidden, in_sz), bound); idx += 1
        w_hh = u(keys[idx], (4 * hidden, hidden), bound); idx += 1
        b_ih = u(keys[idx], (4 * hidden,), bound); idx += 1
        b_hh = u(keys[idx], (4 * hidden,), bound); idx += 1
        params.append((w_ih, w_hh, b_ih, b_hh))

    cbound = 1.0 / np.sqrt(window_size * hidden)
    w_c = u(keys[idx], (classes, window_size * hidden), cbound)
    b_c = u(keys[idx + 1], (classes,), cbound)
    return params, w_c, b_c


def reference_forward(features, lstm_params, w_c, b_c, hidden):
    """Pure-JAX reference reproducing nn.LSTM(5 layers) + Linear semantics."""
    T, B, _ = features.shape
    num_layers = len(lstm_params)
    h0 = jnp.zeros((num_layers, B, hidden), jnp.float32)
    c0 = jnp.zeros((num_layers, B, hidden), jnp.float32)

    def step(carry, x_t):
        h, c = carry
        layer_in = x_t
        new_h, new_c = [], []
        for l in range(num_layers):
            w_ih, w_hh, b_ih, b_hh = lstm_params[l]
            gates = layer_in @ w_ih.T + b_ih + h[l] @ w_hh.T + b_hh
            i = jax.nn.sigmoid(gates[:, :hidden])
            f = jax.nn.sigmoid(gates[:, hidden:2 * hidden])
            g = jnp.tanh(gates[:, 2 * hidden:3 * hidden])
            o = jax.nn.sigmoid(gates[:, 3 * hidden:])
            c_n = f * c[l] + i * g
            h_n = o * jnp.tanh(c_n)
            new_h.append(h_n)
            new_c.append(c_n)
            layer_in = h_n
        return (jnp.stack(new_h), jnp.stack(new_c)), layer_in

    _, lstm_out = lax.scan(step, (h0, c0), features)      # (T, B, H)
    flat = lstm_out.reshape(T, B * hidden)                 # lstm_out.view(T, -1)
    return flat @ w_c.T + b_c                              # (T, classes)


if __name__ == "__main__":
    classes = 1
    input_size = 8
    window_size = 8   # acts as the LSTM "batch" dim (see init_hidden in the module)
    hidden = 32
    seq_len = 8

    key = jax.random.PRNGKey(0)
    kx, kp = jax.random.split(key)
    features = jax.random.normal(kx, (seq_len, window_size, input_size), jnp.float32)
    lstm_params, w_c, b_c = make_params(kp, input_size, hidden, window_size, classes)

    out = timeseries_forward(features, lstm_params, w_c, b_c, hidden, classes)
    out = jax.block_until_ready(out)

    ref = reference_forward(features, lstm_params, w_c, b_c, hidden)
    np.testing.assert_allclose(np.asarray(out), np.asarray(ref), rtol=1e-4, atol=1e-5)

    print("KERNEL_OK")
</pallas_src>

<mosaic_0001>
module attributes {stable_mosaic.version = 11 : i64} {
  func.func @kernel(%arg0: i32, %arg1: memref<8x8x8xf32, #tpu.memory_space<vmem>>, %arg2: memref<8x128xf32, #tpu.memory_space<vmem>>, %arg3: memref<32x128xf32, #tpu.memory_space<vmem>>, %arg4: memref<4x32x128xf32, #tpu.memory_space<vmem>>, %arg5: memref<4x32x128xf32, #tpu.memory_space<vmem>>, %arg6: memref<1x128xf32, #tpu.memory_space<vmem>>, %arg7: memref<4x1x128xf32, #tpu.memory_space<vmem>>, %arg8: memref<1x8x32xf32, #tpu.memory_space<vmem>>, %arg9: memref<1x1xf32, #tpu.memory_space<vmem>>, %arg10: memref<8x1xf32, #tpu.memory_space<vmem>>) attributes {dimension_semantics = [#tpu.dimension_semantics<arbitrary>], iteration_bounds = array<i64: 1>, scalar_prefetch = 0 : i64, scratch_operands = 0 : i64, tpu.core_type = #tpu.core_type<tc>, window_params = [{pipeline_mode = #tpu.pipeline_mode<synchronous>, transform_indices = @transform_0, window_bounds = array<i64: 8, 8, 8>}, {pipeline_mode = #tpu.pipeline_mode<synchronous>, transform_indices = @transform_1, window_bounds = array<i64: 8, 128>}, {pipeline_mode = #tpu.pipeline_mode<synchronous>, transform_indices = @transform_2, window_bounds = array<i64: 32, 128>}, {pipeline_mode = #tpu.pipeline_mode<synchronous>, transform_indices = @transform_3, window_bounds = array<i64: 4, 32, 128>}, {pipeline_mode = #tpu.pipeline_mode<synchronous>, transform_indices = @transform_4, window_bounds = array<i64: 4, 32, 128>}, {pipeline_mode = #tpu.pipeline_mode<synchronous>, transform_indices = @transform_5, window_bounds = array<i64: 1, 128>}, {pipeline_mode = #tpu.pipeline_mode<synchronous>, transform_indices = @transform_6, window_bounds = array<i64: 4, 1, 128>}, {pipeline_mode = #tpu.pipeline_mode<synchronous>, transform_indices = @transform_7, window_bounds = array<i64: 1, 8, 32>}, {pipeline_mode = #tpu.pipeline_mode<synchronous>, transform_indices = @transform_8, window_bounds = array<i64: 1, 1>}, {pipeline_mode = #tpu.pipeline_mode<synchronous>, transform_indices = @transform_9, window_bounds = array<i64: 8, 1>}]} {
    %cst = arith.constant 0.000000e+00 : f32
    %0 = vector.broadcast %cst : f32 to vector<8x32xf32>
    %c0 = arith.constant 0 : index
    %c0_0 = arith.constant 0 : index
    %1 = vector.load %arg6[%c0, %c0_0] : memref<1x128xf32, #tpu.memory_space<vmem>>, vector<1x128xf32>
    %2 = vector.shape_cast %1 : vector<1x128xf32> to vector<1x128xf32>
    %3 = vector.broadcast %2 : vector<1x128xf32> to vector<8x128xf32>
    %c0_1 = arith.constant 0 : index
    %c0_2 = arith.constant 0 : index
    %c0_3 = arith.constant 0 : index
    %4 = vector.load %arg7[%c0_1, %c0_2, %c0_3] : memref<4x1x128xf32, #tpu.memory_space<vmem>>, vector<1x1x128xf32>
    %5 = vector.shape_cast %4 : vector<1x1x128xf32> to vector<1x128xf32>
    %6 = vector.shape_cast %5 : vector<1x128xf32> to vector<1x128xf32>
    %7 = vector.broadcast %6 : vector<1x128xf32> to vector<8x128xf32>
    %c1 = arith.constant 1 : index
    %c0_4 = arith.constant 0 : index
    %c0_5 = arith.constant 0 : index
    %8 = vector.load %arg7[%c1, %c0_4, %c0_5] : memref<4x1x128xf32, #tpu.memory_space<vmem>>, vector<1x1x128xf32>
    %9 = vector.shape_cast %8 : vector<1x1x128xf32> to vector<1x128xf32>
    %10 = vector.shape_cast %9 : vector<1x128xf32> to vector<1x128xf32>
    %11 = vector.broadcast %10 : vector<1x128xf32> to vector<8x128xf32>
    %c2 = arith.constant 2 : index
    %c0_6 = arith.constant 0 : index
    %c0_7 = arith.constant 0 : index
    %12 = vector.load %arg7[%c2, %c0_6, %c0_7] : memref<4x1x128xf32, #tpu.memory_space<vmem>>, vector<1x1x128xf32>
    %13 = vector.shape_cast %12 : vector<1x1x128xf32> to vector<1x128xf32>
    %14 = vector.shape_cast %13 : vector<1x128xf32> to vector<1x128xf32>
    %15 = vector.broadcast %14 : vector<1x128xf32> to vector<8x128xf32>
    %c3 = arith.constant 3 : index
    %c0_8 = arith.constant 0 : index
    %c0_9 = arith.constant 0 : index
    %16 = vector.load %arg7[%c3, %c0_8, %c0_9] : memref<4x1x128xf32, #tpu.memory_space<vmem>>, vector<1x1x128xf32>
    %17 = vector.shape_cast %16 : vector<1x1x128xf32> to vector<1x128xf32>
    %18 = vector.shape_cast %17 : vector<1x128xf32> to vector<1x128xf32>
    %19 = vector.broadcast %18 : vector<1x128xf32> to vector<8x128xf32>
    %c0_10 = arith.constant 0 : index
    %c0_11 = arith.constant 0 : index
    %c0_12 = arith.constant 0 : index
    %20 = vector.load %arg8[%c0_10, %c0_11, %c0_12] : memref<1x8x32xf32, #tpu.memory_space<vmem>>, vector<1x8x32xf32>
    %21 = vector.shape_cast %20 : vector<1x8x32xf32> to vector<8x32xf32>
    %c0_13 = arith.constant 0 : index
    %c0_14 = arith.constant 0 : index
    %c0_15 = arith.constant 0 : index
    %22 = vector.load %arg1[%c0_13, %c0_14, %c0_15] : memref<8x8x8xf32, #tpu.memory_space<vmem>>, vector<1x8x8xf32>
    %23 = vector.shape_cast %22 : vector<1x8x8xf32> to vector<8x8xf32>
    %c0_16 = arith.constant 0 : index
    %c0_17 = arith.constant 0 : index
    %24 = vector.load %arg2[%c0_16, %c0_17] : memref<8x128xf32, #tpu.memory_space<vmem>>, vector<8x128xf32>
    %c0_18 = arith.constant 0 : index
    %c0_19 = arith.constant 0 : index
    %25 = vector.load %arg3[%c0_18, %c0_19] : memref<32x128xf32, #tpu.memory_space<vmem>>, vector<32x128xf32>
    %cst_20 = arith.constant dense<0.000000e+00> : vector<8x128xf32>
    %26 = tpu.matmul %23, %24, %cst_20 {dimension_numbers = #tpu.dot_dimension_numbers<[1], [0], [0], [1], [0, 0, 1, 1], [], []>} : vector<8x8xf32>, vector<8x128xf32>, vector<8x128xf32> -> vector<8x128xf32>
    %cst_21 = arith.constant dense<0.000000e+00> : vector<8x128xf32>
    %27 = tpu.matmul %0, %25, %cst_21 {dimension_numbers = #tpu.dot_dimension_numbers<[1], [0], [0], [1], [0, 0, 1, 1], [], []>} : vector<8x32xf32>, vector<32x128xf32>, vector<8x128xf32> -> vector<8x128xf32>
    %28 = arith.addf %26, %27 : vector<8x128xf32>
    %29 = arith.addf %28, %3 : vector<8x128xf32>
    %30 = arith.negf %29 : vector<8x128xf32>
    %31 = math.exp %30 : vector<8x128xf32>
    %cst_22 = arith.constant 1.000000e+00 : f32
    %32 = vector.broadcast %cst_22 : f32 to vector<8x128xf32>
    %33 = arith.addf %32, %31 : vector<8x128xf32>
    %34 = arith.divf %32, %33 : vector<8x128xf32>
    %35 = vector.extract_strided_slice %34 {offsets = [0, 0], sizes = [8, 32], strides = [1, 1]} : vector<8x128xf32> to vector<8x32xf32>
    %36 = vector.extract_strided_slice %34 {offsets = [0, 32], sizes = [8, 32], strides = [1, 1]} : vector<8x128xf32> to vector<8x32xf32>
    %37 = vector.extract_strided_slice %34 {offsets = [0, 64], sizes = [8, 32], strides = [1, 1]} : vector<8x128xf32> to vector<8x32xf32>
    %cst_23 = arith.constant 2.000000e+00 : f32
    %38 = vector.broadcast %cst_23 : f32 to vector<8x32xf32>
    %39 = arith.mulf %38, %37 : vector<8x32xf32>
    %cst_24 = arith.constant 1.000000e+00 : f32
    %40 = vector.broadcast %cst_24 : f32 to vector<8x32xf32>
    %41 = arith.subf %39, %40 : vector<8x32xf32>
    %42 = vector.extract_strided_slice %34 {offsets = [0, 96], sizes = [8, 32], strides = [1, 1]} : vector<8x128xf32> to vector<8x32xf32>
    %43 = arith.mulf %36, %0 : vector<8x32xf32>
    %44 = arith.mulf %35, %41 : vector<8x32xf32>
    %45 = arith.addf %43, %44 : vector<8x32xf32>
    %46 = math.tanh %45 : vector<8x32xf32>
    %47 = arith.mulf %42, %46 : vector<8x32xf32>
    %c1_25 = arith.constant 1 : index
    %c0_26 = arith.constant 0 : index
    %c0_27 = arith.constant 0 : index
    %48 = vector.load %arg1[%c1_25, %c0_26, %c0_27] : memref<8x8x8xf32, #tpu.memory_space<vmem>>, vector<1x8x8xf32>
    %49 = vector.shape_cast %48 : vector<1x8x8xf32> to vector<8x8xf32>
    %c0_28 = arith.constant 0 : index
    %c0_29 = arith.constant 0 : index
    %50 = vector.load %arg2[%c0_28, %c0_29] : memref<8x128xf32, #tpu.memory_space<vmem>>, vector<8x128xf32>
    %c0_30 = arith.constant 0 : index
    %c0_31 = arith.constant 0 : index
    %51 = vector.load %arg3[%c0_30, %c0_31] : memref<32x128xf32, #tpu.memory_space<vmem>>, vector<32x128xf32>
    %cst_32 = arith.constant dense<0.000000e+00> : vector<8x128xf32>
    %52 = tpu.matmul %49, %50, %cst_32 {dimension_numbers = #tpu.dot_dimension_numbers<[1], [0], [0], [1], [0, 0, 1, 1], [], []>} : vector<8x8xf32>, vector<8x128xf32>, vector<8x128xf32> -> vector<8x128xf32>
    %cst_33 = arith.constant dense<0.000000e+00> : vector<8x128xf32>
    %53 = tpu.matmul %47, %51, %cst_33 {dimension_numbers = #tpu.dot_dimension_numbers<[1], [0], [0], [1], [0, 0, 1, 1], [], []>} : vector<8x32xf32>, vector<32x128xf32>, vector<8x128xf32> -> vector<8x128xf32>
    %54 = arith.addf %52, %53 : vector<8x128xf32>
    %55 = arith.addf %54, %3 : vector<8x128xf32>
    %56 = arith.negf %55 : vector<8x128xf32>
    %57 = math.exp %56 : vector<8x128xf32>
    %cst_34 = arith.constant 1.000000e+00 : f32
    %58 = vector.broadcast %cst_34 : f32 to vector<8x128xf32>
    %59 = arith.addf %58, %57 : vector<8x128xf32>
    %60 = arith.divf %58, %59 : vector<8x128xf32>
    %61 = vector.extract_strided_slice %60 {offsets = [0, 0], sizes = [8, 32], strides = [1, 1]} : vector<8x128xf32> to vector<8x32xf32>
    %62 = vector.extract_strided_slice %60 {offsets = [0, 32], sizes = [8, 32], strides = [1, 1]} : vector<8x128xf32> to vector<8x32xf32>
    %63 = vector.extract_strided_slice %60 {offsets = [0, 64], sizes = [8, 32], strides = [1, 1]} : vector<8x128xf32> to vector<8x32xf32>
    %cst_35 = arith.constant 2.000000e+00 : f32
    %64 = vector.broadcast %cst_35 : f32 to vector<8x32xf32>
    %65 = arith.mulf %64, %63 : vector<8x32xf32>
    %cst_36 = arith.constant 1.000000e+00 : f32
    %66 = vector.broadcast %cst_36 : f32 to vector<8x32xf32>
    %67 = arith.subf %65, %66 : vector<8x32xf32>
    %68 = vector.extract_strided_slice %60 {offsets = [0, 96], sizes = [8, 32], strides = [1, 1]} : vector<8x128xf32> to vector<8x32xf32>
    %69 = arith.mulf %62, %45 : vector<8x32xf32>
    %70 = arith.mulf %61, %67 : vector<8x32xf32>
    %71 = arith.addf %69, %70 : vector<8x32xf32>
    %72 = math.tanh %71 : vector<8x32xf32>
    %73 = arith.mulf %68, %72 : vector<8x32xf32>
    %c0_37 = arith.constant 0 : index
    %c0_38 = arith.constant 0 : index
    %c0_39 = arith.constant 0 : index
    %74 = vector.load %arg4[%c0_37, %c0_38, %c0_39] : memref<4x32x128xf32, #tpu.memory_space<vmem>>, vector<1x32x128xf32>
    %75 = vector.shape_cast %74 : vector<1x32x128xf32> to vector<32x128xf32>
    %c0_40 = arith.constant 0 : index
    %c0_41 = arith.constant 0 : index
    %c0_42 = arith.constant 0 : index
    %76 = vector.load %arg5[%c0_40, %c0_41, %c0_42] : memref<4x32x128xf32, #tpu.memory_space<vmem>>, vector<1x32x128xf32>
    %77 = vector.shape_cast %76 : vector<1x32x128xf32> to vector<32x128xf32>
    %cst_43 = arith.constant dense<0.000000e+00> : vector<8x128xf32>
    %78 = tpu.matmul %47, %75, %cst_43 {dimension_numbers = #tpu.dot_dimension_numbers<[1], [0], [0], [1], [0, 0, 1, 1], [], []>} : vector<8x32xf32>, vector<32x128xf32>, vector<8x128xf32> -> vector<8x128xf32>
    %cst_44 = arith.constant dense<0.000000e+00> : vector<8x128xf32>
    %79 = tpu.matmul %0, %77, %cst_44 {dimension_numbers = #tpu.dot_dimension_numbers<[1], [0], [0], [1], [0, 0, 1, 1], [], []>} : vector<8x32xf32>, vector<32x128xf32>, vector<8x128xf32> -> vector<8x128xf32>
    %80 = arith.addf %78, %79 : vector<8x128xf32>
    %81 = arith.addf %80, %7 : vector<8x128xf32>
    %82 = arith.negf %81 : vector<8x128xf32>
    %83 = math.exp %82 : vector<8x128xf32>
    %cst_45 = arith.constant 1.000000e+00 : f32
    %84 = vector.broadcast %cst_45 : f32 to vector<8x128xf32>
    %85 = arith.addf %84, %83 : vector<8x128xf32>
    %86 = arith.divf %84, %85 : vector<8x128xf32>
    %87 = vector.extract_strided_slice %86 {offsets = [0, 0], sizes = [8, 32], strides = [1, 1]} : vector<8x128xf32> to vector<8x32xf32>
    %88 = vector.extract_strided_slice %86 {offsets = [0, 32], sizes = [8, 32], strides = [1, 1]} : vector<8x128xf32> to vector<8x32xf32>
    %89 = vector.extract_strided_slice %86 {offsets = [0, 64], sizes = [8, 32], strides = [1, 1]} : vector<8x128xf32> to vector<8x32xf32>
    %cst_46 = arith.constant 2.000000e+00 : f32
    %90 = vector.broadcast %cst_46 : f32 to vector<8x32xf32>
    %91 = arith.mulf %90, %89 : vector<8x32xf32>
    %cst_47 = arith.constant 1.000000e+00 : f32
    %92 = vector.broadcast %cst_47 : f32 to vector<8x32xf32>
    %93 = arith.subf %91, %92 : vector<8x32xf32>
    %94 = vector.extract_strided_slice %86 {offsets = [0, 96], sizes = [8, 32], strides = [1, 1]} : vector<8x128xf32> to vector<8x32xf32>
    %95 = arith.mulf %88, %0 : vector<8x32xf32>
    %96 = arith.mulf %87, %93 : vector<8x32xf32>
    %97 = arith.addf %95, %96 : vector<8x32xf32>
    %98 = math.tanh %97 : vector<8x32xf32>
    %99 = arith.mulf %94, %98 : vector<8x32xf32>
    %c2_48 = arith.constant 2 : index
    %c0_49 = arith.constant 0 : index
    %c0_50 = arith.constant 0 : index
    %100 = vector.load %arg1[%c2_48, %c0_49, %c0_50] : memref<8x8x8xf32, #tpu.memory_space<vmem>>, vector<1x8x8xf32>
    %101 = vector.shape_cast %100 : vector<1x8x8xf32> to vector<8x8xf32>
    %c0_51 = arith.constant 0 : index
    %c0_52 = arith.constant 0 : index
    %102 = vector.load %arg2[%c0_51, %c0_52] : memref<8x128xf32, #tpu.memory_space<vmem>>, vector<8x128xf32>
    %c0_53 = arith.constant 0 : index
    %c0_54 = arith.constant 0 : index
    %103 = vector.load %arg3[%c0_53, %c0_54] : memref<32x128xf32, #tpu.memory_space<vmem>>, vector<32x128xf32>
    %cst_55 = arith.constant dense<0.000000e+00> : vector<8x128xf32>
    %104 = tpu.matmul %101, %102, %cst_55 {dimension_numbers = #tpu.dot_dimension_numbers<[1], [0], [0], [1], [0, 0, 1, 1], [], []>} : vector<8x8xf32>, vector<8x128xf32>, vector<8x128xf32> -> vector<8x128xf32>
    %cst_56 = arith.constant dense<0.000000e+00> : vector<8x128xf32>
    %105 = tpu.matmul %73, %103, %cst_56 {dimension_numbers = #tpu.dot_dimension_numbers<[1], [0], [0], [1], [0, 0, 1, 1], [], []>} : vector<8x32xf32>, vector<32x128xf32>, vector<8x128xf32> -> vector<8x128xf32>
    %106 = arith.addf %104, %105 : vector<8x128xf32>
    %107 = arith.addf %106, %3 : vector<8x128xf32>
    %108 = arith.negf %107 : vector<8x128xf32>
    %109 = math.exp %108 : vector<8x128xf32>
    %cst_57 = arith.constant 1.000000e+00 : f32
    %110 = vector.broadcast %cst_57 : f32 to vector<8x128xf32>
    %111 = arith.addf %110, %109 : vector<8x128xf32>
    %112 = arith.divf %110, %111 : vector<8x128xf32>
    %113 = vector.extract_strided_slice %112 {offsets = [0, 0], sizes = [8, 32], strides = [1, 1]} : vector<8x128xf32> to vector<8x32xf32>
    %114 = vector.extract_strided_slice %112 {offsets = [0, 32], sizes = [8, 32], strides = [1, 1]} : vector<8x128xf32> to vector<8x32xf32>
    %115 = vector.extract_strided_slice %112 {offsets = [0, 64], sizes = [8, 32], strides = [1, 1]} : vector<8x128xf32> to vector<8x32xf32>
    %cst_58 = arith.constant 2.000000e+00 : f32
    %116 = vector.broadcast %cst_58 : f32 to vector<8x32xf32>
    %117 = arith.mulf %116, %115 : vector<8x32xf32>
    %cst_59 = arith.constant 1.000000e+00 : f32
    %118 = vector.broadcast %cst_59 : f32 to vector<8x32xf32>
    %119 = arith.subf %117, %118 : vector<8x32xf32>
    %120 = vector.extract_strided_slice %112 {offsets = [0, 96], sizes = [8, 32], strides = [1, 1]} : vector<8x128xf32> to vector<8x32xf32>
    %121 = arith.mulf %114, %71 : vector<8x32xf32>
    %122 = arith.mulf %113, %119 : vector<8x32xf32>
    %123 = arith.addf %121, %122 : vector<8x32xf32>
    %124 = math.tanh %123 : vector<8x32xf32>
    %125 = arith.mulf %120, %124 : vector<8x32xf32>
    %c0_60 = arith.constant 0 : index
    %c0_61 = arith.constant 0 : index
    %c0_62 = arith.constant 0 : index
    %126 = vector.load %arg4[%c0_60, %c0_61, %c0_62] : memref<4x32x128xf32, #tpu.memory_space<vmem>>, vector<1x32x128xf32>
    %127 = vector.shape_cast %126 : vector<1x32x128xf32> to vector<32x128xf32>
    %c0_63 = arith.constant 0 : index
    %c0_64 = arith.constant 0 : index
    %c0_65 = arith.constant 0 : index
    %128 = vector.load %arg5[%c0_63, %c0_64, %c0_65] : memref<4x32x128xf32, #tpu.memory_space<vmem>>, vector<1x32x128xf32>
    %129 = vector.shape_cast %128 : vector<1x32x128xf32> to vector<32x128xf32>
    %cst_66 = arith.constant dense<0.000000e+00> : vector<8x128xf32>
    %130 = tpu.matmul %73, %127, %cst_66 {dimension_numbers = #tpu.dot_dimension_numbers<[1], [0], [0], [1], [0, 0, 1, 1], [], []>} : vector<8x32xf32>, vector<32x128xf32>, vector<8x128xf32> -> vector<8x128xf32>
    %cst_67 = arith.constant dense<0.000000e+00> : vector<8x128xf32>
    %131 = tpu.matmul %99, %129, %cst_67 {dimension_numbers = #tpu.dot_dimension_numbers<[1], [0], [0], [1], [0, 0, 1, 1], [], []>} : vector<8x32xf32>, vector<32x128xf32>, vector<8x128xf32> -> vector<8x128xf32>
    %132 = arith.addf %130, %131 : vector<8x128xf32>
    %133 = arith.addf %132, %7 : vector<8x128xf32>
    %134 = arith.negf %133 : vector<8x128xf32>
    %135 = math.exp %134 : vector<8x128xf32>
    %cst_68 = arith.constant 1.000000e+00 : f32
    %136 = vector.broadcast %cst_68 : f32 to vector<8x128xf32>
    %137 = arith.addf %136, %135 : vector<8x128xf32>
    %138 = arith.divf %136, %137 : vector<8x128xf32>
    %139 = vector.extract_strided_slice %138 {offsets = [0, 0], sizes = [8, 32], strides = [1, 1]} : vector<8x128xf32> to vector<8x32xf32>
    %140 = vector.extract_strided_slice %138 {offsets = [0, 32], sizes = [8, 32], strides = [1, 1]} : vector<8x128xf32> to vector<8x32xf32>
    %141 = vector.extract_strided_slice %138 {offsets = [0, 64], sizes = [8, 32], strides = [1, 1]} : vector<8x128xf32> to vector<8x32xf32>
    %cst_69 = arith.constant 2.000000e+00 : f32
    %142 = vector.broadcast %cst_69 : f32 to vector<8x32xf32>
    %143 = arith.mulf %142, %141 : vector<8x32xf32>
    %cst_70 = arith.constant 1.000000e+00 : f32
    %144 = vector.broadcast %cst_70 : f32 to vector<8x32xf32>
    %145 = arith.subf %143, %144 : vector<8x32xf32>
    %146 = vector.extract_strided_slice %138 {offsets = [0, 96], sizes = [8, 32], strides = [1, 1]} : vector<8x128xf32> to vector<8x32xf32>
    %147 = arith.mulf %140, %97 : vector<8x32xf32>
    %148 = arith.mulf %139, %145 : vector<8x32xf32>
    %149 = arith.addf %147, %148 : vector<8x32xf32>
    %150 = math.tanh %149 : vector<8x32xf32>
    %151 = arith.mulf %146, %150 : vector<8x32xf32>
    %c1_71 = arith.constant 1 : index
    %c0_72 = arith.constant 0 : index
    %c0_73 = arith.constant 0 : index
    %152 = vector.load %arg4[%c1_71, %c0_72, %c0_73] : memref<4x32x128xf32, #tpu.memory_space<vmem>>, vector<1x32x128xf32>
    %153 = vector.shape_cast %152 : vector<1x32x128xf32> to vector<32x128xf32>
    %c1_74 = arith.constant 1 : index
    %c0_75 = arith.constant 0 : index
    %c0_76 = arith.constant 0 : index
    %154 = vector.load %arg5[%c1_74, %c0_75, %c0_76] : memref<4x32x128xf32, #tpu.memory_space<vmem>>, vector<1x32x128xf32>
    %155 = vector.shape_cast %154 : vector<1x32x128xf32> to vector<32x128xf32>
    %cst_77 = arith.constant dense<0.000000e+00> : vector<8x128xf32>
    %156 = tpu.matmul %99, %153, %cst_77 {dimension_numbers = #tpu.dot_dimension_numbers<[1], [0], [0], [1], [0, 0, 1, 1], [], []>} : vector<8x32xf32>, vector<32x128xf32>, vector<8x128xf32> -> vector<8x128xf32>
    %cst_78 = arith.constant dense<0.000000e+00> : vector<8x128xf32>
    %157 = tpu.matmul %0, %155, %cst_78 {dimension_numbers = #tpu.dot_dimension_numbers<[1], [0], [0], [1], [0, 0, 1, 1], [], []>} : vector<8x32xf32>, vector<32x128xf32>, vector<8x128xf32> -> vector<8x128xf32>
    %158 = arith.addf %156, %157 : vector<8x128xf32>
    %159 = arith.addf %158, %11 : vector<8x128xf32>
    %160 = arith.negf %159 : vector<8x128xf32>
    %161 = math.exp %160 : vector<8x128xf32>
    %cst_79 = arith.constant 1.000000e+00 : f32
    %162 = vector.broadcast %cst_79 : f32 to vector<8x128xf32>
    %163 = arith.addf %162, %161 : vector<8x128xf32>
    %164 = arith.divf %162, %163 : vector<8x128xf32>
    %165 = vector.extract_strided_slice %164 {offsets = [0, 0], sizes = [8, 32], strides = [1, 1]} : vector<8x128xf32> to vector<8x32xf32>
    %166 = vector.extract_strided_slice %164 {offsets = [0, 32], sizes = [8, 32], strides = [1, 1]} : vector<8x128xf32> to vector<8x32xf32>
    %167 = vector.extract_strided_slice %164 {offsets = [0, 64], sizes = [8, 32], strides = [1, 1]} : vector<8x128xf32> to vector<8x32xf32>
    %cst_80 = arith.constant 2.000000e+00 : f32
    %168 = vector.broadcast %cst_80 : f32 to vector<8x32xf32>
    %169 = arith.mulf %168, %167 : vector<8x32xf32>
    %cst_81 = arith.constant 1.000000e+00 : f32
    %170 = vector.broadcast %cst_81 : f32 to vector<8x32xf32>
    %171 = arith.subf %169, %170 : vector<8x32xf32>
    %172 = vector.extract_strided_slice %164 {offsets = [0, 96], sizes = [8, 32], strides = [1, 1]} : vector<8x128xf32> to vector<8x32xf32>
    %173 = arith.mulf %166, %0 : vector<8x32xf32>
    %174 = arith.mulf %165, %171 : vector<8x32xf32>
    %175 = arith.addf %173, %174 : vector<8x32xf32>
    %176 = math.tanh %175 : vector<8x32xf32>
    %177 = arith.mulf %172, %176 : vector<8x32xf32>
    %c3_82 = arith.constant 3 : index
    %c0_83 = arith.constant 0 : index
    %c0_84 = arith.constant 0 : index
    %178 = vector.load %arg1[%c3_82, %c0_83, %c0_84] : memref<8x8x8xf32, #tpu.memory_space<vmem>>, vector<1x8x8xf32>
    %179 = vector.shape_cast %178 : vector<1x8x8xf32> to vector<8x8xf32>
    %c0_85 = arith.constant 0 : index
    %c0_86 = arith.constant 0 : index
    %180 = vector.load %arg2[%c0_85, %c0_86] : memref<8x128xf32, #tpu.memory_space<vmem>>, vector<8x128xf32>
    %c0_87 = arith.constant 0 : index
    %c0_88 = arith.constant 0 : index
    %181 = vector.load %arg3[%c0_87, %c0_88] : memref<32x128xf32, #tpu.memory_space<vmem>>, vector<32x128xf32>
    %cst_89 = arith.constant dense<0.000000e+00> : vector<8x128xf32>
    %182 = tpu.matmul %179, %180, %cst_89 {dimension_numbers = #tpu.dot_dimension_numbers<[1], [0], [0], [1], [0, 0, 1, 1], [], []>} : vector<8x8xf32>, vector<8x128xf32>, vector<8x128xf32> -> vector<8x128xf32>
    %cst_90 = arith.constant dense<0.000000e+00> : vector<8x128xf32>
    %183 = tpu.matmul %125, %181, %cst_90 {dimension_numbers = #tpu.dot_dimension_numbers<[1], [0], [0], [1], [0, 0, 1, 1], [], []>} : vector<8x32xf32>, vector<32x128xf32>, vector<8x128xf32> -> vector<8x128xf32>
    %184 = arith.addf %182, %183 : vector<8x128xf32>
    %185 = arith.addf %184, %3 : vector<8x128xf32>
    %186 = arith.negf %185 : vector<8x128xf32>
    %187 = math.exp %186 : vector<8x128xf32>
    %cst_91 = arith.constant 1.000000e+00 : f32
    %188 = vector.broadcast %cst_91 : f32 to vector<8x128xf32>
    %189 = arith.addf %188, %187 : vector<8x128xf32>
    %190 = arith.divf %188, %189 : vector<8x128xf32>
    %191 = vector.extract_strided_slice %190 {offsets = [0, 0], sizes = [8, 32], strides = [1, 1]} : vector<8x128xf32> to vector<8x32xf32>
    %192 = vector.extract_strided_slice %190 {offsets = [0, 32], sizes = [8, 32], strides = [1, 1]} : vector<8x128xf32> to vector<8x32xf32>
    %193 = vector.extract_strided_slice %190 {offsets = [0, 64], sizes = [8, 32], strides = [1, 1]} : vector<8x128xf32> to vector<8x32xf32>
    %cst_92 = arith.constant 2.000000e+00 : f32
    %194 = vector.broadcast %cst_92 : f32 to vector<8x32xf32>
    %195 = arith.mulf %194, %193 : vector<8x32xf32>
    %cst_93 = arith.constant 1.000000e+00 : f32
    %196 = vector.broadcast %cst_93 : f32 to vector<8x32xf32>
    %197 = arith.subf %195, %196 : vector<8x32xf32>
    %198 = vector.extract_strided_slice %190 {offsets = [0, 96], sizes = [8, 32], strides = [1, 1]} : vector<8x128xf32> to vector<8x32xf32>
    %199 = arith.mulf %192, %123 : vector<8x32xf32>
    %200 = arith.mulf %191, %197 : vector<8x32xf32>
    %201 = arith.addf %199, %200 : vector<8x32xf32>
    %202 = math.tanh %201 : vector<8x32xf32>
    %203 = arith.mulf %198, %202 : vector<8x32xf32>
    %c0_94 = arith.constant 0 : index
    %c0_95 = arith.constant 0 : index
    %c0_96 = arith.constant 0 : index
    %204 = vector.load %arg4[%c0_94, %c0_95, %c0_96] : memref<4x32x128xf32, #tpu.memory_space<vmem>>, vector<1x32x128xf32>
    %205 = vector.shape_cast %204 : vector<1x32x128xf32> to vector<32x128xf32>
    %c0_97 = arith.constant 0 : index
    %c0_98 = arith.constant 0 : index
    %c0_99 = arith.constant 0 : index
    %206 = vector.load %arg5[%c0_97, %c0_98, %c0_99] : memref<4x32x128xf32, #tpu.memory_space<vmem>>, vector<1x32x128xf32>
    %207 = vector.shape_cast %206 : vector<1x32x128xf32> to vector<32x128xf32>
    %cst_100 = arith.constant dense<0.000000e+00> : vector<8x128xf32>
    %208 = tpu.matmul %125, %205, %cst_100 {dimension_numbers = #tpu.dot_dimension_numbers<[1], [0], [0], [1], [0, 0, 1, 1], [], []>} : vector<8x32xf32>, vector<32x128xf32>, vector<8x128xf32> -> vector<8x128xf32>
    %cst_101 = arith.constant dense<0.000000e+00> : vector<8x128xf32>
    %209 = tpu.matmul %151, %207, %cst_101 {dimension_numbers = #tpu.dot_dimension_numbers<[1], [0], [0], [1], [0, 0, 1, 1], [], []>} : vector<8x32xf32>, vector<32x128xf32>, vector<8x128xf32> -> vector<8x128xf32>
    %210 = arith.addf %208, %209 : vector<8x128xf32>
    %211 = arith.addf %210, %7 : vector<8x128xf32>
    %212 = arith.negf %211 : vector<8x128xf32>
    %213 = math.exp %212 : vector<8x128xf32>
    %cst_102 = arith.constant 1.000000e+00 : f32
    %214 = vector.broadcast %cst_102 : f32 to vector<8x128xf32>
    %215 = arith.addf %214, %213 : vector<8x128xf32>
    %216 = arith.divf %214, %215 : vector<8x128xf32>
    %217 = vector.extract_strided_slice %216 {offsets = [0, 0], sizes = [8, 32], strides = [1, 1]} : vector<8x128xf32> to vector<8x32xf32>
    %218 = vector.extract_strided_slice %216 {offsets = [0, 32], sizes = [8, 32], strides = [1, 1]} : vector<8x128xf32> to vector<8x32xf32>
    %219 = vector.extract_strided_slice %216 {offsets = [0, 64], sizes = [8, 32], strides = [1, 1]} : vector<8x128xf32> to vector<8x32xf32>
    %cst_103 = arith.constant 2.000000e+00 : f32
    %220 = vector.broadcast %cst_103 : f32 to vector<8x32xf32>
    %221 = arith.mulf %220, %219 : vector<8x32xf32>
    %cst_104 = arith.constant 1.000000e+00 : f32
    %222 = vector.broadcast %cst_104 : f32 to vector<8x32xf32>
    %223 = arith.subf %221, %222 : vector<8x32xf32>
    %224 = vector.extract_strided_slice %216 {offsets = [0, 96], sizes = [8, 32], strides = [1, 1]} : vector<8x128xf32> to vector<8x32xf32>
    %225 = arith.mulf %218, %149 : vector<8x32xf32>
    %226 = arith.mulf %217, %223 : vector<8x32xf32>
    %227 = arith.addf %225, %226 : vector<8x32xf32>
    %228 = math.tanh %227 : vector<8x32xf32>
    %229 = arith.mulf %224, %228 : vector<8x32xf32>
    %c1_105 = arith.constant 1 : index
    %c0_106 = arith.constant 0 : index
    %c0_107 = arith.constant 0 : index
    %230 = vector.load %arg4[%c1_105, %c0_106, %c0_107] : memref<4x32x128xf32, #tpu.memory_space<vmem>>, vector<1x32x128xf32>
    %231 = vector.shape_cast %230 : vector<1x32x128xf32> to vector<32x128xf32>
    %c1_108 = arith.constant 1 : index
    %c0_109 = arith.constant 0 : index
    %c0_110 = arith.constant 0 : index
    %232 = vector.load %arg5[%c1_108, %c0_109, %c0_110] : memref<4x32x128xf32, #tpu.memory_space<vmem>>, vector<1x32x128xf32>
    %233 = vector.shape_cast %232 : vector<1x32x128xf32> to vector<32x128xf32>
    %cst_111 = arith.constant dense<0.000000e+00> : vector<8x128xf32>
    %234 = tpu.matmul %151, %231, %cst_111 {dimension_numbers = #tpu.dot_dimension_numbers<[1], [0], [0], [1], [0, 0, 1, 1], [], []>} : vector<8x32xf32>, vector<32x128xf32>, vector<8x128xf32> -> vector<8x128xf32>
    %cst_112 = arith.constant dense<0.000000e+00> : vector<8x128xf32>
    %235 = tpu.matmul %177, %233, %cst_112 {dimension_numbers = #tpu.dot_dimension_numbers<[1], [0], [0], [1], [0, 0, 1, 1], [], []>} : vector<8x32xf32>, vector<32x128xf32>, vector<8x128xf32> -> vector<8x128xf32>
    %236 = arith.addf %234, %235 : vector<8x128xf32>
    %237 = arith.addf %236, %11 : vector<8x128xf32>
    %238 = arith.negf %237 : vector<8x128xf32>
    %239 = math.exp %238 : vector<8x128xf32>
    %cst_113 = arith.constant 1.000000e+00 : f32
    %240 = vector.broadcast %cst_113 : f32 to vector<8x128xf32>
    %241 = arith.addf %240, %239 : vector<8x128xf32>
    %242 = arith.divf %240, %241 : vector<8x128xf32>
    %243 = vector.extract_strided_slice %242 {offsets = [0, 0], sizes = [8, 32], strides = [1, 1]} : vector<8x128xf32> to vector<8x32xf32>
    %244 = vector.extract_strided_slice %242 {offsets = [0, 32], sizes = [8, 32], strides = [1, 1]} : vector<8x128xf32> to vector<8x32xf32>
    %245 = vector.extract_strided_slice %242 {offsets = [0, 64], sizes = [8, 32], strides = [1, 1]} : vector<8x128xf32> to vector<8x32xf32>
    %cst_114 = arith.constant 2.000000e+00 : f32
    %246 = vector.broadcast %cst_114 : f32 to vector<8x32xf32>
    %247 = arith.mulf %246, %245 : vector<8x32xf32>
    %cst_115 = arith.constant 1.000000e+00 : f32
    %248 = vector.broadcast %cst_115 : f32 to vector<8x32xf32>
    %249 = arith.subf %247, %248 : vector<8x32xf32>
    %250 = vector.extract_strided_slice %242 {offsets = [0, 96], sizes = [8, 32], strides = [1, 1]} : vector<8x128xf32> to vector<8x32xf32>
    %251 = arith.mulf %244, %175 : vector<8x32xf32>
    %252 = arith.mulf %243, %249 : vector<8x32xf32>
    %253 = arith.addf %251, %252 : vector<8x32xf32>
    %254 = math.tanh %253 : vector<8x32xf32>
    %255 = arith.mulf %250, %254 : vector<8x32xf32>
    %c2_116 = arith.constant 2 : index
    %c0_117 = arith.constant 0 : index
    %c0_118 = arith.constant 0 : index
    %256 = vector.load %arg4[%c2_116, %c0_117, %c0_118] : memref<4x32x128xf32, #tpu.memory_space<vmem>>, vector<1x32x128xf32>
    %257 = vector.shape_cast %256 : vector<1x32x128xf32> to vector<32x128xf32>
    %c2_119 = arith.constant 2 : index
    %c0_120 = arith.constant 0 : index
    %c0_121 = arith.constant 0 : index
    %258 = vector.load %arg5[%c2_119, %c0_120, %c0_121] : memref<4x32x128xf32, #tpu.memory_space<vmem>>, vector<1x32x128xf32>
    %259 = vector.shape_cast %258 : vector<1x32x128xf32> to vector<32x128xf32>
    %cst_122 = arith.constant dense<0.000000e+00> : vector<8x128xf32>
    %260 = tpu.matmul %177, %257, %cst_122 {dimension_numbers = #tpu.dot_dimension_numbers<[1], [0], [0], [1], [0, 0, 1, 1], [], []>} : vector<8x32xf32>, vector<32x128xf32>, vector<8x128xf32> -> vector<8x128xf32>
    %cst_123 = arith.constant dense<0.000000e+00> : vector<8x128xf32>
    %261 = tpu.matmul %0, %259, %cst_123 {dimension_numbers = #tpu.dot_dimension_numbers<[1], [0], [0], [1], [0, 0, 1, 1], [], []>} : vector<8x32xf32>, vector<32x128xf32>, vector<8x128xf32> -> vector<8x128xf32>
    %262 = arith.addf %260, %261 : vector<8x128xf32>
    %263 = arith.addf %262, %15 : vector<8x128xf32>
    %264 = arith.negf %263 : vector<8x128xf32>
    %265 = math.exp %264 : vector<8x128xf32>
    %cst_124 = arith.constant 1.000000e+00 : f32
    %266 = vector.broadcast %cst_124 : f32 to vector<8x128xf32>
    %267 = arith.addf %266, %265 : vector<8x128xf32>
    %268 = arith.divf %266, %267 : vector<8x128xf32>
    %269 = vector.extract_strided_slice %268 {offsets = [0, 0], sizes = [8, 32], strides = [1, 1]} : vector<8x128xf32> to vector<8x32xf32>
    %270 = vector.extract_strided_slice %268 {offsets = [0, 32], sizes = [8, 32], strides = [1, 1]} : vector<8x128xf32> to vector<8x32xf32>
    %271 = vector.extract_strided_slice %268 {offsets = [0, 64], sizes = [8, 32], strides = [1, 1]} : vector<8x128xf32> to vector<8x32xf32>
    %cst_125 = arith.constant 2.000000e+00 : f32
    %272 = vector.broadcast %cst_125 : f32 to vector<8x32xf32>
    %273 = arith.mulf %272, %271 : vector<8x32xf32>
    %cst_126 = arith.constant 1.000000e+00 : f32
    %274 = vector.broadcast %cst_126 : f32 to vector<8x32xf32>
    %275 = arith.subf %273, %274 : vector<8x32xf32>
    %276 = vector.extract_strided_slice %268 {offsets = [0, 96], sizes = [8, 32], strides = [1, 1]} : vector<8x128xf32> to vector<8x32xf32>
    %277 = arith.mulf %270, %0 : vector<8x32xf32>
    %278 = arith.mulf %269, %275 : vector<8x32xf32>
    %279 = arith.addf %277, %278 : vector<8x32xf32>
    %280 = math.tanh %279 : vector<8x32xf32>
    %281 = arith.mulf %276, %280 : vector<8x32xf32>
    %c4 = arith.constant 4 : index
    %c0_127 = arith.constant 0 : index
    %c0_128 = arith.constant 0 : index
    %282 = vector.load %arg1[%c4, %c0_127, %c0_128] : memref<8x8x8xf32, #tpu.memory_space<vmem>>, vector<1x8x8xf32>
    %283 = vector.shape_cast %282 : vector<1x8x8xf32> to vector<8x8xf32>
    %c0_129 = arith.constant 0 : index
    %c0_130 = arith.constant 0 : index
    %284 = vector.load %arg2[%c0_129, %c0_130] : memref<8x128xf32, #tpu.memory_space<vmem>>, vector<8x128xf32>
    %c0_131 = arith.constant 0 : index
    %c0_132 = arith.constant 0 : index
    %285 = vector.load %arg3[%c0_131, %c0_132] : memref<32x128xf32, #tpu.memory_space<vmem>>, vector<32x128xf32>
    %cst_133 = arith.constant dense<0.000000e+00> : vector<8x128xf32>
    %286 = tpu.matmul %283, %284, %cst_133 {dimension_numbers = #tpu.dot_dimension_numbers<[1], [0], [0], [1], [0, 0, 1, 1], [], []>} : vector<8x8xf32>, vector<8x128xf32>, vector<8x128xf32> -> vector<8x128xf32>
    %cst_134 = arith.constant dense<0.000000e+00> : vector<8x128xf32>
    %287 = tpu.matmul %203, %285, %cst_134 {dimension_numbers = #tpu.dot_dimension_numbers<[1], [0], [0], [1], [0, 0, 1, 1], [], []>} : vector<8x32xf32>, vector<32x128xf32>, vector<8x128xf32> -> vector<8x128xf32>
    %288 = arith.addf %286, %287 : vector<8x128xf32>
    %289 = arith.addf %288, %3 : vector<8x128xf32>
    %290 = arith.negf %289 : vector<8x128xf32>
    %291 = math.exp %290 : vector<8x128xf32>
    %cst_135 = arith.constant 1.000000e+00 : f32
    %292 = vector.broadcast %cst_135 : f32 to vector<8x128xf32>
    %293 = arith.addf %292, %291 : vector<8x128xf32>
    %294 = arith.divf %292, %293 : vector<8x128xf32>
    %295 = vector.extract_strided_slice %294 {offsets = [0, 0], sizes = [8, 32], strides = [1, 1]} : vector<8x128xf32> to vector<8x32xf32>
    %296 = vector.extract_strided_slice %294 {offsets = [0, 32], sizes = [8, 32], strides = [1, 1]} : vector<8x128xf32> to vector<8x32xf32>
    %297 = vector.extract_strided_slice %294 {offsets = [0, 64], sizes = [8, 32], strides = [1, 1]} : vector<8x128xf32> to vector<8x32xf32>
    %cst_136 = arith.constant 2.000000e+00 : f32
    %298 = vector.broadcast %cst_136 : f32 to vector<8x32xf32>
    %299 = arith.mulf %298, %297 : vector<8x32xf32>
    %cst_137 = arith.constant 1.000000e+00 : f32
    %300 = vector.broadcast %cst_137 : f32 to vector<8x32xf32>
    %301 = arith.subf %299, %300 : vector<8x32xf32>
    %302 = vector.extract_strided_slice %294 {offsets = [0, 96], sizes = [8, 32], strides = [1, 1]} : vector<8x128xf32> to vector<8x32xf32>
    %303 = arith.mulf %296, %201 : vector<8x32xf32>
    %304 = arith.mulf %295, %301 : vector<8x32xf32>
    %305 = arith.addf %303, %304 : vector<8x32xf32>
    %306 = math.tanh %305 : vector<8x32xf32>
    %307 = arith.mulf %302, %306 : vector<8x32xf32>
    %c0_138 = arith.constant 0 : index
    %c0_139 = arith.constant 0 : index
    %c0_140 = arith.constant 0 : index
    %308 = vector.load %arg4[%c0_138, %c0_139, %c0_140] : memref<4x32x128xf32, #tpu.memory_space<vmem>>, vector<1x32x128xf32>
    %309 = vector.shape_cast %308 : vector<1x32x128xf32> to vector<32x128xf32>
    %c0_141 = arith.constant 0 : index
    %c0_142 = arith.constant 0 : index
    %c0_143 = arith.constant 0 : index
    %310 = vector.load %arg5[%c0_141, %c0_142, %c0_143] : memref<4x32x128xf32, #tpu.memory_space<vmem>>, vector<1x32x128xf32>
    %311 = vector.shape_cast %310 : vector<1x32x128xf32> to vector<32x128xf32>
    %cst_144 = arith.constant dense<0.000000e+00> : vector<8x128xf32>
    %312 = tpu.matmul %203, %309, %cst_144 {dimension_numbers = #tpu.dot_dimension_numbers<[1], [0], [0], [1], [0, 0, 1, 1], [], []>} : vector<8x32xf32>, vector<32x128xf32>, vector<8x128xf32> -> vector<8x128xf32>
    %cst_145 = arith.constant dense<0.000000e+00> : vector<8x128xf32>
    %313 = tpu.matmul %229, %311, %cst_145 {dimension_numbers = #tpu.dot_dimension_numbers<[1], [0], [0], [1], [0, 0, 1, 1], [], []>} : vector<8x32xf32>, vector<32x128xf32>, vector<8x128xf32> -> vector<8x128xf32>
    %314 = arith.addf %312, %313 : vector<8x128xf32>
    %315 = arith.addf %314, %7 : vector<8x128xf32>
    %316 = arith.negf %315 : vector<8x128xf32>
    %317 = math.exp %316 : vector<8x128xf32>
    %cst_146 = arith.constant 1.000000e+00 : f32
    %318 = vector.broadcast %cst_146 : f32 to vector<8x128xf32>
    %319 = arith.addf %318, %317 : vector<8x128xf32>
    %320 = arith.divf %318, %319 : vector<8x128xf32>
    %321 = vector.extract_strided_slice %320 {offsets = [0, 0], sizes = [8, 32], strides = [1, 1]} : vector<8x128xf32> to vector<8x32xf32>
    %322 = vector.extract_strided_slice %320 {offsets = [0, 32], sizes = [8, 32], strides = [1, 1]} : vector<8x128xf32> to vector<8x32xf32>
    %323 = vector.extract_strided_slice %320 {offsets = [0, 64], sizes = [8, 32], strides = [1, 1]} : vector<8x128xf32> to vector<8x32xf32>
    %cst_147 = arith.constant 2.000000e+00 : f32
    %324 = vector.broadcast %cst_147 : f32 to vector<8x32xf32>
    %325 = arith.mulf %324, %323 : vector<8x32xf32>
    %cst_148 = arith.constant 1.000000e+00 : f32
    %326 = vector.broadcast %cst_148 : f32 to vector<8x32xf32>
    %327 = arith.subf %325, %326 : vector<8x32xf32>
    %328 = vector.extract_strided_slice %320 {offsets = [0, 96], sizes = [8, 32], strides = [1, 1]} : vector<8x128xf32> to vector<8x32xf32>
    %329 = arith.mulf %322, %227 : vector<8x32xf32>
    %330 = arith.mulf %321, %327 : vector<8x32xf32>
    %331 = arith.addf %329, %330 : vector<8x32xf32>
    %332 = math.tanh %331 : vector<8x32xf32>
    %333 = arith.mulf %328, %332 : vector<8x32xf32>
    %c1_149 = arith.constant 1 : index
    %c0_150 = arith.constant 0 : index
    %c0_151 = arith.constant 0 : index
    %334 = vector.load %arg4[%c1_149, %c0_150, %c0_151] : memref<4x32x128xf32, #tpu.memory_space<vmem>>, vector<1x32x128xf32>
    %335 = vector.shape_cast %334 : vector<1x32x128xf32> to vector<32x128xf32>
    %c1_152 = arith.constant 1 : index
    %c0_153 = arith.constant 0 : index
    %c0_154 = arith.constant 0 : index
    %336 = vector.load %arg5[%c1_152, %c0_153, %c0_154] : memref<4x32x128xf32, #tpu.memory_space<vmem>>, vector<1x32x128xf32>
    %337 = vector.shape_cast %336 : vector<1x32x128xf32> to vector<32x128xf32>
    %cst_155 = arith.constant dense<0.000000e+00> : vector<8x128xf32>
    %338 = tpu.matmul %229, %335, %cst_155 {dimension_numbers = #tpu.dot_dimension_numbers<[1], [0], [0], [1], [0, 0, 1, 1], [], []>} : vector<8x32xf32>, vector<32x128xf32>, vector<8x128xf32> -> vector<8x128xf32>
    %cst_156 = arith.constant dense<0.000000e+00> : vector<8x128xf32>
    %339 = tpu.matmul %255, %337, %cst_156 {dimension_numbers = #tpu.dot_dimension_numbers<[1], [0], [0], [1], [0, 0, 1, 1], [], []>} : vector<8x32xf32>, vector<32x128xf32>, vector<8x128xf32> -> vector<8x128xf32>
    %340 = arith.addf %338, %339 : vector<8x128xf32>
    %341 = arith.addf %340, %11 : vector<8x128xf32>
    %342 = arith.negf %341 : vector<8x128xf32>
    %343 = math.exp %342 : vector<8x128xf32>
    %cst_157 = arith.constant 1.000000e+00 : f32
    %344 = vector.broadcast %cst_157 : f32 to vector<8x128xf32>
    %345 = arith.addf %344, %343 : vector<8x128xf32>
    %346 = arith.divf %344, %345 : vector<8x128xf32>
    %347 = vector.extract_strided_slice %346 {offsets = [0, 0], sizes = [8, 32], strides = [1, 1]} : vector<8x128xf32> to vector<8x32xf32>
    %348 = vector.extract_strided_slice %346 {offsets = [0, 32], sizes = [8, 32], strides = [1, 1]} : vector<8x128xf32> to vector<8x32xf32>
    %349 = vector.extract_strided_slice %346 {offsets = [0, 64], sizes = [8, 32], strides = [1, 1]} : vector<8x128xf32> to vector<8x32xf32>
    %cst_158 = arith.constant 2.000000e+00 : f32
    %350 = vector.broadcast %cst_158 : f32 to vector<8x32xf32>
    %351 = arith.mulf %350, %349 : vector<8x32xf32>
    %cst_159 = arith.constant 1.000000e+00 : f32
    %352 = vector.broadcast %cst_159 : f32 to vector<8x32xf32>
    %353 = arith.subf %351, %352 : vector<8x32xf32>
    %354 = vector.extract_strided_slice %346 {offsets = [0, 96], sizes = [8, 32], strides = [1, 1]} : vector<8x128xf32> to vector<8x32xf32>
    %355 = arith.mulf %348, %253 : vector<8x32xf32>
    %356 = arith.mulf %347, %353 : vector<8x32xf32>
    %357 = arith.addf %355, %356 : vector<8x32xf32>
    %358 = math.tanh %357 : vector<8x32xf32>
    %359 = arith.mulf %354, %358 : vector<8x32xf32>
    %c2_160 = arith.constant 2 : index
    %c0_161 = arith.constant 0 : index
    %c0_162 = arith.constant 0 : index
    %360 = vector.load %arg4[%c2_160, %c0_161, %c0_162] : memref<4x32x128xf32, #tpu.memory_space<vmem>>, vector<1x32x128xf32>
    %361 = vector.shape_cast %360 : vector<1x32x128xf32> to vector<32x128xf32>
    %c2_163 = arith.constant 2 : index
    %c0_164 = arith.constant 0 : index
    %c0_165 = arith.constant 0 : index
    %362 = vector.load %arg5[%c2_163, %c0_164, %c0_165] : memref<4x32x128xf32, #tpu.memory_space<vmem>>, vector<1x32x128xf32>
    %363 = vector.shape_cast %362 : vector<1x32x128xf32> to vector<32x128xf32>
    %cst_166 = arith.constant dense<0.000000e+00> : vector<8x128xf32>
    %364 = tpu.matmul %255, %361, %cst_166 {dimension_numbers = #tpu.dot_dimension_numbers<[1], [0], [0], [1], [0, 0, 1, 1], [], []>} : vector<8x32xf32>, vector<32x128xf32>, vector<8x128xf32> -> vector<8x128xf32>
    %cst_167 = arith.constant dense<0.000000e+00> : vector<8x128xf32>
    %365 = tpu.matmul %281, %363, %cst_167 {dimension_numbers = #tpu.dot_dimension_numbers<[1], [0], [0], [1], [0, 0, 1, 1], [], []>} : vector<8x32xf32>, vector<32x128xf32>, vector<8x128xf32> -> vector<8x128xf32>
    %366 = arith.addf %364, %365 : vector<8x128xf32>
    %367 = arith.addf %366, %15 : vector<8x128xf32>
    %368 = arith.negf %367 : vector<8x128xf32>
    %369 = math.exp %368 : vector<8x128xf32>
    %cst_168 = arith.constant 1.000000e+00 : f32
    %370 = vector.broadcast %cst_168 : f32 to vector<8x128xf32>
    %371 = arith.addf %370, %369 : vector<8x128xf32>
    %372 = arith.divf %370, %371 : vector<8x128xf32>
    %373 = vector.extract_strided_slice %372 {offsets = [0, 0], sizes = [8, 32], strides = [1, 1]} : vector<8x128xf32> to vector<8x32xf32>
    %374 = vector.extract_strided_slice %372 {offsets = [0, 32], sizes = [8, 32], strides = [1, 1]} : vector<8x128xf32> to vector<8x32xf32>
    %375 = vector.extract_strided_slice %372 {offsets = [0, 64], sizes = [8, 32], strides = [1, 1]} : vector<8x128xf32> to vector<8x32xf32>
    %cst_169 = arith.constant 2.000000e+00 : f32
    %376 = vector.broadcast %cst_169 : f32 to vector<8x32xf32>
    %377 = arith.mulf %376, %375 : vector<8x32xf32>
    %cst_170 = arith.constant 1.000000e+00 : f32
    %378 = vector.broadcast %cst_170 : f32 to vector<8x32xf32>
    %379 = arith.subf %377, %378 : vector<8x32xf32>
    %380 = vector.extract_strided_slice %372 {offsets = [0, 96], sizes = [8, 32], strides = [1, 1]} : vector<8x128xf32> to vector<8x32xf32>
    %381 = arith.mulf %374, %279 : vector<8x32xf32>
    %382 = arith.mulf %373, %379 : vector<8x32xf32>
    %383 = arith.addf %381, %382 : vector<8x32xf32>
    %384 = math.tanh %383 : vector<8x32xf32>
    %385 = arith.mulf %380, %384 : vector<8x32xf32>
    %c3_171 = arith.constant 3 : index
    %c0_172 = arith.constant 0 : index
    %c0_173 = arith.constant 0 : index
    %386 = vector.load %arg4[%c3_171, %c0_172, %c0_173] : memref<4x32x128xf32, #tpu.memory_space<vmem>>, vector<1x32x128xf32>
    %387 = vector.shape_cast %386 : vector<1x32x128xf32> to vector<32x128xf32>
    %c3_174 = arith.constant 3 : index
    %c0_175 = arith.constant 0 : index
    %c0_176 = arith.constant 0 : index
    %388 = vector.load %arg5[%c3_174, %c0_175, %c0_176] : memref<4x32x128xf32, #tpu.memory_space<vmem>>, vector<1x32x128xf32>
    %389 = vector.shape_cast %388 : vector<1x32x128xf32> to vector<32x128xf32>
    %cst_177 = arith.constant dense<0.000000e+00> : vector<8x128xf32>
    %390 = tpu.matmul %281, %387, %cst_177 {dimension_numbers = #tpu.dot_dimension_numbers<[1], [0], [0], [1], [0, 0, 1, 1], [], []>} : vector<8x32xf32>, vector<32x128xf32>, vector<8x128xf32> -> vector<8x128xf32>
    %cst_178 = arith.constant dense<0.000000e+00> : vector<8x128xf32>
    %391 = tpu.matmul %0, %389, %cst_178 {dimension_numbers = #tpu.dot_dimension_numbers<[1], [0], [0], [1], [0, 0, 1, 1], [], []>} : vector<8x32xf32>, vector<32x128xf32>, vector<8x128xf32> -> vector<8x128xf32>
    %392 = arith.addf %390, %391 : vector<8x128xf32>
    %393 = arith.addf %392, %19 : vector<8x128xf32>
    %394 = arith.negf %393 : vector<8x128xf32>
    %395 = math.exp %394 : vector<8x128xf32>
    %cst_179 = arith.constant 1.000000e+00 : f32
    %396 = vector.broadcast %cst_179 : f32 to vector<8x128xf32>
    %397 = arith.addf %396, %395 : vector<8x128xf32>
    %398 = arith.divf %396, %397 : vector<8x128xf32>
    %399 = vector.extract_strided_slice %398 {offsets = [0, 0], sizes = [8, 32], strides = [1, 1]} : vector<8x128xf32> to vector<8x32xf32>
    %400 = vector.extract_strided_slice %398 {offsets = [0, 32], sizes = [8, 32], strides = [1, 1]} : vector<8x128xf32> to vector<8x32xf32>
    %401 = vector.extract_strided_slice %398 {offsets = [0, 64], sizes = [8, 32], strides = [1, 1]} : vector<8x128xf32> to vector<8x32xf32>
    %cst_180 = arith.constant 2.000000e+00 : f32
    %402 = vector.broadcast %cst_180 : f32 to vector<8x32xf32>
    %403 = arith.mulf %402, %401 : vector<8x32xf32>
    %cst_181 = arith.constant 1.000000e+00 : f32
    %404 = vector.broadcast %cst_181 : f32 to vector<8x32xf32>
    %405 = arith.subf %403, %404 : vector<8x32xf32>
    %406 = vector.extract_strided_slice %398 {offsets = [0, 96], sizes = [8, 32], strides = [1, 1]} : vector<8x128xf32> to vector<8x32xf32>
    %407 = arith.mulf %400, %0 : vector<8x32xf32>
    %408 = arith.mulf %399, %405 : vector<8x32xf32>
    %409 = arith.addf %407, %408 : vector<8x32xf32>
    %410 = math.tanh %409 : vector<8x32xf32>
    %411 = arith.mulf %406, %410 : vector<8x32xf32>
    %412 = arith.mulf %411, %21 : vector<8x32xf32>
    %cst_182 = arith.constant dense<0.000000e+00> : vector<8xf32>
    %413 = vector.multi_reduction <add>, %412, %cst_182 [1] : vector<8x32xf32> to vector<8xf32>
    %414 = vector.shape_cast %413 : vector<8xf32> to vector<8x1xf32>
    %cst_183 = arith.constant dense<0.000000e+00> : vector<1xf32>
    %415 = vector.multi_reduction <add>, %414, %cst_183 [0] : vector<8x1xf32> to vector<1xf32>
    %416 = vector.shape_cast %415 : vector<1xf32> to vector<1x1xf32>
    %c5 = arith.constant 5 : index
    %c0_184 = arith.constant 0 : index
    %c0_185 = arith.constant 0 : index
    %417 = vector.load %arg1[%c5, %c0_184, %c0_185] : memref<8x8x8xf32, #tpu.memory_space<vmem>>, vector<1x8x8xf32>
    %418 = vector.shape_cast %417 : vector<1x8x8xf32> to vector<8x8xf32>
    %c0_186 = arith.constant 0 : index
    %c0_187 = arith.constant 0 : index
    %419 = vector.load %arg2[%c0_186, %c0_187] : memref<8x128xf32, #tpu.memory_space<vmem>>, vector<8x128xf32>
    %c0_188 = arith.constant 0 : index
    %c0_189 = arith.constant 0 : index
    %420 = vector.load %arg3[%c0_188, %c0_189] : memref<32x128xf32, #tpu.memory_space<vmem>>, vector<32x128xf32>
    %cst_190 = arith.constant dense<0.000000e+00> : vector<8x128xf32>
    %421 = tpu.matmul %418, %419, %cst_190 {dimension_numbers = #tpu.dot_dimension_numbers<[1], [0], [0], [1], [0, 0, 1, 1], [], []>} : vector<8x8xf32>, vector<8x128xf32>, vector<8x128xf32> -> vector<8x128xf32>
    %cst_191 = arith.constant dense<0.000000e+00> : vector<8x128xf32>
    %422 = tpu.matmul %307, %420, %cst_191 {dimension_numbers = #tpu.dot_dimension_numbers<[1], [0], [0], [1], [0, 0, 1, 1], [], []>} : vector<8x32xf32>, vector<32x128xf32>, vector<8x128xf32> -> vector<8x128xf32>
    %423 = arith.addf %421, %422 : vector<8x128xf32>
    %424 = arith.addf %423, %3 : vector<8x128xf32>
    %425 = arith.negf %424 : vector<8x128xf32>
    %426 = math.exp %425 : vector<8x128xf32>
    %cst_192 = arith.constant 1.000000e+00 : f32
    %427 = vector.broadcast %cst_192 : f32 to vector<8x128xf32>
    %428 = arith.addf %427, %426 : vector<8x128xf32>
    %429 = arith.divf %427, %428 : vector<8x128xf32>
    %430 = vector.extract_strided_slice %429 {offsets = [0, 0], sizes = [8, 32], strides = [1, 1]} : vector<8x128xf32> to vector<8x32xf32>
    %431 = vector.extract_strided_slice %429 {offsets = [0, 32], sizes = [8, 32], strides = [1, 1]} : vector<8x128xf32> to vector<8x32xf32>
    %432 = vector.extract_strided_slice %429 {offsets = [0, 64], sizes = [8, 32], strides = [1, 1]} : vector<8x128xf32> to vector<8x32xf32>
    %cst_193 = arith.constant 2.000000e+00 : f32
    %433 = vector.broadcast %cst_193 : f32 to vector<8x32xf32>
    %434 = arith.mulf %433, %432 : vector<8x32xf32>
    %cst_194 = arith.constant 1.000000e+00 : f32
    %435 = vector.broadcast %cst_194 : f32 to vector<8x32xf32>
    %436 = arith.subf %434, %435 : vector<8x32xf32>
    %437 = vector.extract_strided_slice %429 {offsets = [0, 96], sizes = [8, 32], strides = [1, 1]} : vector<8x128xf32> to vector<8x32xf32>
    %438 = arith.mulf %431, %305 : vector<8x32xf32>
    %439 = arith.mulf %430, %436 : vector<8x32xf32>
    %440 = arith.addf %438, %439 : vector<8x32xf32>
    %441 = math.tanh %440 : vector<8x32xf32>
    %442 = arith.mulf %437, %441 : vector<8x32xf32>
    %c0_195 = arith.constant 0 : index
    %c0_196 = arith.constant 0 : index
    %c0_197 = arith.constant 0 : index
    %443 = vector.load %arg4[%c0_195, %c0_196, %c0_197] : memref<4x32x128xf32, #tpu.memory_space<vmem>>, vector<1x32x128xf32>
    %444 = vector.shape_cast %443 : vector<1x32x128xf32> to vector<32x128xf32>
    %c0_198 = arith.constant 0 : index
    %c0_199 = arith.constant 0 : index
    %c0_200 = arith.constant 0 : index
    %445 = vector.load %arg5[%c0_198, %c0_199, %c0_200] : memref<4x32x128xf32, #tpu.memory_space<vmem>>, vector<1x32x128xf32>
    %446 = vector.shape_cast %445 : vector<1x32x128xf32> to vector<32x128xf32>
    %cst_201 = arith.constant dense<0.000000e+00> : vector<8x128xf32>
    %447 = tpu.matmul %307, %444, %cst_201 {dimension_numbers = #tpu.dot_dimension_numbers<[1], [0], [0], [1], [0, 0, 1, 1], [], []>} : vector<8x32xf32>, vector<32x128xf32>, vector<8x128xf32> -> vector<8x128xf32>
    %cst_202 = arith.constant dense<0.000000e+00> : vector<8x128xf32>
    %448 = tpu.matmul %333, %446, %cst_202 {dimension_numbers = #tpu.dot_dimension_numbers<[1], [0], [0], [1], [0, 0, 1, 1], [], []>} : vector<8x32xf32>, vector<32x128xf32>, vector<8x128xf32> -> vector<8x128xf32>
    %449 = arith.addf %447, %448 : vector<8x128xf32>
    %450 = arith.addf %449, %7 : vector<8x128xf32>
    %451 = arith.negf %450 : vector<8x128xf32>
    %452 = math.exp %451 : vector<8x128xf32>
    %cst_203 = arith.constant 1.000000e+00 : f32
    %453 = vector.broadcast %cst_203 : f32 to vector<8x128xf32>
    %454 = arith.addf %453, %452 : vector<8x128xf32>
    %455 = arith.divf %453, %454 : vector<8x128xf32>
    %456 = vector.extract_strided_slice %455 {offsets = [0, 0], sizes = [8, 32], strides = [1, 1]} : vector<8x128xf32> to vector<8x32xf32>
    %457 = vector.extract_strided_slice %455 {offsets = [0, 32], sizes = [8, 32], strides = [1, 1]} : vector<8x128xf32> to vector<8x32xf32>
    %458 = vector.extract_strided_slice %455 {offsets = [0, 64], sizes = [8, 32], strides = [1, 1]} : vector<8x128xf32> to vector<8x32xf32>
    %cst_204 = arith.constant 2.000000e+00 : f32
    %459 = vector.broadcast %cst_204 : f32 to vector<8x32xf32>
    %460 = arith.mulf %459, %458 : vector<8x32xf32>
    %cst_205 = arith.constant 1.000000e+00 : f32
    %461 = vector.broadcast %cst_205 : f32 to vector<8x32xf32>
    %462 = arith.subf %460, %461 : vector<8x32xf32>
    %463 = vector.extract_strided_slice %455 {offsets = [0, 96], sizes = [8, 32], strides = [1, 1]} : vector<8x128xf32> to vector<8x32xf32>
    %464 = arith.mulf %457, %331 : vector<8x32xf32>
    %465 = arith.mulf %456, %462 : vector<8x32xf32>
    %466 = arith.addf %464, %465 : vector<8x32xf32>
    %467 = math.tanh %466 : vector<8x32xf32>
    %468 = arith.mulf %463, %467 : vector<8x32xf32>
    %c1_206 = arith.constant 1 : index
    %c0_207 = arith.constant 0 : index
    %c0_208 = arith.constant 0 : index
    %469 = vector.load %arg4[%c1_206, %c0_207, %c0_208] : memref<4x32x128xf32, #tpu.memory_space<vmem>>, vector<1x32x128xf32>
    %470 = vector.shape_cast %469 : vector<1x32x128xf32> to vector<32x128xf32>
    %c1_209 = arith.constant 1 : index
    %c0_210 = arith.constant 0 : index
    %c0_211 = arith.constant 0 : index
    %471 = vector.load %arg5[%c1_209, %c0_210, %c0_211] : memref<4x32x128xf32, #tpu.memory_space<vmem>>, vector<1x32x128xf32>
    %472 = vector.shape_cast %471 : vector<1x32x128xf32> to vector<32x128xf32>
    %cst_212 = arith.constant dense<0.000000e+00> : vector<8x128xf32>
    %473 = tpu.matmul %333, %470, %cst_212 {dimension_numbers = #tpu.dot_dimension_numbers<[1], [0], [0], [1], [0, 0, 1, 1], [], []>} : vector<8x32xf32>, vector<32x128xf32>, vector<8x128xf32> -> vector<8x128xf32>
    %cst_213 = arith.constant dense<0.000000e+00> : vector<8x128xf32>
    %474 = tpu.matmul %359, %472, %cst_213 {dimension_numbers = #tpu.dot_dimension_numbers<[1], [0], [0], [1], [0, 0, 1, 1], [], []>} : vector<8x32xf32>, vector<32x128xf32>, vector<8x128xf32> -> vector<8x128xf32>
    %475 = arith.addf %473, %474 : vector<8x128xf32>
    %476 = arith.addf %475, %11 : vector<8x128xf32>
    %477 = arith.negf %476 : vector<8x128xf32>
    %478 = math.exp %477 : vector<8x128xf32>
    %cst_214 = arith.constant 1.000000e+00 : f32
    %479 = vector.broadcast %cst_214 : f32 to vector<8x128xf32>
    %480 = arith.addf %479, %478 : vector<8x128xf32>
    %481 = arith.divf %479, %480 : vector<8x128xf32>
    %482 = vector.extract_strided_slice %481 {offsets = [0, 0], sizes = [8, 32], strides = [1, 1]} : vector<8x128xf32> to vector<8x32xf32>
    %483 = vector.extract_strided_slice %481 {offsets = [0, 32], sizes = [8, 32], strides = [1, 1]} : vector<8x128xf32> to vector<8x32xf32>
    %484 = vector.extract_strided_slice %481 {offsets = [0, 64], sizes = [8, 32], strides = [1, 1]} : vector<8x128xf32> to vector<8x32xf32>
    %cst_215 = arith.constant 2.000000e+00 : f32
    %485 = vector.broadcast %cst_215 : f32 to vector<8x32xf32>
    %486 = arith.mulf %485, %484 : vector<8x32xf32>
    %cst_216 = arith.constant 1.000000e+00 : f32
    %487 = vector.broadcast %cst_216 : f32 to vector<8x32xf32>
    %488 = arith.subf %486, %487 : vector<8x32xf32>
    %489 = vector.extract_strided_slice %481 {offsets = [0, 96], sizes = [8, 32], strides = [1, 1]} : vector<8x128xf32> to vector<8x32xf32>
    %490 = arith.mulf %483, %357 : vector<8x32xf32>
    %491 = arith.mulf %482, %488 : vector<8x32xf32>
    %492 = arith.addf %490, %491 : vector<8x32xf32>
    %493 = math.tanh %492 : vector<8x32xf32>
    %494 = arith.mulf %489, %493 : vector<8x32xf32>
    %c2_217 = arith.constant 2 : index
    %c0_218 = arith.constant 0 : index
    %c0_219 = arith.constant 0 : index
    %495 = vector.load %arg4[%c2_217, %c0_218, %c0_219] : memref<4x32x128xf32, #tpu.memory_space<vmem>>, vector<1x32x128xf32>
    %496 = vector.shape_cast %495 : vector<1x32x128xf32> to vector<32x128xf32>
    %c2_220 = arith.constant 2 : index
    %c0_221 = arith.constant 0 : index
    %c0_222 = arith.constant 0 : index
    %497 = vector.load %arg5[%c2_220, %c0_221, %c0_222] : memref<4x32x128xf32, #tpu.memory_space<vmem>>, vector<1x32x128xf32>
    %498 = vector.shape_cast %497 : vector<1x32x128xf32> to vector<32x128xf32>
    %cst_223 = arith.constant dense<0.000000e+00> : vector<8x128xf32>
    %499 = tpu.matmul %359, %496, %cst_223 {dimension_numbers = #tpu.dot_dimension_numbers<[1], [0], [0], [1], [0, 0, 1, 1], [], []>} : vector<8x32xf32>, vector<32x128xf32>, vector<8x128xf32> -> vector<8x128xf32>
    %cst_224 = arith.constant dense<0.000000e+00> : vector<8x128xf32>
    %500 = tpu.matmul %385, %498, %cst_224 {dimension_numbers = #tpu.dot_dimension_numbers<[1], [0], [0], [1], [0, 0, 1, 1], [], []>} : vector<8x32xf32>, vector<32x128xf32>, vector<8x128xf32> -> vector<8x128xf32>
    %501 = arith.addf %499, %500 : vector<8x128xf32>
    %502 = arith.addf %501, %15 : vector<8x128xf32>
    %503 = arith.negf %502 : vector<8x128xf32>
    %504 = math.exp %503 : vector<8x128xf32>
    %cst_225 = arith.constant 1.000000e+00 : f32
    %505 = vector.broadcast %cst_225 : f32 to vector<8x128xf32>
    %506 = arith.addf %505, %504 : vector<8x128xf32>
    %507 = arith.divf %505, %506 : vector<8x128xf32>
    %508 = vector.extract_strided_slice %507 {offsets = [0, 0], sizes = [8, 32], strides = [1, 1]} : vector<8x128xf32> to vector<8x32xf32>
    %509 = vector.extract_strided_slice %507 {offsets = [0, 32], sizes = [8, 32], strides = [1, 1]} : vector<8x128xf32> to vector<8x32xf32>
    %510 = vector.extract_strided_slice %507 {offsets = [0, 64], sizes = [8, 32], strides = [1, 1]} : vector<8x128xf32> to vector<8x32xf32>
    %cst_226 = arith.constant 2.000000e+00 : f32
    %511 = vector.broadcast %cst_226 : f32 to vector<8x32xf32>
    %512 = arith.mulf %511, %510 : vector<8x32xf32>
    %cst_227 = arith.constant 1.000000e+00 : f32
    %513 = vector.broadcast %cst_227 : f32 to vector<8x32xf32>
    %514 = arith.subf %512, %513 : vector<8x32xf32>
    %515 = vector.extract_strided_slice %507 {offsets = [0, 96], sizes = [8, 32], strides = [1, 1]} : vector<8x128xf32> to vector<8x32xf32>
    %516 = arith.mulf %509, %383 : vector<8x32xf32>
    %517 = arith.mulf %508, %514 : vector<8x32xf32>
    %518 = arith.addf %516, %517 : vector<8x32xf32>
    %519 = math.tanh %518 : vector<8x32xf32>
    %520 = arith.mulf %515, %519 : vector<8x32xf32>
    %c3_228 = arith.constant 3 : index
    %c0_229 = arith.constant 0 : index
    %c0_230 = arith.constant 0 : index
    %521 = vector.load %arg4[%c3_228, %c0_229, %c0_230] : memref<4x32x128xf32, #tpu.memory_space<vmem>>, vector<1x32x128xf32>
    %522 = vector.shape_cast %521 : vector<1x32x128xf32> to vector<32x128xf32>
    %c3_231 = arith.constant 3 : index
    %c0_232 = arith.constant 0 : index
    %c0_233 = arith.constant 0 : index
    %523 = vector.load %arg5[%c3_231, %c0_232, %c0_233] : memref<4x32x128xf32, #tpu.memory_space<vmem>>, vector<1x32x128xf32>
    %524 = vector.shape_cast %523 : vector<1x32x128xf32> to vector<32x128xf32>
    %cst_234 = arith.constant dense<0.000000e+00> : vector<8x128xf32>
    %525 = tpu.matmul %385, %522, %cst_234 {dimension_numbers = #tpu.dot_dimension_numbers<[1], [0], [0], [1], [0, 0, 1, 1], [], []>} : vector<8x32xf32>, vector<32x128xf32>, vector<8x128xf32> -> vector<8x128xf32>
    %cst_235 = arith.constant dense<0.000000e+00> : vector<8x128xf32>
    %526 = tpu.matmul %411, %524, %cst_235 {dimension_numbers = #tpu.dot_dimension_numbers<[1], [0], [0], [1], [0, 0, 1, 1], [], []>} : vector<8x32xf32>, vector<32x128xf32>, vector<8x128xf32> -> vector<8x128xf32>
    %527 = arith.addf %525, %526 : vector<8x128xf32>
    %528 = arith.addf %527, %19 : vector<8x128xf32>
    %529 = arith.negf %528 : vector<8x128xf32>
    %530 = math.exp %529 : vector<8x128xf32>
    %cst_236 = arith.constant 1.000000e+00 : f32
    %531 = vector.broadcast %cst_236 : f32 to vector<8x128xf32>
    %532 = arith.addf %531, %530 : vector<8x128xf32>
    %533 = arith.divf %531, %532 : vector<8x128xf32>
    %534 = vector.extract_strided_slice %533 {offsets = [0, 0], sizes = [8, 32], strides = [1, 1]} : vector<8x128xf32> to vector<8x32xf32>
    %535 = vector.extract_strided_slice %533 {offsets = [0, 32], sizes = [8, 32], strides = [1, 1]} : vector<8x128xf32> to vector<8x32xf32>
    %536 = vector.extract_strided_slice %533 {offsets = [0, 64], sizes = [8, 32], strides = [1, 1]} : vector<8x128xf32> to vector<8x32xf32>
    %cst_237 = arith.constant 2.000000e+00 : f32
    %537 = vector.broadcast %cst_237 : f32 to vector<8x32xf32>
    %538 = arith.mulf %537, %536 : vector<8x32xf32>
    %cst_238 = arith.constant 1.000000e+00 : f32
    %539 = vector.broadcast %cst_238 : f32 to vector<8x32xf32>
    %540 = arith.subf %538, %539 : vector<8x32xf32>
    %541 = vector.extract_strided_slice %533 {offsets = [0, 96], sizes = [8, 32], strides = [1, 1]} : vector<8x128xf32> to vector<8x32xf32>
    %542 = arith.mulf %535, %409 : vector<8x32xf32>
    %543 = arith.mulf %534, %540 : vector<8x32xf32>
    %544 = arith.addf %542, %543 : vector<8x32xf32>
    %545 = math.tanh %544 : vector<8x32xf32>
    %546 = arith.mulf %541, %545 : vector<8x32xf32>
    %547 = arith.mulf %546, %21 : vector<8x32xf32>
    %cst_239 = arith.constant dense<0.000000e+00> : vector<8xf32>
    %548 = vector.multi_reduction <add>, %547, %cst_239 [1] : vector<8x32xf32> to vector<8xf32>
    %549 = vector.shape_cast %548 : vector<8xf32> to vector<8x1xf32>
    %cst_240 = arith.constant dense<0.000000e+00> : vector<1xf32>
    %550 = vector.multi_reduction <add>, %549, %cst_240 [0] : vector<8x1xf32> to vector<1xf32>
    %551 = vector.shape_cast %550 : vector<1xf32> to vector<1x1xf32>
    %c6 = arith.constant 6 : index
    %c0_241 = arith.constant 0 : index
    %c0_242 = arith.constant 0 : index
    %552 = vector.load %arg1[%c6, %c0_241, %c0_242] : memref<8x8x8xf32, #tpu.memory_space<vmem>>, vector<1x8x8xf32>
    %553 = vector.shape_cast %552 : vector<1x8x8xf32> to vector<8x8xf32>
    %c0_243 = arith.constant 0 : index
    %c0_244 = arith.constant 0 : index
    %554 = vector.load %arg2[%c0_243, %c0_244] : memref<8x128xf32, #tpu.memory_space<vmem>>, vector<8x128xf32>
    %c0_245 = arith.constant 0 : index
    %c0_246 = arith.constant 0 : index
    %555 = vector.load %arg3[%c0_245, %c0_246] : memref<32x128xf32, #tpu.memory_space<vmem>>, vector<32x128xf32>
    %cst_247 = arith.constant dense<0.000000e+00> : vector<8x128xf32>
    %556 = tpu.matmul %553, %554, %cst_247 {dimension_numbers = #tpu.dot_dimension_numbers<[1], [0], [0], [1], [0, 0, 1, 1], [], []>} : vector<8x8xf32>, vector<8x128xf32>, vector<8x128xf32> -> vector<8x128xf32>
    %cst_248 = arith.constant dense<0.000000e+00> : vector<8x128xf32>
    %557 = tpu.matmul %442, %555, %cst_248 {dimension_numbers = #tpu.dot_dimension_numbers<[1], [0], [0], [1], [0, 0, 1, 1], [], []>} : vector<8x32xf32>, vector<32x128xf32>, vector<8x128xf32> -> vector<8x128xf32>
    %558 = arith.addf %556, %557 : vector<8x128xf32>
    %559 = arith.addf %558, %3 : vector<8x128xf32>
    %560 = arith.negf %559 : vector<8x128xf32>
    %561 = math.exp %560 : vector<8x128xf32>
    %cst_249 = arith.constant 1.000000e+00 : f32
    %562 = vector.broadcast %cst_249 : f32 to vector<8x128xf32>
    %563 = arith.addf %562, %561 : vector<8x128xf32>
    %564 = arith.divf %562, %563 : vector<8x128xf32>
    %565 = vector.extract_strided_slice %564 {offsets = [0, 0], sizes = [8, 32], strides = [1, 1]} : vector<8x128xf32> to vector<8x32xf32>
    %566 = vector.extract_strided_slice %564 {offsets = [0, 32], sizes = [8, 32], strides = [1, 1]} : vector<8x128xf32> to vector<8x32xf32>
    %567 = vector.extract_strided_slice %564 {offsets = [0, 64], sizes = [8, 32], strides = [1, 1]} : vector<8x128xf32> to vector<8x32xf32>
    %cst_250 = arith.constant 2.000000e+00 : f32
    %568 = vector.broadcast %cst_250 : f32 to vector<8x32xf32>
    %569 = arith.mulf %568, %567 : vector<8x32xf32>
    %cst_251 = arith.constant 1.000000e+00 : f32
    %570 = vector.broadcast %cst_251 : f32 to vector<8x32xf32>
    %571 = arith.subf %569, %570 : vector<8x32xf32>
    %572 = vector.extract_strided_slice %564 {offsets = [0, 96], sizes = [8, 32], strides = [1, 1]} : vector<8x128xf32> to vector<8x32xf32>
    %573 = arith.mulf %566, %440 : vector<8x32xf32>
    %574 = arith.mulf %565, %571 : vector<8x32xf32>
    %575 = arith.addf %573, %574 : vector<8x32xf32>
    %576 = math.tanh %575 : vector<8x32xf32>
    %577 = arith.mulf %572, %576 : vector<8x32xf32>
    %c0_252 = arith.constant 0 : index
    %c0_253 = arith.constant 0 : index
    %c0_254 = arith.constant 0 : index
    %578 = vector.load %arg4[%c0_252, %c0_253, %c0_254] : memref<4x32x128xf32, #tpu.memory_space<vmem>>, vector<1x32x128xf32>
    %579 = vector.shape_cast %578 : vector<1x32x128xf32> to vector<32x128xf32>
    %c0_255 = arith.constant 0 : index
    %c0_256 = arith.constant 0 : index
    %c0_257 = arith.constant 0 : index
    %580 = vector.load %arg5[%c0_255, %c0_256, %c0_257] : memref<4x32x128xf32, #tpu.memory_space<vmem>>, vector<1x32x128xf32>
    %581 = vector.shape_cast %580 : vector<1x32x128xf32> to vector<32x128xf32>
    %cst_258 = arith.constant dense<0.000000e+00> : vector<8x128xf32>
    %582 = tpu.matmul %442, %579, %cst_258 {dimension_numbers = #tpu.dot_dimension_numbers<[1], [0], [0], [1], [0, 0, 1, 1], [], []>} : vector<8x32xf32>, vector<32x128xf32>, vector<8x128xf32> -> vector<8x128xf32>
    %cst_259 = arith.constant dense<0.000000e+00> : vector<8x128xf32>
    %583 = tpu.matmul %468, %581, %cst_259 {dimension_numbers = #tpu.dot_dimension_numbers<[1], [0], [0], [1], [0, 0, 1, 1], [], []>} : vector<8x32xf32>, vector<32x128xf32>, vector<8x128xf32> -> vector<8x128xf32>
    %584 = arith.addf %582, %583 : vector<8x128xf32>
    %585 = arith.addf %584, %7 : vector<8x128xf32>
    %586 = arith.negf %585 : vector<8x128xf32>
    %587 = math.exp %586 : vector<8x128xf32>
    %cst_260 = arith.constant 1.000000e+00 : f32
    %588 = vector.broadcast %cst_260 : f32 to vector<8x128xf32>
    %589 = arith.addf %588, %587 : vector<8x128xf32>
    %590 = arith.divf %588, %589 : vector<8x128xf32>
    %591 = vector.extract_strided_slice %590 {offsets = [0, 0], sizes = [8, 32], strides = [1, 1]} : vector<8x128xf32> to vector<8x32xf32>
    %592 = vector.extract_strided_slice %590 {offsets = [0, 32], sizes = [8, 32], strides = [1, 1]} : vector<8x128xf32> to vector<8x32xf32>
    %593 = vector.extract_strided_slice %590 {offsets = [0, 64], sizes = [8, 32], strides = [1, 1]} : vector<8x128xf32> to vector<8x32xf32>
    %cst_261 = arith.constant 2.000000e+00 : f32
    %594 = vector.broadcast %cst_261 : f32 to vector<8x32xf32>
    %595 = arith.mulf %594, %593 : vector<8x32xf32>
    %cst_262 = arith.constant 1.000000e+00 : f32
    %596 = vector.broadcast %cst_262 : f32 to vector<8x32xf32>
    %597 = arith.subf %595, %596 : vector<8x32xf32>
    %598 = vector.extract_strided_slice %590 {offsets = [0, 96], sizes = [8, 32], strides = [1, 1]} : vector<8x128xf32> to vector<8x32xf32>
    %599 = arith.mulf %592, %466 : vector<8x32xf32>
    %600 = arith.mulf %591, %597 : vector<8x32xf32>
    %601 = arith.addf %599, %600 : vector<8x32xf32>
    %602 = math.tanh %601 : vector<8x32xf32>
    %603 = arith.mulf %598, %602 : vector<8x32xf32>
    %c1_263 = arith.constant 1 : index
    %c0_264 = arith.constant 0 : index
    %c0_265 = arith.constant 0 : index
    %604 = vector.load %arg4[%c1_263, %c0_264, %c0_265] : memref<4x32x128xf32, #tpu.memory_space<vmem>>, vector<1x32x128xf32>
    %605 = vector.shape_cast %604 : vector<1x32x128xf32> to vector<32x128xf32>
    %c1_266 = arith.constant 1 : index
    %c0_267 = arith.constant 0 : index
    %c0_268 = arith.constant 0 : index
    %606 = vector.load %arg5[%c1_266, %c0_267, %c0_268] : memref<4x32x128xf32, #tpu.memory_space<vmem>>, vector<1x32x128xf32>
    %607 = vector.shape_cast %606 : vector<1x32x128xf32> to vector<32x128xf32>
    %cst_269 = arith.constant dense<0.000000e+00> : vector<8x128xf32>
    %608 = tpu.matmul %468, %605, %cst_269 {dimension_numbers = #tpu.dot_dimension_numbers<[1], [0], [0], [1], [0, 0, 1, 1], [], []>} : vector<8x32xf32>, vector<32x128xf32>, vector<8x128xf32> -> vector<8x128xf32>
    %cst_270 = arith.constant dense<0.000000e+00> : vector<8x128xf32>
    %609 = tpu.matmul %494, %607, %cst_270 {dimension_numbers = #tpu.dot_dimension_numbers<[1], [0], [0], [1], [0, 0, 1, 1], [], []>} : vector<8x32xf32>, vector<32x128xf32>, vector<8x128xf32> -> vector<8x128xf32>
    %610 = arith.addf %608, %609 : vector<8x128xf32>
    %611 = arith.addf %610, %11 : vector<8x128xf32>
    %612 = arith.negf %611 : vector<8x128xf32>
    %613 = math.exp %612 : vector<8x128xf32>
    %cst_271 = arith.constant 1.000000e+00 : f32
    %614 = vector.broadcast %cst_271 : f32 to vector<8x128xf32>
    %615 = arith.addf %614, %613 : vector<8x128xf32>
    %616 = arith.divf %614, %615 : vector<8x128xf32>
    %617 = vector.extract_strided_slice %616 {offsets = [0, 0], sizes = [8, 32], strides = [1, 1]} : vector<8x128xf32> to vector<8x32xf32>
    %618 = vector.extract_strided_slice %616 {offsets = [0, 32], sizes = [8, 32], strides = [1, 1]} : vector<8x128xf32> to vector<8x32xf32>
    %619 = vector.extract_strided_slice %616 {offsets = [0, 64], sizes = [8, 32], strides = [1, 1]} : vector<8x128xf32> to vector<8x32xf32>
    %cst_272 = arith.constant 2.000000e+00 : f32
    %620 = vector.broadcast %cst_272 : f32 to vector<8x32xf32>
    %621 = arith.mulf %620, %619 : vector<8x32xf32>
    %cst_273 = arith.constant 1.000000e+00 : f32
    %622 = vector.broadcast %cst_273 : f32 to vector<8x32xf32>
    %623 = arith.subf %621, %622 : vector<8x32xf32>
    %624 = vector.extract_strided_slice %616 {offsets = [0, 96], sizes = [8, 32], strides = [1, 1]} : vector<8x128xf32> to vector<8x32xf32>
    %625 = arith.mulf %618, %492 : vector<8x32xf32>
    %626 = arith.mulf %617, %623 : vector<8x32xf32>
    %627 = arith.addf %625, %626 : vector<8x32xf32>
    %628 = math.tanh %627 : vector<8x32xf32>
    %629 = arith.mulf %624, %628 : vector<8x32xf32>
    %c2_274 = arith.constant 2 : index
    %c0_275 = arith.constant 0 : index
    %c0_276 = arith.constant 0 : index
    %630 = vector.load %arg4[%c2_274, %c0_275, %c0_276] : memref<4x32x128xf32, #tpu.memory_space<vmem>>, vector<1x32x128xf32>
    %631 = vector.shape_cast %630 : vector<1x32x128xf32> to vector<32x128xf32>
    %c2_277 = arith.constant 2 : index
    %c0_278 = arith.constant 0 : index
    %c0_279 = arith.constant 0 : index
    %632 = vector.load %arg5[%c2_277, %c0_278, %c0_279] : memref<4x32x128xf32, #tpu.memory_space<vmem>>, vector<1x32x128xf32>
    %633 = vector.shape_cast %632 : vector<1x32x128xf32> to vector<32x128xf32>
    %cst_280 = arith.constant dense<0.000000e+00> : vector<8x128xf32>
    %634 = tpu.matmul %494, %631, %cst_280 {dimension_numbers = #tpu.dot_dimension_numbers<[1], [0], [0], [1], [0, 0, 1, 1], [], []>} : vector<8x32xf32>, vector<32x128xf32>, vector<8x128xf32> -> vector<8x128xf32>
    %cst_281 = arith.constant dense<0.000000e+00> : vector<8x128xf32>
    %635 = tpu.matmul %520, %633, %cst_281 {dimension_numbers = #tpu.dot_dimension_numbers<[1], [0], [0], [1], [0, 0, 1, 1], [], []>} : vector<8x32xf32>, vector<32x128xf32>, vector<8x128xf32> -> vector<8x128xf32>
    %636 = arith.addf %634, %635 : vector<8x128xf32>
    %637 = arith.addf %636, %15 : vector<8x128xf32>
    %638 = arith.negf %637 : vector<8x128xf32>
    %639 = math.exp %638 : vector<8x128xf32>
    %cst_282 = arith.constant 1.000000e+00 : f32
    %640 = vector.broadcast %cst_282 : f32 to vector<8x128xf32>
    %641 = arith.addf %640, %639 : vector<8x128xf32>
    %642 = arith.divf %640, %641 : vector<8x128xf32>
    %643 = vector.extract_strided_slice %642 {offsets = [0, 0], sizes = [8, 32], strides = [1, 1]} : vector<8x128xf32> to vector<8x32xf32>
    %644 = vector.extract_strided_slice %642 {offsets = [0, 32], sizes = [8, 32], strides = [1, 1]} : vector<8x128xf32> to vector<8x32xf32>
    %645 = vector.extract_strided_slice %642 {offsets = [0, 64], sizes = [8, 32], strides = [1, 1]} : vector<8x128xf32> to vector<8x32xf32>
    %cst_283 = arith.constant 2.000000e+00 : f32
    %646 = vector.broadcast %cst_283 : f32 to vector<8x32xf32>
    %647 = arith.mulf %646, %645 : vector<8x32xf32>
    %cst_284 = arith.constant 1.000000e+00 : f32
    %648 = vector.broadcast %cst_284 : f32 to vector<8x32xf32>
    %649 = arith.subf %647, %648 : vector<8x32xf32>
    %650 = vector.extract_strided_slice %642 {offsets = [0, 96], sizes = [8, 32], strides = [1, 1]} : vector<8x128xf32> to vector<8x32xf32>
    %651 = arith.mulf %644, %518 : vector<8x32xf32>
    %652 = arith.mulf %643, %649 : vector<8x32xf32>
    %653 = arith.addf %651, %652 : vector<8x32xf32>
    %654 = math.tanh %653 : vector<8x32xf32>
    %655 = arith.mulf %650, %654 : vector<8x32xf32>
    %c3_285 = arith.constant 3 : index
    %c0_286 = arith.constant 0 : index
    %c0_287 = arith.constant 0 : index
    %656 = vector.load %arg4[%c3_285, %c0_286, %c0_287] : memref<4x32x128xf32, #tpu.memory_space<vmem>>, vector<1x32x128xf32>
    %657 = vector.shape_cast %656 : vector<1x32x128xf32> to vector<32x128xf32>
    %c3_288 = arith.constant 3 : index
    %c0_289 = arith.constant 0 : index
    %c0_290 = arith.constant 0 : index
    %658 = vector.load %arg5[%c3_288, %c0_289, %c0_290] : memref<4x32x128xf32, #tpu.memory_space<vmem>>, vector<1x32x128xf32>
    %659 = vector.shape_cast %658 : vector<1x32x128xf32> to vector<32x128xf32>
    %cst_291 = arith.constant dense<0.000000e+00> : vector<8x128xf32>
    %660 = tpu.matmul %520, %657, %cst_291 {dimension_numbers = #tpu.dot_dimension_numbers<[1], [0], [0], [1], [0, 0, 1, 1], [], []>} : vector<8x32xf32>, vector<32x128xf32>, vector<8x128xf32> -> vector<8x128xf32>
    %cst_292 = arith.constant dense<0.000000e+00> : vector<8x128xf32>
    %661 = tpu.matmul %546, %659, %cst_292 {dimension_numbers = #tpu.dot_dimension_numbers<[1], [0], [0], [1], [0, 0, 1, 1], [], []>} : vector<8x32xf32>, vector<32x128xf32>, vector<8x128xf32> -> vector<8x128xf32>
    %662 = arith.addf %660, %661 : vector<8x128xf32>
    %663 = arith.addf %662, %19 : vector<8x128xf32>
    %664 = arith.negf %663 : vector<8x128xf32>
    %665 = math.exp %664 : vector<8x128xf32>
    %cst_293 = arith.constant 1.000000e+00 : f32
    %666 = vector.broadcast %cst_293 : f32 to vector<8x128xf32>
    %667 = arith.addf %666, %665 : vector<8x128xf32>
    %668 = arith.divf %666, %667 : vector<8x128xf32>
    %669 = vector.extract_strided_slice %668 {offsets = [0, 0], sizes = [8, 32], strides = [1, 1]} : vector<8x128xf32> to vector<8x32xf32>
    %670 = vector.extract_strided_slice %668 {offsets = [0, 32], sizes = [8, 32], strides = [1, 1]} : vector<8x128xf32> to vector<8x32xf32>
    %671 = vector.extract_strided_slice %668 {offsets = [0, 64], sizes = [8, 32], strides = [1, 1]} : vector<8x128xf32> to vector<8x32xf32>
    %cst_294 = arith.constant 2.000000e+00 : f32
    %672 = vector.broadcast %cst_294 : f32 to vector<8x32xf32>
    %673 = arith.mulf %672, %671 : vector<8x32xf32>
    %cst_295 = arith.constant 1.000000e+00 : f32
    %674 = vector.broadcast %cst_295 : f32 to vector<8x32xf32>
    %675 = arith.subf %673, %674 : vector<8x32xf32>
    %676 = vector.extract_strided_slice %668 {offsets = [0, 96], sizes = [8, 32], strides = [1, 1]} : vector<8x128xf32> to vector<8x32xf32>
    %677 = arith.mulf %670, %544 : vector<8x32xf32>
    %678 = arith.mulf %669, %675 : vector<8x32xf32>
    %679 = arith.addf %677, %678 : vector<8x32xf32>
    %680 = math.tanh %679 : vector<8x32xf32>
    %681 = arith.mulf %676, %680 : vector<8x32xf32>
    %682 = arith.mulf %681, %21 : vector<8x32xf32>
    %cst_296 = arith.constant dense<0.000000e+00> : vector<8xf32>
    %683 = vector.multi_reduction <add>, %682, %cst_296 [1] : vector<8x32xf32> to vector<8xf32>
    %684 = vector.shape_cast %683 : vector<8xf32> to vector<8x1xf32>
    %cst_297 = arith.constant dense<0.000000e+00> : vector<1xf32>
    %685 = vector.multi_reduction <add>, %684, %cst_297 [0] : vector<8x1xf32> to vector<1xf32>
    %686 = vector.shape_cast %685 : vector<1xf32> to vector<1x1xf32>
    %c7 = arith.constant 7 : index
    %c0_298 = arith.constant 0 : index
    %c0_299 = arith.constant 0 : index
    %687 = vector.load %arg1[%c7, %c0_298, %c0_299] : memref<8x8x8xf32, #tpu.memory_space<vmem>>, vector<1x8x8xf32>
    %688 = vector.shape_cast %687 : vector<1x8x8xf32> to vector<8x8xf32>
    %c0_300 = arith.constant 0 : index
    %c0_301 = arith.constant 0 : index
    %689 = vector.load %arg2[%c0_300, %c0_301] : memref<8x128xf32, #tpu.memory_space<vmem>>, vector<8x128xf32>
    %c0_302 = arith.constant 0 : index
    %c0_303 = arith.constant 0 : index
    %690 = vector.load %arg3[%c0_302, %c0_303] : memref<32x128xf32, #tpu.memory_space<vmem>>, vector<32x128xf32>
    %cst_304 = arith.constant dense<0.000000e+00> : vector<8x128xf32>
    %691 = tpu.matmul %688, %689, %cst_304 {dimension_numbers = #tpu.dot_dimension_numbers<[1], [0], [0], [1], [0, 0, 1, 1], [], []>} : vector<8x8xf32>, vector<8x128xf32>, vector<8x128xf32> -> vector<8x128xf32>
    %cst_305 = arith.constant dense<0.000000e+00> : vector<8x128xf32>
    %692 = tpu.matmul %577, %690, %cst_305 {dimension_numbers = #tpu.dot_dimension_numbers<[1], [0], [0], [1], [0, 0, 1, 1], [], []>} : vector<8x32xf32>, vector<32x128xf32>, vector<8x128xf32> -> vector<8x128xf32>
    %693 = arith.addf %691, %692 : vector<8x128xf32>
    %694 = arith.addf %693, %3 : vector<8x128xf32>
    %695 = arith.negf %694 : vector<8x128xf32>
    %696 = math.exp %695 : vector<8x128xf32>
    %cst_306 = arith.constant 1.000000e+00 : f32
    %697 = vector.broadcast %cst_306 : f32 to vector<8x128xf32>
    %698 = arith.addf %697, %696 : vector<8x128xf32>
    %699 = arith.divf %697, %698 : vector<8x128xf32>
    %700 = vector.extract_strided_slice %699 {offsets = [0, 0], sizes = [8, 32], strides = [1, 1]} : vector<8x128xf32> to vector<8x32xf32>
    %701 = vector.extract_strided_slice %699 {offsets = [0, 32], sizes = [8, 32], strides = [1, 1]} : vector<8x128xf32> to vector<8x32xf32>
    %702 = vector.extract_strided_slice %699 {offsets = [0, 64], sizes = [8, 32], strides = [1, 1]} : vector<8x128xf32> to vector<8x32xf32>
    %cst_307 = arith.constant 2.000000e+00 : f32
    %703 = vector.broadcast %cst_307 : f32 to vector<8x32xf32>
    %704 = arith.mulf %703, %702 : vector<8x32xf32>
    %cst_308 = arith.constant 1.000000e+00 : f32
    %705 = vector.broadcast %cst_308 : f32 to vector<8x32xf32>
    %706 = arith.subf %704, %705 : vector<8x32xf32>
    %707 = vector.extract_strided_slice %699 {offsets = [0, 96], sizes = [8, 32], strides = [1, 1]} : vector<8x128xf32> to vector<8x32xf32>
    %708 = arith.mulf %701, %575 : vector<8x32xf32>
    %709 = arith.mulf %700, %706 : vector<8x32xf32>
    %710 = arith.addf %708, %709 : vector<8x32xf32>
    %711 = math.tanh %710 : vector<8x32xf32>
    %712 = arith.mulf %707, %711 : vector<8x32xf32>
    %c0_309 = arith.constant 0 : index
    %c0_310 = arith.constant 0 : index
    %c0_311 = arith.constant 0 : index
    %713 = vector.load %arg4[%c0_309, %c0_310, %c0_311] : memref<4x32x128xf32, #tpu.memory_space<vmem>>, vector<1x32x128xf32>
    %714 = vector.shape_cast %713 : vector<1x32x128xf32> to vector<32x128xf32>
    %c0_312 = arith.constant 0 : index
    %c0_313 = arith.constant 0 : index
    %c0_314 = arith.constant 0 : index
    %715 = vector.load %arg5[%c0_312, %c0_313, %c0_314] : memref<4x32x128xf32, #tpu.memory_space<vmem>>, vector<1x32x128xf32>
    %716 = vector.shape_cast %715 : vector<1x32x128xf32> to vector<32x128xf32>
    %cst_315 = arith.constant dense<0.000000e+00> : vector<8x128xf32>
    %717 = tpu.matmul %577, %714, %cst_315 {dimension_numbers = #tpu.dot_dimension_numbers<[1], [0], [0], [1], [0, 0, 1, 1], [], []>} : vector<8x32xf32>, vector<32x128xf32>, vector<8x128xf32> -> vector<8x128xf32>
    %cst_316 = arith.constant dense<0.000000e+00> : vector<8x128xf32>
    %718 = tpu.matmul %603, %716, %cst_316 {dimension_numbers = #tpu.dot_dimension_numbers<[1], [0], [0], [1], [0, 0, 1, 1], [], []>} : vector<8x32xf32>, vector<32x128xf32>, vector<8x128xf32> -> vector<8x128xf32>
    %719 = arith.addf %717, %718 : vector<8x128xf32>
    %720 = arith.addf %719, %7 : vector<8x128xf32>
    %721 = arith.negf %720 : vector<8x128xf32>
    %722 = math.exp %721 : vector<8x128xf32>
    %cst_317 = arith.constant 1.000000e+00 : f32
    %723 = vector.broadcast %cst_317 : f32 to vector<8x128xf32>
    %724 = arith.addf %723, %722 : vector<8x128xf32>
    %725 = arith.divf %723, %724 : vector<8x128xf32>
    %726 = vector.extract_strided_slice %725 {offsets = [0, 0], sizes = [8, 32], strides = [1, 1]} : vector<8x128xf32> to vector<8x32xf32>
    %727 = vector.extract_strided_slice %725 {offsets = [0, 32], sizes = [8, 32], strides = [1, 1]} : vector<8x128xf32> to vector<8x32xf32>
    %728 = vector.extract_strided_slice %725 {offsets = [0, 64], sizes = [8, 32], strides = [1, 1]} : vector<8x128xf32> to vector<8x32xf32>
    %cst_318 = arith.constant 2.000000e+00 : f32
    %729 = vector.broadcast %cst_318 : f32 to vector<8x32xf32>
    %730 = arith.mulf %729, %728 : vector<8x32xf32>
    %cst_319 = arith.constant 1.000000e+00 : f32
    %731 = vector.broadcast %cst_319 : f32 to vector<8x32xf32>
    %732 = arith.subf %730, %731 : vector<8x32xf32>
    %733 = vector.extract_strided_slice %725 {offsets = [0, 96], sizes = [8, 32], strides = [1, 1]} : vector<8x128xf32> to vector<8x32xf32>
    %734 = arith.mulf %727, %601 : vector<8x32xf32>
    %735 = arith.mulf %726, %732 : vector<8x32xf32>
    %736 = arith.addf %734, %735 : vector<8x32xf32>
    %737 = math.tanh %736 : vector<8x32xf32>
    %738 = arith.mulf %733, %737 : vector<8x32xf32>
    %c1_320 = arith.constant 1 : index
    %c0_321 = arith.constant 0 : index
    %c0_322 = arith.constant 0 : index
    %739 = vector.load %arg4[%c1_320, %c0_321, %c0_322] : memref<4x32x128xf32, #tpu.memory_space<vmem>>, vector<1x32x128xf32>
    %740 = vector.shape_cast %739 : vector<1x32x128xf32> to vector<32x128xf32>
    %c1_323 = arith.constant 1 : index
    %c0_324 = arith.constant 0 : index
    %c0_325 = arith.constant 0 : index
    %741 = vector.load %arg5[%c1_323, %c0_324, %c0_325] : memref<4x32x128xf32, #tpu.memory_space<vmem>>, vector<1x32x128xf32>
    %742 = vector.shape_cast %741 : vector<1x32x128xf32> to vector<32x128xf32>
    %cst_326 = arith.constant dense<0.000000e+00> : vector<8x128xf32>
    %743 = tpu.matmul %603, %740, %cst_326 {dimension_numbers = #tpu.dot_dimension_numbers<[1], [0], [0], [1], [0, 0, 1, 1], [], []>} : vector<8x32xf32>, vector<32x128xf32>, vector<8x128xf32> -> vector<8x128xf32>
    %cst_327 = arith.constant dense<0.000000e+00> : vector<8x128xf32>
    %744 = tpu.matmul %629, %742, %cst_327 {dimension_numbers = #tpu.dot_dimension_numbers<[1], [0], [0], [1], [0, 0, 1, 1], [], []>} : vector<8x32xf32>, vector<32x128xf32>, vector<8x128xf32> -> vector<8x128xf32>
    %745 = arith.addf %743, %744 : vector<8x128xf32>
    %746 = arith.addf %745, %11 : vector<8x128xf32>
    %747 = arith.negf %746 : vector<8x128xf32>
    %748 = math.exp %747 : vector<8x128xf32>
    %cst_328 = arith.constant 1.000000e+00 : f32
    %749 = vector.broadcast %cst_328 : f32 to vector<8x128xf32>
    %750 = arith.addf %749, %748 : vector<8x128xf32>
    %751 = arith.divf %749, %750 : vector<8x128xf32>
    %752 = vector.extract_strided_slice %751 {offsets = [0, 0], sizes = [8, 32], strides = [1, 1]} : vector<8x128xf32> to vector<8x32xf32>
    %753 = vector.extract_strided_slice %751 {offsets = [0, 32], sizes = [8, 32], strides = [1, 1]} : vector<8x128xf32> to vector<8x32xf32>
    %754 = vector.extract_strided_slice %751 {offsets = [0, 64], sizes = [8, 32], strides = [1, 1]} : vector<8x128xf32> to vector<8x32xf32>
    %cst_329 = arith.constant 2.000000e+00 : f32
    %755 = vector.broadcast %cst_329 : f32 to vector<8x32xf32>
    %756 = arith.mulf %755, %754 : vector<8x32xf32>
    %cst_330 = arith.constant 1.000000e+00 : f32
    %757 = vector.broadcast %cst_330 : f32 to vector<8x32xf32>
    %758 = arith.subf %756, %757 : vector<8x32xf32>
    %759 = vector.extract_strided_slice %751 {offsets = [0, 96], sizes = [8, 32], strides = [1, 1]} : vector<8x128xf32> to vector<8x32xf32>
    %760 = arith.mulf %753, %627 : vector<8x32xf32>
    %761 = arith.mulf %752, %758 : vector<8x32xf32>
    %762 = arith.addf %760, %761 : vector<8x32xf32>
    %763 = math.tanh %762 : vector<8x32xf32>
    %764 = arith.mulf %759, %763 : vector<8x32xf32>
    %c2_331 = arith.constant 2 : index
    %c0_332 = arith.constant 0 : index
    %c0_333 = arith.constant 0 : index
    %765 = vector.load %arg4[%c2_331, %c0_332, %c0_333] : memref<4x32x128xf32, #tpu.memory_space<vmem>>, vector<1x32x128xf32>
    %766 = vector.shape_cast %765 : vector<1x32x128xf32> to vector<32x128xf32>
    %c2_334 = arith.constant 2 : index
    %c0_335 = arith.constant 0 : index
    %c0_336 = arith.constant 0 : index
    %767 = vector.load %arg5[%c2_334, %c0_335, %c0_336] : memref<4x32x128xf32, #tpu.memory_space<vmem>>, vector<1x32x128xf32>
    %768 = vector.shape_cast %767 : vector<1x32x128xf32> to vector<32x128xf32>
    %cst_337 = arith.constant dense<0.000000e+00> : vector<8x128xf32>
    %769 = tpu.matmul %629, %766, %cst_337 {dimension_numbers = #tpu.dot_dimension_numbers<[1], [0], [0], [1], [0, 0, 1, 1], [], []>} : vector<8x32xf32>, vector<32x128xf32>, vector<8x128xf32> -> vector<8x128xf32>
    %cst_338 = arith.constant dense<0.000000e+00> : vector<8x128xf32>
    %770 = tpu.matmul %655, %768, %cst_338 {dimension_numbers = #tpu.dot_dimension_numbers<[1], [0], [0], [1], [0, 0, 1, 1], [], []>} : vector<8x32xf32>, vector<32x128xf32>, vector<8x128xf32> -> vector<8x128xf32>
    %771 = arith.addf %769, %770 : vector<8x128xf32>
    %772 = arith.addf %771, %15 : vector<8x128xf32>
    %773 = arith.negf %772 : vector<8x128xf32>
    %774 = math.exp %773 : vector<8x128xf32>
    %cst_339 = arith.constant 1.000000e+00 : f32
    %775 = vector.broadcast %cst_339 : f32 to vector<8x128xf32>
    %776 = arith.addf %775, %774 : vector<8x128xf32>
    %777 = arith.divf %775, %776 : vector<8x128xf32>
    %778 = vector.extract_strided_slice %777 {offsets = [0, 0], sizes = [8, 32], strides = [1, 1]} : vector<8x128xf32> to vector<8x32xf32>
    %779 = vector.extract_strided_slice %777 {offsets = [0, 32], sizes = [8, 32], strides = [1, 1]} : vector<8x128xf32> to vector<8x32xf32>
    %780 = vector.extract_strided_slice %777 {offsets = [0, 64], sizes = [8, 32], strides = [1, 1]} : vector<8x128xf32> to vector<8x32xf32>
    %cst_340 = arith.constant 2.000000e+00 : f32
    %781 = vector.broadcast %cst_340 : f32 to vector<8x32xf32>
    %782 = arith.mulf %781, %780 : vector<8x32xf32>
    %cst_341 = arith.constant 1.000000e+00 : f32
    %783 = vector.broadcast %cst_341 : f32 to vector<8x32xf32>
    %784 = arith.subf %782, %783 : vector<8x32xf32>
    %785 = vector.extract_strided_slice %777 {offsets = [0, 96], sizes = [8, 32], strides = [1, 1]} : vector<8x128xf32> to vector<8x32xf32>
    %786 = arith.mulf %779, %653 : vector<8x32xf32>
    %787 = arith.mulf %778, %784 : vector<8x32xf32>
    %788 = arith.addf %786, %787 : vector<8x32xf32>
    %789 = math.tanh %788 : vector<8x32xf32>
    %790 = arith.mulf %785, %789 : vector<8x32xf32>
    %c3_342 = arith.constant 3 : index
    %c0_343 = arith.constant 0 : index
    %c0_344 = arith.constant 0 : index
    %791 = vector.load %arg4[%c3_342, %c0_343, %c0_344] : memref<4x32x128xf32, #tpu.memory_space<vmem>>, vector<1x32x128xf32>
    %792 = vector.shape_cast %791 : vector<1x32x128xf32> to vector<32x128xf32>
    %c3_345 = arith.constant 3 : index
    %c0_346 = arith.constant 0 : index
    %c0_347 = arith.constant 0 : index
    %793 = vector.load %arg5[%c3_345, %c0_346, %c0_347] : memref<4x32x128xf32, #tpu.memory_space<vmem>>, vector<1x32x128xf32>
    %794 = vector.shape_cast %793 : vector<1x32x128xf32> to vector<32x128xf32>
    %cst_348 = arith.constant dense<0.000000e+00> : vector<8x128xf32>
    %795 = tpu.matmul %655, %792, %cst_348 {dimension_numbers = #tpu.dot_dimension_numbers<[1], [0], [0], [1], [0, 0, 1, 1], [], []>} : vector<8x32xf32>, vector<32x128xf32>, vector<8x128xf32> -> vector<8x128xf32>
    %cst_349 = arith.constant dense<0.000000e+00> : vector<8x128xf32>
    %796 = tpu.matmul %681, %794, %cst_349 {dimension_numbers = #tpu.dot_dimension_numbers<[1], [0], [0], [1], [0, 0, 1, 1], [], []>} : vector<8x32xf32>, vector<32x128xf32>, vector<8x128xf32> -> vector<8x128xf32>
    %797 = arith.addf %795, %796 : vector<8x128xf32>
    %798 = arith.addf %797, %19 : vector<8x128xf32>
    %799 = arith.negf %798 : vector<8x128xf32>
    %800 = math.exp %799 : vector<8x128xf32>
    %cst_350 = arith.constant 1.000000e+00 : f32
    %801 = vector.broadcast %cst_350 : f32 to vector<8x128xf32>
    %802 = arith.addf %801, %800 : vector<8x128xf32>
    %803 = arith.divf %801, %802 : vector<8x128xf32>
    %804 = vector.extract_strided_slice %803 {offsets = [0, 0], sizes = [8, 32], strides = [1, 1]} : vector<8x128xf32> to vector<8x32xf32>
    %805 = vector.extract_strided_slice %803 {offsets = [0, 32], sizes = [8, 32], strides = [1, 1]} : vector<8x128xf32> to vector<8x32xf32>
    %806 = vector.extract_strided_slice %803 {offsets = [0, 64], sizes = [8, 32], strides = [1, 1]} : vector<8x128xf32> to vector<8x32xf32>
    %cst_351 = arith.constant 2.000000e+00 : f32
    %807 = vector.broadcast %cst_351 : f32 to vector<8x32xf32>
    %808 = arith.mulf %807, %806 : vector<8x32xf32>
    %cst_352 = arith.constant 1.000000e+00 : f32
    %809 = vector.broadcast %cst_352 : f32 to vector<8x32xf32>
    %810 = arith.subf %808, %809 : vector<8x32xf32>
    %811 = vector.extract_strided_slice %803 {offsets = [0, 96], sizes = [8, 32], strides = [1, 1]} : vector<8x128xf32> to vector<8x32xf32>
    %812 = arith.mulf %805, %679 : vector<8x32xf32>
    %813 = arith.mulf %804, %810 : vector<8x32xf32>
    %814 = arith.addf %812, %813 : vector<8x32xf32>
    %815 = math.tanh %814 : vector<8x32xf32>
    %816 = arith.mulf %811, %815 : vector<8x32xf32>
    %817 = arith.mulf %816, %21 : vector<8x32xf32>
    %cst_353 = arith.constant dense<0.000000e+00> : vector<8xf32>
    %818 = vector.multi_reduction <add>, %817, %cst_353 [1] : vector<8x32xf32> to vector<8xf32>
    %819 = vector.shape_cast %818 : vector<8xf32> to vector<8x1xf32>
    %cst_354 = arith.constant dense<0.000000e+00> : vector<1xf32>
    %820 = vector.multi_reduction <add>, %819, %cst_354 [0] : vector<8x1xf32> to vector<1xf32>
    %821 = vector.shape_cast %820 : vector<1xf32> to vector<1x1xf32>
    %c0_355 = arith.constant 0 : index
    %c0_356 = arith.constant 0 : index
    %c0_357 = arith.constant 0 : index
    %822 = vector.load %arg4[%c0_355, %c0_356, %c0_357] : memref<4x32x128xf32, #tpu.memory_space<vmem>>, vector<1x32x128xf32>
    %823 = vector.shape_cast %822 : vector<1x32x128xf32> to vector<32x128xf32>
    %c0_358 = arith.constant 0 : index
    %c0_359 = arith.constant 0 : index
    %c0_360 = arith.constant 0 : index
    %824 = vector.load %arg5[%c0_358, %c0_359, %c0_360] : memref<4x32x128xf32, #tpu.memory_space<vmem>>, vector<1x32x128xf32>
    %825 = vector.shape_cast %824 : vector<1x32x128xf32> to vector<32x128xf32>
    %cst_361 = arith.constant dense<0.000000e+00> : vector<8x128xf32>
    %826 = tpu.matmul %712, %823, %cst_361 {dimension_numbers = #tpu.dot_dimension_numbers<[1], [0], [0], [1], [0, 0, 1, 1], [], []>} : vector<8x32xf32>, vector<32x128xf32>, vector<8x128xf32> -> vector<8x128xf32>
    %cst_362 = arith.constant dense<0.000000e+00> : vector<8x128xf32>
    %827 = tpu.matmul %738, %825, %cst_362 {dimension_numbers = #tpu.dot_dimension_numbers<[1], [0], [0], [1], [0, 0, 1, 1], [], []>} : vector<8x32xf32>, vector<32x128xf32>, vector<8x128xf32> -> vector<8x128xf32>
    %828 = arith.addf %826, %827 : vector<8x128xf32>
    %829 = arith.addf %828, %7 : vector<8x128xf32>
    %830 = arith.negf %829 : vector<8x128xf32>
    %831 = math.exp %830 : vector<8x128xf32>
    %cst_363 = arith.constant 1.000000e+00 : f32
    %832 = vector.broadcast %cst_363 : f32 to vector<8x128xf32>
    %833 = arith.addf %832, %831 : vector<8x128xf32>
    %834 = arith.divf %832, %833 : vector<8x128xf32>
    %835 = vector.extract_strided_slice %834 {offsets = [0, 0], sizes = [8, 32], strides = [1, 1]} : vector<8x128xf32> to vector<8x32xf32>
    %836 = vector.extract_strided_slice %834 {offsets = [0, 32], sizes = [8, 32], strides = [1, 1]} : vector<8x128xf32> to vector<8x32xf32>
    %837 = vector.extract_strided_slice %834 {offsets = [0, 64], sizes = [8, 32], strides = [1, 1]} : vector<8x128xf32> to vector<8x32xf32>
    %cst_364 = arith.constant 2.000000e+00 : f32
    %838 = vector.broadcast %cst_364 : f32 to vector<8x32xf32>
    %839 = arith.mulf %838, %837 : vector<8x32xf32>
    %cst_365 = arith.constant 1.000000e+00 : f32
    %840 = vector.broadcast %cst_365 : f32 to vector<8x32xf32>
    %841 = arith.subf %839, %840 : vector<8x32xf32>
    %842 = vector.extract_strided_slice %834 {offsets = [0, 96], sizes = [8, 32], strides = [1, 1]} : vector<8x128xf32> to vector<8x32xf32>
    %843 = arith.mulf %836, %736 : vector<8x32xf32>
    %844 = arith.mulf %835, %841 : vector<8x32xf32>
    %845 = arith.addf %843, %844 : vector<8x32xf32>
    %846 = math.tanh %845 : vector<8x32xf32>
    %847 = arith.mulf %842, %846 : vector<8x32xf32>
    %c1_366 = arith.constant 1 : index
    %c0_367 = arith.constant 0 : index
    %c0_368 = arith.constant 0 : index
    %848 = vector.load %arg4[%c1_366, %c0_367, %c0_368] : memref<4x32x128xf32, #tpu.memory_space<vmem>>, vector<1x32x128xf32>
    %849 = vector.shape_cast %848 : vector<1x32x128xf32> to vector<32x128xf32>
    %c1_369 = arith.constant 1 : index
    %c0_370 = arith.constant 0 : index
    %c0_371 = arith.constant 0 : index
    %850 = vector.load %arg5[%c1_369, %c0_370, %c0_371] : memref<4x32x128xf32, #tpu.memory_space<vmem>>, vector<1x32x128xf32>
    %851 = vector.shape_cast %850 : vector<1x32x128xf32> to vector<32x128xf32>
    %cst_372 = arith.constant dense<0.000000e+00> : vector<8x128xf32>
    %852 = tpu.matmul %738, %849, %cst_372 {dimension_numbers = #tpu.dot_dimension_numbers<[1], [0], [0], [1], [0, 0, 1, 1], [], []>} : vector<8x32xf32>, vector<32x128xf32>, vector<8x128xf32> -> vector<8x128xf32>
    %cst_373 = arith.constant dense<0.000000e+00> : vector<8x128xf32>
    %853 = tpu.matmul %764, %851, %cst_373 {dimension_numbers = #tpu.dot_dimension_numbers<[1], [0], [0], [1], [0, 0, 1, 1], [], []>} : vector<8x32xf32>, vector<32x128xf32>, vector<8x128xf32> -> vector<8x128xf32>
    %854 = arith.addf %852, %853 : vector<8x128xf32>
    %855 = arith.addf %854, %11 : vector<8x128xf32>
    %856 = arith.negf %855 : vector<8x128xf32>
    %857 = math.exp %856 : vector<8x128xf32>
    %cst_374 = arith.constant 1.000000e+00 : f32
    %858 = vector.broadcast %cst_374 : f32 to vector<8x128xf32>
    %859 = arith.addf %858, %857 : vector<8x128xf32>
    %860 = arith.divf %858, %859 : vector<8x128xf32>
    %861 = vector.extract_strided_slice %860 {offsets = [0, 0], sizes = [8, 32], strides = [1, 1]} : vector<8x128xf32> to vector<8x32xf32>
    %862 = vector.extract_strided_slice %860 {offsets = [0, 32], sizes = [8, 32], strides = [1, 1]} : vector<8x128xf32> to vector<8x32xf32>
    %863 = vector.extract_strided_slice %860 {offsets = [0, 64], sizes = [8, 32], strides = [1, 1]} : vector<8x128xf32> to vector<8x32xf32>
    %cst_375 = arith.constant 2.000000e+00 : f32
    %864 = vector.broadcast %cst_375 : f32 to vector<8x32xf32>
    %865 = arith.mulf %864, %863 : vector<8x32xf32>
    %cst_376 = arith.constant 1.000000e+00 : f32
    %866 = vector.broadcast %cst_376 : f32 to vector<8x32xf32>
    %867 = arith.subf %865, %866 : vector<8x32xf32>
    %868 = vector.extract_strided_slice %860 {offsets = [0, 96], sizes = [8, 32], strides = [1, 1]} : vector<8x128xf32> to vector<8x32xf32>
    %869 = arith.mulf %862, %762 : vector<8x32xf32>
    %870 = arith.mulf %861, %867 : vector<8x32xf32>
    %871 = arith.addf %869, %870 : vector<8x32xf32>
    %872 = math.tanh %871 : vector<8x32xf32>
    %873 = arith.mulf %868, %872 : vector<8x32xf32>
    %c2_377 = arith.constant 2 : index
    %c0_378 = arith.constant 0 : index
    %c0_379 = arith.constant 0 : index
    %874 = vector.load %arg4[%c2_377, %c0_378, %c0_379] : memref<4x32x128xf32, #tpu.memory_space<vmem>>, vector<1x32x128xf32>
    %875 = vector.shape_cast %874 : vector<1x32x128xf32> to vector<32x128xf32>
    %c2_380 = arith.constant 2 : index
    %c0_381 = arith.constant 0 : index
    %c0_382 = arith.constant 0 : index
    %876 = vector.load %arg5[%c2_380, %c0_381, %c0_382] : memref<4x32x128xf32, #tpu.memory_space<vmem>>, vector<1x32x128xf32>
    %877 = vector.shape_cast %876 : vector<1x32x128xf32> to vector<32x128xf32>
    %cst_383 = arith.constant dense<0.000000e+00> : vector<8x128xf32>
    %878 = tpu.matmul %764, %875, %cst_383 {dimension_numbers = #tpu.dot_dimension_numbers<[1], [0], [0], [1], [0, 0, 1, 1], [], []>} : vector<8x32xf32>, vector<32x128xf32>, vector<8x128xf32> -> vector<8x128xf32>
    %cst_384 = arith.constant dense<0.000000e+00> : vector<8x128xf32>
    %879 = tpu.matmul %790, %877, %cst_384 {dimension_numbers = #tpu.dot_dimension_numbers<[1], [0], [0], [1], [0, 0, 1, 1], [], []>} : vector<8x32xf32>, vector<32x128xf32>, vector<8x128xf32> -> vector<8x128xf32>
    %880 = arith.addf %878, %879 : vector<8x128xf32>
    %881 = arith.addf %880, %15 : vector<8x128xf32>
    %882 = arith.negf %881 : vector<8x128xf32>
    %883 = math.exp %882 : vector<8x128xf32>
    %cst_385 = arith.constant 1.000000e+00 : f32
    %884 = vector.broadcast %cst_385 : f32 to vector<8x128xf32>
    %885 = arith.addf %884, %883 : vector<8x128xf32>
    %886 = arith.divf %884, %885 : vector<8x128xf32>
    %887 = vector.extract_strided_slice %886 {offsets = [0, 0], sizes = [8, 32], strides = [1, 1]} : vector<8x128xf32> to vector<8x32xf32>
    %888 = vector.extract_strided_slice %886 {offsets = [0, 32], sizes = [8, 32], strides = [1, 1]} : vector<8x128xf32> to vector<8x32xf32>
    %889 = vector.extract_strided_slice %886 {offsets = [0, 64], sizes = [8, 32], strides = [1, 1]} : vector<8x128xf32> to vector<8x32xf32>
    %cst_386 = arith.constant 2.000000e+00 : f32
    %890 = vector.broadcast %cst_386 : f32 to vector<8x32xf32>
    %891 = arith.mulf %890, %889 : vector<8x32xf32>
    %cst_387 = arith.constant 1.000000e+00 : f32
    %892 = vector.broadcast %cst_387 : f32 to vector<8x32xf32>
    %893 = arith.subf %891, %892 : vector<8x32xf32>
    %894 = vector.extract_strided_slice %886 {offsets = [0, 96], sizes = [8, 32], strides = [1, 1]} : vector<8x128xf32> to vector<8x32xf32>
    %895 = arith.mulf %888, %788 : vector<8x32xf32>
    %896 = arith.mulf %887, %893 : vector<8x32xf32>
    %897 = arith.addf %895, %896 : vector<8x32xf32>
    %898 = math.tanh %897 : vector<8x32xf32>
    %899 = arith.mulf %894, %898 : vector<8x32xf32>
    %c3_388 = arith.constant 3 : index
    %c0_389 = arith.constant 0 : index
    %c0_390 = arith.constant 0 : index
    %900 = vector.load %arg4[%c3_388, %c0_389, %c0_390] : memref<4x32x128xf32, #tpu.memory_space<vmem>>, vector<1x32x128xf32>
    %901 = vector.shape_cast %900 : vector<1x32x128xf32> to vector<32x128xf32>
    %c3_391 = arith.constant 3 : index
    %c0_392 = arith.constant 0 : index
    %c0_393 = arith.constant 0 : index
    %902 = vector.load %arg5[%c3_391, %c0_392, %c0_393] : memref<4x32x128xf32, #tpu.memory_space<vmem>>, vector<1x32x128xf32>
    %903 = vector.shape_cast %902 : vector<1x32x128xf32> to vector<32x128xf32>
    %cst_394 = arith.constant dense<0.000000e+00> : vector<8x128xf32>
    %904 = tpu.matmul %790, %901, %cst_394 {dimension_numbers = #tpu.dot_dimension_numbers<[1], [0], [0], [1], [0, 0, 1, 1], [], []>} : vector<8x32xf32>, vector<32x128xf32>, vector<8x128xf32> -> vector<8x128xf32>
    %cst_395 = arith.constant dense<0.000000e+00> : vector<8x128xf32>
    %905 = tpu.matmul %816, %903, %cst_395 {dimension_numbers = #tpu.dot_dimension_numbers<[1], [0], [0], [1], [0, 0, 1, 1], [], []>} : vector<8x32xf32>, vector<32x128xf32>, vector<8x128xf32> -> vector<8x128xf32>
    %906 = arith.addf %904, %905 : vector<8x128xf32>
    %907 = arith.addf %906, %19 : vector<8x128xf32>
    %908 = arith.negf %907 : vector<8x128xf32>
    %909 = math.exp %908 : vector<8x128xf32>
    %cst_396 = arith.constant 1.000000e+00 : f32
    %910 = vector.broadcast %cst_396 : f32 to vector<8x128xf32>
    %911 = arith.addf %910, %909 : vector<8x128xf32>
    %912 = arith.divf %910, %911 : vector<8x128xf32>
    %913 = vector.extract_strided_slice %912 {offsets = [0, 0], sizes = [8, 32], strides = [1, 1]} : vector<8x128xf32> to vector<8x32xf32>
    %914 = vector.extract_strided_slice %912 {offsets = [0, 32], sizes = [8, 32], strides = [1, 1]} : vector<8x128xf32> to vector<8x32xf32>
    %915 = vector.extract_strided_slice %912 {offsets = [0, 64], sizes = [8, 32], strides = [1, 1]} : vector<8x128xf32> to vector<8x32xf32>
    %cst_397 = arith.constant 2.000000e+00 : f32
    %916 = vector.broadcast %cst_397 : f32 to vector<8x32xf32>
    %917 = arith.mulf %916, %915 : vector<8x32xf32>
    %cst_398 = arith.constant 1.000000e+00 : f32
    %918 = vector.broadcast %cst_398 : f32 to vector<8x32xf32>
    %919 = arith.subf %917, %918 : vector<8x32xf32>
    %920 = vector.extract_strided_slice %912 {offsets = [0, 96], sizes = [8, 32], strides = [1, 1]} : vector<8x128xf32> to vector<8x32xf32>
    %921 = arith.mulf %914, %814 : vector<8x32xf32>
    %922 = arith.mulf %913, %919 : vector<8x32xf32>
    %923 = arith.addf %921, %922 : vector<8x32xf32>
    %924 = math.tanh %923 : vector<8x32xf32>
    %925 = arith.mulf %920, %924 : vector<8x32xf32>
    %926 = arith.mulf %925, %21 : vector<8x32xf32>
    %cst_399 = arith.constant dense<0.000000e+00> : vector<8xf32>
    %927 = vector.multi_reduction <add>, %926, %cst_399 [1] : vector<8x32xf32> to vector<8xf32>
    %928 = vector.shape_cast %927 : vector<8xf32> to vector<8x1xf32>
    %cst_400 = arith.constant dense<0.000000e+00> : vector<1xf32>
    %929 = vector.multi_reduction <add>, %928, %cst_400 [0] : vector<8x1xf32> to vector<1xf32>
    %930 = vector.shape_cast %929 : vector<1xf32> to vector<1x1xf32>
    %c1_401 = arith.constant 1 : index
    %c0_402 = arith.constant 0 : index
    %c0_403 = arith.constant 0 : index
    %931 = vector.load %arg4[%c1_401, %c0_402, %c0_403] : memref<4x32x128xf32, #tpu.memory_space<vmem>>, vector<1x32x128xf32>
    %932 = vector.shape_cast %931 : vector<1x32x128xf32> to vector<32x128xf32>
    %c1_404 = arith.constant 1 : index
    %c0_405 = arith.constant 0 : index
    %c0_406 = arith.constant 0 : index
    %933 = vector.load %arg5[%c1_404, %c0_405, %c0_406] : memref<4x32x128xf32, #tpu.memory_space<vmem>>, vector<1x32x128xf32>
    %934 = vector.shape_cast %933 : vector<1x32x128xf32> to vector<32x128xf32>
    %cst_407 = arith.constant dense<0.000000e+00> : vector<8x128xf32>
    %935 = tpu.matmul %847, %932, %cst_407 {dimension_numbers = #tpu.dot_dimension_numbers<[1], [0], [0], [1], [0, 0, 1, 1], [], []>} : vector<8x32xf32>, vector<32x128xf32>, vector<8x128xf32> -> vector<8x128xf32>
    %cst_408 = arith.constant dense<0.000000e+00> : vector<8x128xf32>
    %936 = tpu.matmul %873, %934, %cst_408 {dimension_numbers = #tpu.dot_dimension_numbers<[1], [0], [0], [1], [0, 0, 1, 1], [], []>} : vector<8x32xf32>, vector<32x128xf32>, vector<8x128xf32> -> vector<8x128xf32>
    %937 = arith.addf %935, %936 : vector<8x128xf32>
    %938 = arith.addf %937, %11 : vector<8x128xf32>
    %939 = arith.negf %938 : vector<8x128xf32>
    %940 = math.exp %939 : vector<8x128xf32>
    %cst_409 = arith.constant 1.000000e+00 : f32
    %941 = vector.broadcast %cst_409 : f32 to vector<8x128xf32>
    %942 = arith.addf %941, %940 : vector<8x128xf32>
    %943 = arith.divf %941, %942 : vector<8x128xf32>
    %944 = vector.extract_strided_slice %943 {offsets = [0, 0], sizes = [8, 32], strides = [1, 1]} : vector<8x128xf32> to vector<8x32xf32>
    %945 = vector.extract_strided_slice %943 {offsets = [0, 32], sizes = [8, 32], strides = [1, 1]} : vector<8x128xf32> to vector<8x32xf32>
    %946 = vector.extract_strided_slice %943 {offsets = [0, 64], sizes = [8, 32], strides = [1, 1]} : vector<8x128xf32> to vector<8x32xf32>
    %cst_410 = arith.constant 2.000000e+00 : f32
    %947 = vector.broadcast %cst_410 : f32 to vector<8x32xf32>
    %948 = arith.mulf %947, %946 : vector<8x32xf32>
    %cst_411 = arith.constant 1.000000e+00 : f32
    %949 = vector.broadcast %cst_411 : f32 to vector<8x32xf32>
    %950 = arith.subf %948, %949 : vector<8x32xf32>
    %951 = vector.extract_strided_slice %943 {offsets = [0, 96], sizes = [8, 32], strides = [1, 1]} : vector<8x128xf32> to vector<8x32xf32>
    %952 = arith.mulf %945, %871 : vector<8x32xf32>
    %953 = arith.mulf %944, %950 : vector<8x32xf32>
    %954 = arith.addf %952, %953 : vector<8x32xf32>
    %955 = math.tanh %954 : vector<8x32xf32>
    %956 = arith.mulf %951, %955 : vector<8x32xf32>
    %c2_412 = arith.constant 2 : index
    %c0_413 = arith.constant 0 : index
    %c0_414 = arith.constant 0 : index
    %957 = vector.load %arg4[%c2_412, %c0_413, %c0_414] : memref<4x32x128xf32, #tpu.memory_space<vmem>>, vector<1x32x128xf32>
    %958 = vector.shape_cast %957 : vector<1x32x128xf32> to vector<32x128xf32>
    %c2_415 = arith.constant 2 : index
    %c0_416 = arith.constant 0 : index
    %c0_417 = arith.constant 0 : index
    %959 = vector.load %arg5[%c2_415, %c0_416, %c0_417] : memref<4x32x128xf32, #tpu.memory_space<vmem>>, vector<1x32x128xf32>
    %960 = vector.shape_cast %959 : vector<1x32x128xf32> to vector<32x128xf32>
    %cst_418 = arith.constant dense<0.000000e+00> : vector<8x128xf32>
    %961 = tpu.matmul %873, %958, %cst_418 {dimension_numbers = #tpu.dot_dimension_numbers<[1], [0], [0], [1], [0, 0, 1, 1], [], []>} : vector<8x32xf32>, vector<32x128xf32>, vector<8x128xf32> -> vector<8x128xf32>
    %cst_419 = arith.constant dense<0.000000e+00> : vector<8x128xf32>
    %962 = tpu.matmul %899, %960, %cst_419 {dimension_numbers = #tpu.dot_dimension_numbers<[1], [0], [0], [1], [0, 0, 1, 1], [], []>} : vector<8x32xf32>, vector<32x128xf32>, vector<8x128xf32> -> vector<8x128xf32>
    %963 = arith.addf %961, %962 : vector<8x128xf32>
    %964 = arith.addf %963, %15 : vector<8x128xf32>
    %965 = arith.negf %964 : vector<8x128xf32>
    %966 = math.exp %965 : vector<8x128xf32>
    %cst_420 = arith.constant 1.000000e+00 : f32
    %967 = vector.broadcast %cst_420 : f32 to vector<8x128xf32>
    %968 = arith.addf %967, %966 : vector<8x128xf32>
    %969 = arith.divf %967, %968 : vector<8x128xf32>
    %970 = vector.extract_strided_slice %969 {offsets = [0, 0], sizes = [8, 32], strides = [1, 1]} : vector<8x128xf32> to vector<8x32xf32>
    %971 = vector.extract_strided_slice %969 {offsets = [0, 32], sizes = [8, 32], strides = [1, 1]} : vector<8x128xf32> to vector<8x32xf32>
    %972 = vector.extract_strided_slice %969 {offsets = [0, 64], sizes = [8, 32], strides = [1, 1]} : vector<8x128xf32> to vector<8x32xf32>
    %cst_421 = arith.constant 2.000000e+00 : f32
    %973 = vector.broadcast %cst_421 : f32 to vector<8x32xf32>
    %974 = arith.mulf %973, %972 : vector<8x32xf32>
    %cst_422 = arith.constant 1.000000e+00 : f32
    %975 = vector.broadcast %cst_422 : f32 to vector<8x32xf32>
    %976 = arith.subf %974, %975 : vector<8x32xf32>
    %977 = vector.extract_strided_slice %969 {offsets = [0, 96], sizes = [8, 32], strides = [1, 1]} : vector<8x128xf32> to vector<8x32xf32>
    %978 = arith.mulf %971, %897 : vector<8x32xf32>
    %979 = arith.mulf %970, %976 : vector<8x32xf32>
    %980 = arith.addf %978, %979 : vector<8x32xf32>
    %981 = math.tanh %980 : vector<8x32xf32>
    %982 = arith.mulf %977, %981 : vector<8x32xf32>
    %c3_423 = arith.constant 3 : index
    %c0_424 = arith.constant 0 : index
    %c0_425 = arith.constant 0 : index
    %983 = vector.load %arg4[%c3_423, %c0_424, %c0_425] : memref<4x32x128xf32, #tpu.memory_space<vmem>>, vector<1x32x128xf32>
    %984 = vector.shape_cast %983 : vector<1x32x128xf32> to vector<32x128xf32>
    %c3_426 = arith.constant 3 : index
    %c0_427 = arith.constant 0 : index
    %c0_428 = arith.constant 0 : index
    %985 = vector.load %arg5[%c3_426, %c0_427, %c0_428] : memref<4x32x128xf32, #tpu.memory_space<vmem>>, vector<1x32x128xf32>
    %986 = vector.shape_cast %985 : vector<1x32x128xf32> to vector<32x128xf32>
    %cst_429 = arith.constant dense<0.000000e+00> : vector<8x128xf32>
    %987 = tpu.matmul %899, %984, %cst_429 {dimension_numbers = #tpu.dot_dimension_numbers<[1], [0], [0], [1], [0, 0, 1, 1], [], []>} : vector<8x32xf32>, vector<32x128xf32>, vector<8x128xf32> -> vector<8x128xf32>
    %cst_430 = arith.constant dense<0.000000e+00> : vector<8x128xf32>
    %988 = tpu.matmul %925, %986, %cst_430 {dimension_numbers = #tpu.dot_dimension_numbers<[1], [0], [0], [1], [0, 0, 1, 1], [], []>} : vector<8x32xf32>, vector<32x128xf32>, vector<8x128xf32> -> vector<8x128xf32>
    %989 = arith.addf %987, %988 : vector<8x128xf32>
    %990 = arith.addf %989, %19 : vector<8x128xf32>
    %991 = arith.negf %990 : vector<8x128xf32>
    %992 = math.exp %991 : vector<8x128xf32>
    %cst_431 = arith.constant 1.000000e+00 : f32
    %993 = vector.broadcast %cst_431 : f32 to vector<8x128xf32>
    %994 = arith.addf %993, %992 : vector<8x128xf32>
    %995 = arith.divf %993, %994 : vector<8x128xf32>
    %996 = vector.extract_strided_slice %995 {offsets = [0, 0], sizes = [8, 32], strides = [1, 1]} : vector<8x128xf32> to vector<8x32xf32>
    %997 = vector.extract_strided_slice %995 {offsets = [0, 32], sizes = [8, 32], strides = [1, 1]} : vector<8x128xf32> to vector<8x32xf32>
    %998 = vector.extract_strided_slice %995 {offsets = [0, 64], sizes = [8, 32], strides = [1, 1]} : vector<8x128xf32> to vector<8x32xf32>
    %cst_432 = arith.constant 2.000000e+00 : f32
    %999 = vector.broadcast %cst_432 : f32 to vector<8x32xf32>
    %1000 = arith.mulf %999, %998 : vector<8x32xf32>
    %cst_433 = arith.constant 1.000000e+00 : f32
    %1001 = vector.broadcast %cst_433 : f32 to vector<8x32xf32>
    %1002 = arith.subf %1000, %1001 : vector<8x32xf32>
    %1003 = vector.extract_strided_slice %995 {offsets = [0, 96], sizes = [8, 32], strides = [1, 1]} : vector<8x128xf32> to vector<8x32xf32>
    %1004 = arith.mulf %997, %923 : vector<8x32xf32>
    %1005 = arith.mulf %996, %1002 : vector<8x32xf32>
    %1006 = arith.addf %1004, %1005 : vector<8x32xf32>
    %1007 = math.tanh %1006 : vector<8x32xf32>
    %1008 = arith.mulf %1003, %1007 : vector<8x32xf32>
    %1009 = arith.mulf %1008, %21 : vector<8x32xf32>
    %cst_434 = arith.constant dense<0.000000e+00> : vector<8xf32>
    %1010 = vector.multi_reduction <add>, %1009, %cst_434 [1] : vector<8x32xf32> to vector<8xf32>
    %1011 = vector.shape_cast %1010 : vector<8xf32> to vector<8x1xf32>
    %cst_435 = arith.constant dense<0.000000e+00> : vector<1xf32>
    %1012 = vector.multi_reduction <add>, %1011, %cst_435 [0] : vector<8x1xf32> to vector<1xf32>
    %1013 = vector.shape_cast %1012 : vector<1xf32> to vector<1x1xf32>
    %c2_436 = arith.constant 2 : index
    %c0_437 = arith.constant 0 : index
    %c0_438 = arith.constant 0 : index
    %1014 = vector.load %arg4[%c2_436, %c0_437, %c0_438] : memref<4x32x128xf32, #tpu.memory_space<vmem>>, vector<1x32x128xf32>
    %1015 = vector.shape_cast %1014 : vector<1x32x128xf32> to vector<32x128xf32>
    %c2_439 = arith.constant 2 : index
    %c0_440 = arith.constant 0 : index
    %c0_441 = arith.constant 0 : index
    %1016 = vector.load %arg5[%c2_439, %c0_440, %c0_441] : memref<4x32x128xf32, #tpu.memory_space<vmem>>, vector<1x32x128xf32>
    %1017 = vector.shape_cast %1016 : vector<1x32x128xf32> to vector<32x128xf32>
    %cst_442 = arith.constant dense<0.000000e+00> : vector<8x128xf32>
    %1018 = tpu.matmul %956, %1015, %cst_442 {dimension_numbers = #tpu.dot_dimension_numbers<[1], [0], [0], [1], [0, 0, 1, 1], [], []>} : vector<8x32xf32>, vector<32x128xf32>, vector<8x128xf32> -> vector<8x128xf32>
    %cst_443 = arith.constant dense<0.000000e+00> : vector<8x128xf32>
    %1019 = tpu.matmul %982, %1017, %cst_443 {dimension_numbers = #tpu.dot_dimension_numbers<[1], [0], [0], [1], [0, 0, 1, 1], [], []>} : vector<8x32xf32>, vector<32x128xf32>, vector<8x128xf32> -> vector<8x128xf32>
    %1020 = arith.addf %1018, %1019 : vector<8x128xf32>
    %1021 = arith.addf %1020, %15 : vector<8x128xf32>
    %1022 = arith.negf %1021 : vector<8x128xf32>
    %1023 = math.exp %1022 : vector<8x128xf32>
    %cst_444 = arith.constant 1.000000e+00 : f32
    %1024 = vector.broadcast %cst_444 : f32 to vector<8x128xf32>
    %1025 = arith.addf %1024, %1023 : vector<8x128xf32>
    %1026 = arith.divf %1024, %1025 : vector<8x128xf32>
    %1027 = vector.extract_strided_slice %1026 {offsets = [0, 0], sizes = [8, 32], strides = [1, 1]} : vector<8x128xf32> to vector<8x32xf32>
    %1028 = vector.extract_strided_slice %1026 {offsets = [0, 32], sizes = [8, 32], strides = [1, 1]} : vector<8x128xf32> to vector<8x32xf32>
    %1029 = vector.extract_strided_slice %1026 {offsets = [0, 64], sizes = [8, 32], strides = [1, 1]} : vector<8x128xf32> to vector<8x32xf32>
    %cst_445 = arith.constant 2.000000e+00 : f32
    %1030 = vector.broadcast %cst_445 : f32 to vector<8x32xf32>
    %1031 = arith.mulf %1030, %1029 : vector<8x32xf32>
    %cst_446 = arith.constant 1.000000e+00 : f32
    %1032 = vector.broadcast %cst_446 : f32 to vector<8x32xf32>
    %1033 = arith.subf %1031, %1032 : vector<8x32xf32>
    %1034 = vector.extract_strided_slice %1026 {offsets = [0, 96], sizes = [8, 32], strides = [1, 1]} : vector<8x128xf32> to vector<8x32xf32>
    %1035 = arith.mulf %1028, %980 : vector<8x32xf32>
    %1036 = arith.mulf %1027, %1033 : vector<8x32xf32>
    %1037 = arith.addf %1035, %1036 : vector<8x32xf32>
    %1038 = math.tanh %1037 : vector<8x32xf32>
    %1039 = arith.mulf %1034, %1038 : vector<8x32xf32>
    %c3_447 = arith.constant 3 : index
    %c0_448 = arith.constant 0 : index
    %c0_449 = arith.constant 0 : index
    %1040 = vector.load %arg4[%c3_447, %c0_448, %c0_449] : memref<4x32x128xf32, #tpu.memory_space<vmem>>, vector<1x32x128xf32>
    %1041 = vector.shape_cast %1040 : vector<1x32x128xf32> to vector<32x128xf32>
    %c3_450 = arith.constant 3 : index
    %c0_451 = arith.constant 0 : index
    %c0_452 = arith.constant 0 : index
    %1042 = vector.load %arg5[%c3_450, %c0_451, %c0_452] : memref<4x32x128xf32, #tpu.memory_space<vmem>>, vector<1x32x128xf32>
    %1043 = vector.shape_cast %1042 : vector<1x32x128xf32> to vector<32x128xf32>
    %cst_453 = arith.constant dense<0.000000e+00> : vector<8x128xf32>
    %1044 = tpu.matmul %982, %1041, %cst_453 {dimension_numbers = #tpu.dot_dimension_numbers<[1], [0], [0], [1], [0, 0, 1, 1], [], []>} : vector<8x32xf32>, vector<32x128xf32>, vector<8x128xf32> -> vector<8x128xf32>
    %cst_454 = arith.constant dense<0.000000e+00> : vector<8x128xf32>
    %1045 = tpu.matmul %1008, %1043, %cst_454 {dimension_numbers = #tpu.dot_dimension_numbers<[1], [0], [0], [1], [0, 0, 1, 1], [], []>} : vector<8x32xf32>, vector<32x128xf32>, vector<8x128xf32> -> vector<8x128xf32>
    %1046 = arith.addf %1044, %1045 : vector<8x128xf32>
    %1047 = arith.addf %1046, %19 : vector<8x128xf32>
    %1048 = arith.negf %1047 : vector<8x128xf32>
    %1049 = math.exp %1048 : vector<8x128xf32>
    %cst_455 = arith.constant 1.000000e+00 : f32
    %1050 = vector.broadcast %cst_455 : f32 to vector<8x128xf32>
    %1051 = arith.addf %1050, %1049 : vector<8x128xf32>
    %1052 = arith.divf %1050, %1051 : vector<8x128xf32>
    %1053 = vector.extract_strided_slice %1052 {offsets = [0, 0], sizes = [8, 32], strides = [1, 1]} : vector<8x128xf32> to vector<8x32xf32>
    %1054 = vector.extract_strided_slice %1052 {offsets = [0, 32], sizes = [8, 32], strides = [1, 1]} : vector<8x128xf32> to vector<8x32xf32>
    %1055 = vector.extract_strided_slice %1052 {offsets = [0, 64], sizes = [8, 32], strides = [1, 1]} : vector<8x128xf32> to vector<8x32xf32>
    %cst_456 = arith.constant 2.000000e+00 : f32
    %1056 = vector.broadcast %cst_456 : f32 to vector<8x32xf32>
    %1057 = arith.mulf %1056, %1055 : vector<8x32xf32>
    %cst_457 = arith.constant 1.000000e+00 : f32
    %1058 = vector.broadcast %cst_457 : f32 to vector<8x32xf32>
    %1059 = arith.subf %1057, %1058 : vector<8x32xf32>
    %1060 = vector.extract_strided_slice %1052 {offsets = [0, 96], sizes = [8, 32], strides = [1, 1]} : vector<8x128xf32> to vector<8x32xf32>
    %1061 = arith.mulf %1054, %1006 : vector<8x32xf32>
    %1062 = arith.mulf %1053, %1059 : vector<8x32xf32>
    %1063 = arith.addf %1061, %1062 : vector<8x32xf32>
    %1064 = math.tanh %1063 : vector<8x32xf32>
    %1065 = arith.mulf %1060, %1064 : vector<8x32xf32>
    %1066 = arith.mulf %1065, %21 : vector<8x32xf32>
    %cst_458 = arith.constant dense<0.000000e+00> : vector<8xf32>
    %1067 = vector.multi_reduction <add>, %1066, %cst_458 [1] : vector<8x32xf32> to vector<8xf32>
    %1068 = vector.shape_cast %1067 : vector<8xf32> to vector<8x1xf32>
    %cst_459 = arith.constant dense<0.000000e+00> : vector<1xf32>
    %1069 = vector.multi_reduction <add>, %1068, %cst_459 [0] : vector<8x1xf32> to vector<1xf32>
    %1070 = vector.shape_cast %1069 : vector<1xf32> to vector<1x1xf32>
    %c3_460 = arith.constant 3 : index
    %c0_461 = arith.constant 0 : index
    %c0_462 = arith.constant 0 : index
    %1071 = vector.load %arg4[%c3_460, %c0_461, %c0_462] : memref<4x32x128xf32, #tpu.memory_space<vmem>>, vector<1x32x128xf32>
    %1072 = vector.shape_cast %1071 : vector<1x32x128xf32> to vector<32x128xf32>
    %c3_463 = arith.constant 3 : index
    %c0_464 = arith.constant 0 : index
    %c0_465 = arith.constant 0 : index
    %1073 = vector.load %arg5[%c3_463, %c0_464, %c0_465] : memref<4x32x128xf32, #tpu.memory_space<vmem>>, vector<1x32x128xf32>
    %1074 = vector.shape_cast %1073 : vector<1x32x128xf32> to vector<32x128xf32>
    %cst_466 = arith.constant dense<0.000000e+00> : vector<8x128xf32>
    %1075 = tpu.matmul %1039, %1072, %cst_466 {dimension_numbers = #tpu.dot_dimension_numbers<[1], [0], [0], [1], [0, 0, 1, 1], [], []>} : vector<8x32xf32>, vector<32x128xf32>, vector<8x128xf32> -> vector<8x128xf32>
    %cst_467 = arith.constant dense<0.000000e+00> : vector<8x128xf32>
    %1076 = tpu.matmul %1065, %1074, %cst_467 {dimension_numbers = #tpu.dot_dimension_numbers<[1], [0], [0], [1], [0, 0, 1, 1], [], []>} : vector<8x32xf32>, vector<32x128xf32>, vector<8x128xf32> -> vector<8x128xf32>
    %1077 = arith.addf %1075, %1076 : vector<8x128xf32>
    %1078 = arith.addf %1077, %19 : vector<8x128xf32>
    %1079 = arith.negf %1078 : vector<8x128xf32>
    %1080 = math.exp %1079 : vector<8x128xf32>
    %cst_468 = arith.constant 1.000000e+00 : f32
    %1081 = vector.broadcast %cst_468 : f32 to vector<8x128xf32>
    %1082 = arith.addf %1081, %1080 : vector<8x128xf32>
    %1083 = arith.divf %1081, %1082 : vector<8x128xf32>
    %1084 = vector.extract_strided_slice %1083 {offsets = [0, 0], sizes = [8, 32], strides = [1, 1]} : vector<8x128xf32> to vector<8x32xf32>
    %1085 = vector.extract_strided_slice %1083 {offsets = [0, 32], sizes = [8, 32], strides = [1, 1]} : vector<8x128xf32> to vector<8x32xf32>
    %1086 = vector.extract_strided_slice %1083 {offsets = [0, 64], sizes = [8, 32], strides = [1, 1]} : vector<8x128xf32> to vector<8x32xf32>
    %cst_469 = arith.constant 2.000000e+00 : f32
    %1087 = vector.broadcast %cst_469 : f32 to vector<8x32xf32>
    %1088 = arith.mulf %1087, %1086 : vector<8x32xf32>
    %cst_470 = arith.constant 1.000000e+00 : f32
    %1089 = vector.broadcast %cst_470 : f32 to vector<8x32xf32>
    %1090 = arith.subf %1088, %1089 : vector<8x32xf32>
    %1091 = vector.extract_strided_slice %1083 {offsets = [0, 96], sizes = [8, 32], strides = [1, 1]} : vector<8x128xf32> to vector<8x32xf32>
    %1092 = arith.mulf %1085, %1063 : vector<8x32xf32>
    %1093 = arith.mulf %1084, %1090 : vector<8x32xf32>
    %1094 = arith.addf %1092, %1093 : vector<8x32xf32>
    %1095 = math.tanh %1094 : vector<8x32xf32>
    %1096 = arith.mulf %1091, %1095 : vector<8x32xf32>
    %1097 = arith.mulf %1096, %21 : vector<8x32xf32>
    %cst_471 = arith.constant dense<0.000000e+00> : vector<8xf32>
    %1098 = vector.multi_reduction <add>, %1097, %cst_471 [1] : vector<8x32xf32> to vector<8xf32>
    %1099 = vector.shape_cast %1098 : vector<8xf32> to vector<8x1xf32>
    %cst_472 = arith.constant dense<0.000000e+00> : vector<1xf32>
    %1100 = vector.multi_reduction <add>, %1099, %cst_472 [0] : vector<8x1xf32> to vector<1xf32>
    %1101 = vector.shape_cast %1100 : vector<1xf32> to vector<1x1xf32>
    %1102 = tpu.concatenate %416, %551, %686, %821, %930, %1013, %1070, %1101 in 0 : vector<1x1xf32>, vector<1x1xf32>, vector<1x1xf32>, vector<1x1xf32>, vector<1x1xf32>, vector<1x1xf32>, vector<1x1xf32>, vector<1x1xf32> -> vector<8x1xf32>
    %c0_473 = arith.constant 0 : index
    %c0_474 = arith.constant 0 : index
    %1103 = vector.load %arg9[%c0_473, %c0_474] : memref<1x1xf32, #tpu.memory_space<vmem>>, vector<1x1xf32>
    %1104 = vector.broadcast %1103 : vector<1x1xf32> to vector<8x1xf32>
    %1105 = arith.addf %1102, %1104 : vector<8x1xf32>
    %c0_475 = arith.constant 0 : index
    %c0_476 = arith.constant 0 : index
    %1106 = vector.load %arg10[%c0_475, %c0_476] : memref<8x1xf32, #tpu.memory_space<vmem>>, vector<8x1xf32>
    tpu.vector_store %arg10[%c0_475, %c0_476], %1105 {strides = array<i32>} : memref<8x1xf32, #tpu.memory_space<vmem>>, vector<8x1xf32>,
    return
  }
  func.func @transform_0(%arg0: i32) -> (i32, i32, i32) {
    %c0_i32 = arith.constant 0 : i32
    %c0_i32_0 = arith.constant 0 : i32
    %c0_i32_1 = arith.constant 0 : i32
    %c0_i32_2 = arith.constant 0 : i32
    return %c0_i32, %c0_i32_0, %c0_i32_1 : i32, i32, i32
  }
  func.func @transform_1(%arg0: i32) -> (i32, i32) {
    %c0_i32 = arith.constant 0 : i32
    %c0_i32_0 = arith.constant 0 : i32
    %c0_i32_1 = arith.constant 0 : i32
    return %c0_i32, %c0_i32_0 : i32, i32
  }
  func.func @transform_2(%arg0: i32) -> (i32, i32) {
    %c0_i32 = arith.constant 0 : i32
    %c0_i32_0 = arith.constant 0 : i32
    %c0_i32_1 = arith.constant 0 : i32
    return %c0_i32, %c0_i32_0 : i32, i32
  }
  func.func @transform_3(%arg0: i32) -> (i32, i32, i32) {
    %c0_i32 = arith.constant 0 : i32
    %c0_i32_0 = arith.constant 0 : i32
    %c0_i32_1 = arith.constant 0 : i32
    %c0_i32_2 = arith.constant 0 : i32
    return %c0_i32, %c0_i32_0, %c0_i32_1 : i32, i32, i32
  }
  func.func @transform_4(%arg0: i32) -> (i32, i32, i32) {
    %c0_i32 = arith.constant 0 : i32
    %c0_i32_0 = arith.constant 0 : i32
    %c0_i32_1 = arith.constant 0 : i32
    %c0_i32_2 = arith.constant 0 : i32
    return %c0_i32, %c0_i32_0, %c0_i32_1 : i32, i32, i32
  }
  func.func @transform_5(%arg0: i32) -> (i32, i32) {
    %c0_i32 = arith.constant 0 : i32
    %c0_i32_0 = arith.constant 0 : i32
    %c0_i32_1 = arith.constant 0 : i32
    return %c0_i32, %c0_i32_0 : i32, i32
  }
  func.func @transform_6(%arg0: i32) -> (i32, i32, i32) {
    %c0_i32 = arith.constant 0 : i32
    %c0_i32_0 = arith.constant 0 : i32
    %c0_i32_1 = arith.constant 0 : i32
    %c0_i32_2 = arith.constant 0 : i32
    return %c0_i32, %c0_i32_0, %c0_i32_1 : i32, i32, i32
  }
  func.func @transform_7(%arg0: i32) -> (i32, i32, i32) {
    %c0_i32 = arith.constant 0 : i32
    %c0_i32_0 = arith.constant 0 : i32
    %c0_i32_1 = arith.constant 0 : i32
    %c0_i32_2 = arith.constant 0 : i32
    return %c0_i32, %c0_i32_0, %c0_i32_1 : i32, i32, i32
  }
  func.func @transform_8(%arg0: i32) -> (i32, i32) {
    %c0_i32 = arith.constant 0 : i32
    %c0_i32_0 = arith.constant 0 : i32
    %c0_i32_1 = arith.constant 0 : i32
    return %c0_i32, %c0_i32_0 : i32, i32
  }
  func.func @transform_9(%arg0: i32) -> (i32, i32) {
    %c0_i32 = arith.constant 0 : i32
    %c0_i32_0 = arith.constant 0 : i32
    %c0_i32_1 = arith.constant 0 : i32
    return %c0_i32, %c0_i32_0 : i32, i32
  }
}

</mosaic_0001>

<bundles_post_ra>
// kernel: tpu_custom_call.1
= control target key start
LH: loop header
LB: loop body
LE: loop exit
PB: predicated region body
PF: predicated region fallthrough
CT: control target
= control target key end

     0   :  { %s10649_s0 = inlined_call_operand.hbm [shape: f32[8,8,8], index: 0, kind: input, shape index: {}]   ;;  %s10650_s1 = inlined_call_operand.hbm [shape: f32[8,128], index: 1, kind: input, shape index: {}]   ;;  %s10651_s2 = inlined_call_operand.hbm [shape: f32[32,128], index: 2, kind: input, shape index: {}]   ;;  %s10652_s3 = inlined_call_operand.hbm [shape: f32[4,32,128], index: 3, kind: input, shape index: {}]   ;;  %s10653_s4 = inlined_call_operand.hbm [shape: f32[4,32,128], index: 4, kind: input, shape index: {}]   ;;  %s10654_s5 = inlined_call_operand.vmem [shape: f32[1,128], index: 5, kind: input, shape index: {}]   ;;  %s10655_s6 = inlined_call_operand.vmem [shape: f32[4,1,128], index: 6, kind: input, shape index: {}]   ;;  %s10656_s7 = inlined_call_operand.vmem [shape: f32[1,8,32], index: 7, kind: input, shape index: {}]   ;;  %s10657_s8 = inlined_call_operand.<no memory space> [shape: f32[1,1], index: 8, kind: input, shape index: {}]   ;;  %s10658_s9 = inlined_call_operand.vmem [shape: f32[8,1], index: 9, kind: output, shape index: {}]  }
   0x1   :  { %v14_v0 = vstv %s10657_s8 }
   0x2   :  { %15 = vst [vmem:[#allocation2] sm:$0x1] %v14_v0 }
   0x3   :  { %16 = vsyncpa [#allocation4], 0 }
   0x4   :  { %17 = vsyncpa [#allocation6], 0 }
   0x5   :  { %18 = vsyncpa [#allocation9], 0  ;;  %s9017_s11 = smov [#allocation5]  }
   0x6   :  { %s37_s12 = sshll.u32 %s9017_s11, 4  ;;  %s38_s12 = int_to_ptr.vmem [resolvable:$true] %s37_s12 }
   0x7   :  { %s8919_s13 = scalar_lea.vmem %s38_s12, 128  ;;  %p8924_p1 = scmp.lt.s32.totalorder %s38_s12, %s38_s12 }
   0x8   :  { %p8920_p0 = scmp.ne.s32.totalorder %s38_s12, %s8919_s13  ;;  %p8925_p2 = scmp.lt.s32.totalorder %s8919_s13, %s8919_s13 }
   0xa   :  { %p8926_p3 = por %p8925_p2, %p8924_p1 }
   0xc   :  { %p8927_p4 = pnand %p8926_p3, %p8920_p0 }
   0xe   :  { %8930 = shalt.err (!%p8927_p4)
}
   0xf   :  { %40 = dma.hbm_to_vmem [thread:$0]  %s10650_s1, 128, %s38_s12, [#allocation6]  }
  0x10   :  { %s9018_s16 = smov [#allocation8]   ;;  %s9019_s17 = smov [#allocation3]  }
  0x11   :  { %s58_s8 = sshll.u32 %s9018_s16, 4  ;;  %s24_s18 = sshll.u32 %s9019_s17, 4  ;;  %s59_s8 = int_to_ptr.vmem [resolvable:$true] %s58_s8  ;;  %s25_s18 = int_to_ptr.vmem [resolvable:$true] %s24_s18 }
  0x12   :  { %s8939_s19 = scalar_lea.vmem %s59_s8, 2048  ;;  %p8944_p6 = scmp.lt.s32.totalorder %s59_s8, %s59_s8 }
  0x13   :  { %p8940_p5 = scmp.ne.s32.totalorder %s59_s8, %s8939_s19  ;;  %p8945_p7 = scmp.lt.s32.totalorder %s8939_s19, %s8939_s19 }
  0x15   :  { %p8946_p8 = por %p8945_p7, %p8944_p6 }
  0x17   :  { %p8947_p9 = pnand %p8946_p8, %p8940_p5 }
  0x19   :  { %8950 = shalt.err (!%p8947_p9)
}
  0x1a   :  { %s9020_s20 = smov 128   ;;  %s9021_s21 = smov 8  }
  0x1b   :  { %64 = dma.hbm_to_vmem [thread:$0]  %s10652_s3, 2048, %s59_s8, [#allocation9], %s9020_s20, %s9020_s20, %s9021_s21  }
  0x1c   :  { %s8959_s1 = scalar_lea.vmem %s25_s18, 1024  ;;  %p8964_p11 = scmp.lt.s32.totalorder %s25_s18, %s25_s18 }
  0x1d   :  { %p8960_p10 = scmp.ne.s32.totalorder %s25_s18, %s8959_s1  ;;  %p8965_p12 = scmp.lt.s32.totalorder %s8959_s1, %s8959_s1 }
  0x1f   :  { %p8966_p13 = por %p8965_p12, %p8964_p11 }
  0x21   :  { %p8967_p0 = pnand %p8966_p13, %p8960_p10 }
  0x23   :  { %8970 = shalt.err (!%p8967_p0)
}
  0x24   :  { %30 = dma.hbm_to_vmem [thread:$0]  %s10649_s0, 1024, %s25_s18, [#allocation4], %s9020_s20, %s9020_s20, %s9021_s21  }
  0x25   :  { %s9022_s26 = smov [#allocation7]   ;;  %s9023_s28 = smov [#allocation10]  }
  0x26   :  { %s46_s27 = sshll.u32 %s9022_s26, 4  ;;  %s70_s3 = sshll.u32 %s9023_s28, 4  ;;  %s47_s27 = int_to_ptr.vmem [resolvable:$true] %s46_s27  ;;  %s71_s3 = int_to_ptr.vmem [resolvable:$true] %s70_s3 }
  0x27   :  { %s8979_s29 = scalar_lea.vmem %s47_s27, 512  ;;  %p8984_p2 = scmp.lt.s32.totalorder %s47_s27, %s47_s27 }
  0x28   :  { %p8980_p1 = scmp.ne.s32.totalorder %s47_s27, %s8979_s29  ;;  %p8985_p3 = scmp.lt.s32.totalorder %s8979_s29, %s8979_s29 }
  0x2a   :  { %p8986_p4 = por %p8985_p3, %p8984_p2 }
  0x2c   :  { %p8987_p5 = pnand %p8986_p4, %p8980_p1 }
  0x2e   :  { %8990 = shalt.err (!%p8987_p5)
}
  0x2f   :  { %52 = dma.hbm_to_vmem [thread:$0]  %s10651_s2, 512, %s47_s27, [#allocation6], %s9020_s20, %s9020_s20, %s9021_s21  }
  0x30   :  { %s8999_s0 = scalar_lea.vmem %s71_s3, 2048  ;;  %p9004_p7 = scmp.lt.s32.totalorder %s71_s3, %s71_s3 }
  0x31   :  { %p9000_p6 = scmp.ne.s32.totalorder %s71_s3, %s8999_s0  ;;  %p9005_p8 = scmp.lt.s32.totalorder %s8999_s0, %s8999_s0 }
  0x33   :  { %p9006_p9 = por %p9005_p8, %p9004_p7 }
  0x35   :  { %p9007_p10 = pnand %p9006_p9, %p9000_p6 }
  0x37   :  { %9010 = shalt.err (!%p9007_p10)
}
  0x38   :  { %76 = dma.hbm_to_vmem [thread:$0]  %s10653_s4, 2048, %s71_s3, [#allocation9], %s9020_s20, %s9020_s20, %s9021_s21  }
  0x39   :  { %9011 = dma.done.wait [#allocation4], 1024  }
  0x3a   :  { %9012 = vsyncadd [#allocation4], 4294966272 }
  0x3b   :  { %9013 = dma.done.wait [#allocation6], 640  }
  0x3c   :  { %9014 = vsyncadd [#allocation6], 4294966656 }
  0x3d   :  { %9015 = dma.done.wait [#allocation9], 4096  }
  0x3e   :  { %9016 = vsyncadd [#allocation9], 4294963200  ;;  %v9024_v1 = vmov 0.0   ;;  %vm9025_vm0 = vmmov 0   ;;  %v9115_v2 = vld [vmem:[#allocation7 + $0x18] sm:$0xff]  ;;  %v9117_v3 = vld [vmem:[#allocation7 + $0x10] sm:$0xff] }
  0x3f   :  { %7748 = vmatprep.subr.mxu0 %v9024_v1  ;;  %7759 = vmatprep.subr.mxu1 %v9024_v1  ;;  %vm219_vm1 = vcmask 64512   ;;  %v9120_v4 = vld [vmem:[#allocation5] sm:$0xff]  ;;  %v9123_v6 = vld [vmem:[#allocation7 + $0x8] sm:$0xff]  ;;  %v9129_v7 = vld [vmem:[#allocation7] sm:$0xff]  ;;  %s9026_s13 = smov 64   ;;  %s9027_s14 = smov 32  }
  0x40   :  { %7761 = vmatprep.mubr.msk.f32.mxu1 %vm9025_vm0, %v9024_v1  ;;  %7756 = vmatprep.mubr.msk.f32.mxu0 %vm9025_vm0, %v9024_v1  ;;  %v139_v5 = vld [vmem:[#allocation3] sm:$0xff]  ;;  %v9154_v10 = vld [vmem:[%s10654_s5] ss:$0 sm:$0xff]  ;;  %v320_v26 = vld [vmem:[#allocation3 + $0x8] sm:$0xff]  ;;  %vm145_vm2 = vcmask 261120   ;;  %s9028_s18 = smov 96  }
  0x41   :  { %7749 = vmatpush3.msra.mxu0 %v9115_v2  ;;  %7760 = vmatpush3.msra.mxu1 %v9120_v4  ;;  %v9162_v27 = vld [vmem:[#allocation8 + $0x18] sm:$0xff]  ;;  %v9165_v28 = vld [vmem:[#allocation8 + $0x10] sm:$0xff]  ;;  %v9171_v29 = vld [vmem:[#allocation8 + $0x8] sm:$0xff]  ;;  %vm7177_vm3 = vcmask 1040384   ;;  %vm7179_vm4 = vcmask 1041408   ;;  %vm7181_vm5 = vcmask 1042432  }
  0x42   :  { %7750 = vmatprep.subr.mxu0 %v9024_v1  ;;  %7762 = vmatmul.mubr.msk.f32.vlgmr.msra.gmra.mxu1 %vm219_vm1, %v139_v5  ;;  %v9175_v30 = vld [vmem:[#allocation8] sm:$0xff]  ;;  %v9183_v36 = vld [vmem:[#allocation10 + $0x18] sm:$0xff]  ;;  %v9187_v38 = vld [vmem:[#allocation10 + $0x10] sm:$0xff]  ;;  %vm7183_vm6 = vcmask 1043456   ;;  %vm7185_vm7 = vcmask 1044480   ;;  %vm7187_vm8 = vcmask 1045504  }
  0x43   :  { %7751 = vmatpush3.msra.mxu0 %v9117_v3  ;;  %7764 = vmatprep.subr.mxu1 %v9024_v1  ;;  %v9193_v39 = vld [vmem:[#allocation10 + $0x8] sm:$0xff]  ;;  %v9200_v40 = vld [vmem:[#allocation10] sm:$0xff]  ;;  %v9222_v48 = vld [vmem:[%s10655_s6] ss:$0 sm:$0xff]  ;;  %vm7189_vm9 = vcmask 1046528   ;;  %vm7199_vm10 = vcmask 7168  }
  0x44   :  { %7752 = vmatprep.subr.mxu0 %v9024_v1  ;;  %7765 = vmatpush3.msra.mxu1 %v9115_v2 }
  0x45   :  { %7753 = vmatpush3.msra.mxu0 %v9123_v6  ;;  %7766 = vmatprep.subr.mxu1 %v9024_v1 }
  0x46   :  { %7754 = vmatprep.subr.mxu0 %v9024_v1  ;;  %7767 = vmatpush3.msra.mxu1 %v9117_v3 }
  0x47   :  { %7755 = vmatpush3.msra.mxu0 %v9129_v7  ;;  %7768 = vmatprep.subr.mxu1 %v9024_v1 }
  0x48   :  { %7757 = vmatmul.mubr.f32.vlgmr.msra.gmra.mxu0 %v9024_v1  ;;  %7775 = vmatprep.subr.mxu0 %v9024_v1 }
  0x49   :  { %7776 = vmatpush3.msra.mxu0 %v9120_v4  ;;  %7777 = vmatprep.mubr.msk.f32.mxu0 %vm9025_vm0, %v9024_v1 }
  0x4a   :  { %7791 = vmatprep.subr.mxu0 %v9024_v1  ;;  %7769 = vmatpush3.msra.mxu1 %v9123_v6 }
  0x4b   :  { %7772 = vmatprep.mubr.msk.f32.mxu1 %vm9025_vm0, %v9024_v1  ;;  %7770 = vmatprep.subr.mxu1 %v9024_v1 }
  0x4c   :  { %7771 = vmatpush3.msra.mxu1 %v9129_v7  ;;  %7778 = vmatmul.mubr.msk.f32.vlgmr.msra.gmra.mxu0 %vm219_vm1, %v320_v26 }
  0x4d   :  { %7780 = vmatprep.subr.mxu1 %v9024_v1  ;;  %7792 = vmatpush3.msra.mxu0 %v9162_v27 }
  0x4e   :  { %7799 = vmatprep.mubr.msk.f32.mxu0 %vm9025_vm0, %v9024_v1  ;;  %7793 = vmatprep.subr.mxu0 %v9024_v1 }
  0x4f   :  { %7794 = vmatpush3.msra.mxu0 %v9165_v28 }
  0x50   :  { %7795 = vmatprep.subr.mxu0 %v9024_v1 }
  0x51   :  { %7796 = vmatpush3.msra.mxu0 %v9171_v29 }
  0x52   :  { %7797 = vmatprep.subr.mxu0 %v9024_v1 }
  0x53   :  { %7798 = vmatpush3.msra.mxu0 %v9175_v30 }
  0x54   :  { %7813 = vmatprep.subr.mxu0 %v9024_v1 }
 0x102   :  { %v289_v8 = vpop.f32.mrf.mxu1 }
 0x104   :  { %v7763_v9 = vpop.f32.mrf.mxu1 }
 0x108   :  { %v215_v11 = vpop.f32.mrf.mxu0 }
 0x109   :  { %v290_v12 = vadd.f32 %v289_v8, %v215_v11 }
 0x10a   :  { %v7758_v13 = vpop.f32.mrf.mxu0 }
 0x10b   :  { %v293_v14 = vadd.f32 %v9154_v10, %v290_v12 }
 0x10c   :  { %v465_v34 = vpop.f32.mrf.mxu0 }
 0x10d   :  { %v7217_v15 = vmul.f32 -1.442695, %v293_v14 }
 0x10e   :  { %v7779_v35 = vpop.f32.mrf.mxu0 }
 0x10f   :  { %8592 = vpow2.f32 %v7217_v15  ;;  %v9271_v35 = vld [vmem:[#allocation8 + $0x30] sm:$0xff] }
 0x11c   :  { %v8593_v16 = vpop.eup %8592 }
 0x11d   :  { %v297_v17 = vadd.f32 1.0, %v8593_v16 }
 0x11f   :  { %8594 = vrcp.f32 %v297_v17  ;;  %v670_v17 = vld [vmem:[#allocation3 + $0x10] sm:$0xff] }
 0x12c   :  { %v8595_v18 = vpop.eup %8594 }
 0x12d   :  { %v300_v19 = vmul.f32 2.0, %v8595_v18  ;;  %v302_v23 = vmul.f32 0.0, %v8595_v18 }
 0x12f   :  { %v7218_v20 = vadd.f32 -1.0, %v300_v19 }
 0x131   :  { %304 = vrot.lane.b32.xlu0 %v7218_v20, %s9026_s13 }
 0x1a3   :  { %v305_v21 = vpop.permute.xlu0 %304 }
 0x1a4   :  { %v307_v22 = vmul.f32 %v8595_v18, %v305_v21 }
 0x1a6   :  { %309 = vrot.lane.b32.xlu0 %v307_v22, %s9027_s14 }
 0x218   :  { %v310_v24 = vpop.permute.xlu0 %309 }
 0x219   :  { %v9159_v25 = vadd.f32 %v310_v24, %v302_v23 }
 0x21b   :  { %8596 = vtanh.f32 %v9159_v25 }
 0x228   :  { %v8597_v31 = vpop.eup %8596 }
 0x229   :  { %315 = vrot.lane.b32.xlu1 %v8597_v31, %s9026_s13  ;;  %v9260_v31 = vld [vmem:[#allocation10 + $0x38] sm:$0xff] }
 0x29b   :  { %v316_v32 = vpop.permute.xlu1 %315 }
 0x29c   :  { %v318_v33 = vmul.f32 %v8595_v18, %v316_v32 }
 0x29e   :  { %322 = vrot.lane.b32.xlu1 %v318_v33, %s9027_s14  ;;  %v9263_v33 = vld [vmem:[#allocation8 + $0x38] sm:$0xff] }
 0x310   :  { %v323_v37 = vpop.permute.xlu1 %322 }
 0x311   :  { %7773 = vmatmul.mubr.msk.f32.vlgmr.msra.gmra.mxu1 %vm145_vm2, %v323_v37  ;;  %7800 = vmatmul.mubr.msk.f32.vlgmr.msra.gmra.mxu0 %vm145_vm2, %v323_v37  ;;  %v9275_v37 = vld [vmem:[#allocation10 + $0x28] sm:$0xff] }
 0x312   :  { %7781 = vmatpush3.msra.mxu1 %v9183_v36  ;;  %7788 = vmatprep.mubr.msk.f32.mxu1 %vm9025_vm0, %v9024_v1 }
 0x313   :  { %7782 = vmatprep.subr.mxu1 %v9024_v1  ;;  %7814 = vmatpush3.msra.mxu0 %v9120_v4 }
 0x314   :  { %7783 = vmatpush3.msra.mxu1 %v9187_v38  ;;  %7815 = vmatprep.mubr.msk.f32.mxu0 %vm9025_vm0, %v9024_v1 }
 0x315   :  { %7784 = vmatprep.subr.mxu1 %v9024_v1  ;;  %7818 = vmatprep.subr.mxu0 %v9024_v1 }
 0x316   :  { %7785 = vmatpush3.msra.mxu1 %v9193_v39  ;;  %7816 = vmatmul.mubr.msk.f32.vlgmr.msra.gmra.mxu0 %vm219_vm1, %v670_v17 }
 0x317   :  { %7786 = vmatprep.subr.mxu1 %v9024_v1  ;;  %7819 = vmatpush3.msra.mxu0 %v9183_v36 }
 0x318   :  { %7787 = vmatpush3.msra.mxu1 %v9200_v40  ;;  %7826 = vmatprep.mubr.msk.f32.mxu0 %vm9025_vm0, %v9024_v1 }
 0x319   :  { %7789 = vmatmul.mubr.f32.vlgmr.msra.gmra.mxu1 %v9024_v1  ;;  %7802 = vmatprep.subr.mxu1 %v9024_v1 }
 0x31a   :  { %7803 = vmatpush3.msra.mxu1 %v9115_v2  ;;  %7810 = vmatprep.mubr.msk.f32.mxu1 %vm9025_vm0, %v9024_v1 }
 0x31b   :  { %7804 = vmatprep.subr.mxu1 %v9024_v1  ;;  %7820 = vmatprep.subr.mxu0 %v9024_v1 }
 0x31c   :  { %7805 = vmatpush3.msra.mxu1 %v9117_v3  ;;  %7821 = vmatpush3.msra.mxu0 %v9187_v38 }
 0x31d   :  { %7806 = vmatprep.subr.mxu1 %v9024_v1  ;;  %7822 = vmatprep.subr.mxu0 %v9024_v1 }
 0x31e   :  { %7807 = vmatpush3.msra.mxu1 %v9123_v6  ;;  %7823 = vmatpush3.msra.mxu0 %v9193_v39 }
 0x31f   :  { %7808 = vmatprep.subr.mxu1 %v9024_v1  ;;  %7824 = vmatprep.subr.mxu0 %v9024_v1 }
 0x320   :  { %7809 = vmatpush3.msra.mxu1 %v9129_v7  ;;  %7825 = vmatpush3.msra.mxu0 %v9200_v40 }
 0x321   :  { %7829 = vmatprep.subr.mxu1 %v9024_v1  ;;  %7840 = vmatprep.subr.mxu0 %v9024_v1 }
 0x3d1   :  { %v392_v41 = vpop.f32.mrf.mxu1  ;;  %v639_v42 = vpop.f32.mrf.mxu0 }
 0x3d2   :  { %v466_v43 = vadd.f32 %v465_v34, %v392_v41  ;;  %v9267_v34 = vld [vmem:[#allocation10 + $0x30] sm:$0xff]  ;;  %v9279_v41 = vld [vmem:[#allocation8 + $0x28] sm:$0xff] }
 0x3d3   :  { %v7774_v44 = vpop.f32.mrf.mxu1  ;;  %v7801_v45 = vpop.f32.mrf.mxu0 }
 0x3d4   :  { %v469_v46 = vadd.f32 %v9154_v10, %v466_v43  ;;  %v9289_v43 = vld [vmem:[#allocation8 + $0x20] sm:$0xff] }
 0x3d6   :  { %v7221_v47 = vmul.f32 -1.442695, %v469_v46  ;;  %v815_v24 = vpop.f32.mrf.mxu0 }
 0x3d8   :  { %8598 = vpow2.f32 %v7221_v47 }
 0x3d9   :  { %v569_v49 = vpop.f32.mrf.mxu1 }
 0x3da   :  { %v640_v50 = vadd.f32 %v639_v42, %v569_v49  ;;  %v9283_v42 = vld [vmem:[#allocation10 + $0x20] sm:$0xff] }
 0x3db   :  { %v7790_v51 = vpop.f32.mrf.mxu1 }
 0x3dc   :  { %v643_v52 = vadd.f32 %v9222_v48, %v640_v50 }
 0x3de   :  { %v7224_v53 = vmul.f32 -1.442695, %v643_v52 }
 0x3e0   :  { %8600 = vpow2.f32 %v7224_v53 }
 0x3e5   :  { %v8599_v54 = vpop.eup %8598 }
 0x3e6   :  { %v473_v55 = vadd.f32 1.0, %v8599_v54 }
 0x3e8   :  { %8602 = vrcp.f32 %v473_v55 }
 0x3ed   :  { %v8601_v56 = vpop.eup %8600 }
 0x3ee   :  { %v647_v57 = vadd.f32 1.0, %v8601_v56 }
 0x3f0   :  { %8604 = vrcp.f32 %v647_v57 }
 0x3f5   :  { %v8603_v58 = vpop.eup %8602 }
 0x3f6   :  { %v476_v59 = vmul.f32 2.0, %v8603_v58  ;;  %v478_v11 = vmul.f32 %v8603_v58, %v9159_v25  ;;  %v7817_v25 = vpop.f32.mrf.mxu0 }
 0x3f8   :  { %v7222_v60 = vadd.f32 -1.0, %v476_v59 }
 0x3fa   :  { %480 = vrot.lane.b32.xlu0 %v7222_v60, %s9026_s13 }
 0x3fd   :  { %v8605_v61 = vpop.eup %8604 }
 0x3fe   :  { %v650_v62 = vmul.f32 2.0, %v8605_v61  ;;  %v652_v14 = vmul.f32 0.0, %v8605_v61 }
 0x400   :  { %v7225_v63 = vadd.f32 -1.0, %v650_v62 }
 0x402   :  { %654 = vrot.lane.b32.xlu1 %v7225_v63, %s9026_s13 }
 0x46c   :  { %v481_v0 = vpop.permute.xlu0 %480 }
 0x46d   :  { %v483_v5 = vmul.f32 %v8603_v58, %v481_v0 }
 0x46f   :  { %485 = vrot.lane.b32.xlu0 %v483_v5, %s9027_s14 }
 0x474   :  { %v655_v8 = vpop.permute.xlu1 %654 }
 0x475   :  { %v657_v9 = vmul.f32 %v8605_v61, %v655_v8 }
 0x477   :  { %659 = vrot.lane.b32.xlu1 %v657_v9, %s9027_s14 }
 0x4e1   :  { %v486_v12 = vpop.permute.xlu0 %485 }
 0x4e2   :  { %v9230_v13 = vadd.f32 %v486_v12, %v478_v11 }
 0x4e4   :  { %8606 = vtanh.f32 %v9230_v13 }
 0x4e9   :  { %v660_v15 = vpop.permute.xlu1 %659 }
 0x4ea   :  { %v9233_v16 = vadd.f32 %v660_v15, %v652_v14 }
 0x4ec   :  { %8608 = vtanh.f32 %v9233_v16 }
 0x4f1   :  { %v8607_v18 = vpop.eup %8606 }
 0x4f2   :  { %491 = vrot.lane.b32.xlu0 %v8607_v18, %s9026_s13 }
 0x4f9   :  { %v8609_v19 = vpop.eup %8608 }
 0x4fa   :  { %665 = vrot.lane.b32.xlu1 %v8609_v19, %s9026_s13 }
 0x564   :  { %v492_v20 = vpop.permute.xlu0 %491 }
 0x565   :  { %v494_v21 = vmul.f32 %v8603_v58, %v492_v20  ;;  %v9321_v58 = vld [vmem:[%s10655_s6 + $0x1] ss:$0 sm:$0xff] }
 0x567   :  { %672 = vrot.lane.b32.xlu0 %v494_v21, %s9027_s14 }
 0x56c   :  { %v666_v22 = vpop.permute.xlu1 %665 }
 0x56d   :  { %v668_v23 = vmul.f32 %v8605_v61, %v666_v22 }
 0x56f   :  { %846 = vrot.lane.b32.xlu1 %v668_v23, %s9027_s14 }
 0x5d9   :  { %v673_v26 = vpop.permute.xlu0 %672 }
 0x5da   :  { %7811 = vmatmul.mubr.msk.f32.vlgmr.msra.gmra.mxu1 %vm145_vm2, %v673_v26 }
 0x5db   :  { %7830 = vmatpush3.msra.mxu1 %v9162_v27  ;;  %7837 = vmatprep.mubr.msk.f32.mxu1 %vm9025_vm0, %v9024_v1 }
 0x5dc   :  { %7831 = vmatprep.subr.mxu1 %v9024_v1 }
 0x5dd   :  { %7832 = vmatpush3.msra.mxu1 %v9165_v28 }
 0x5de   :  { %7833 = vmatprep.subr.mxu1 %v9024_v1 }
 0x5df   :  { %7834 = vmatpush3.msra.mxu1 %v9171_v29 }
 0x5e0   :  { %7835 = vmatprep.subr.mxu1 %v9024_v1 }
 0x5e1   :  { %7836 = vmatpush3.msra.mxu1 %v9175_v30  ;;  %v847_v32 = vpop.permute.xlu1 %846 }
 0x5e2   :  { %7827 = vmatmul.mubr.msk.f32.vlgmr.msra.gmra.mxu0 %vm145_vm2, %v847_v32  ;;  %7838 = vmatmul.mubr.msk.f32.vlgmr.msra.gmra.mxu1 %vm145_vm2, %v673_v26 }
 0x5e3   :  { %7841 = vmatpush3.msra.mxu0 %v9260_v31  ;;  %7851 = vmatprep.subr.mxu1 %v9024_v1 }
 0x5e4   :  { %7842 = vmatprep.subr.mxu0 %v9024_v1  ;;  %7852 = vmatpush3.msra.mxu1 %v9263_v33 }
 0x5e5   :  { %7843 = vmatpush3.msra.mxu0 %v9267_v34  ;;  %7853 = vmatprep.subr.mxu1 %v9024_v1 }
 0x5e6   :  { %7844 = vmatprep.subr.mxu0 %v9024_v1  ;;  %7854 = vmatpush3.msra.mxu1 %v9271_v35 }
 0x5e7   :  { %7845 = vmatpush3.msra.mxu0 %v9275_v37  ;;  %7855 = vmatprep.subr.mxu1 %v9024_v1 }
 0x5e8   :  { %7846 = vmatprep.subr.mxu0 %v9024_v1  ;;  %7856 = vmatpush3.msra.mxu1 %v9279_v41 }
 0x5e9   :  { %7847 = vmatpush3.msra.mxu0 %v9283_v42  ;;  %7848 = vmatprep.mubr.msk.f32.mxu0 %vm9025_vm0, %v9024_v1 }
 0x5ea   :  { %7857 = vmatprep.subr.mxu1 %v9024_v1  ;;  %7849 = vmatmul.mubr.f32.vlgmr.msra.gmra.mxu0 %v9024_v1 }
 0x5eb   :  { %7858 = vmatpush3.msra.mxu1 %v9289_v43  ;;  %7859 = vmatprep.mubr.msk.f32.mxu1 %vm9025_vm0, %v9024_v1 }
 0x5ec   :  { %7860 = vmatmul.mubr.msk.f32.vlgmr.msra.gmra.mxu1 %vm145_vm2, %v847_v32  ;;  %7862 = vmatprep.subr.mxu0 %v9024_v1 }
 0x5ed   :  { %7863 = vmatpush3.msra.mxu0 %v9115_v2  ;;  %7873 = vmatprep.subr.mxu1 %v9024_v1 }
 0x5ee   :  { %7864 = vmatprep.subr.mxu0 %v9024_v1  ;;  %7874 = vmatpush3.msra.mxu1 %v9120_v4 }
 0x5ef   :  { %7865 = vmatpush3.msra.mxu0 %v9117_v3  ;;  %7875 = vmatprep.mubr.msk.f32.mxu1 %vm9025_vm0, %v9024_v1 }
 0x5f0   :  { %7866 = vmatprep.subr.mxu0 %v9024_v1  ;;  %7878 = vmatprep.subr.mxu1 %v9024_v1 }
 0x5f1   :  { %7867 = vmatpush3.msra.mxu0 %v9123_v6  ;;  %7870 = vmatprep.mubr.msk.f32.mxu0 %vm9025_vm0, %v9024_v1 }
 0x5f2   :  { %7868 = vmatprep.subr.mxu0 %v9024_v1 }
 0x5f3   :  { %7869 = vmatpush3.msra.mxu0 %v9129_v7 }
 0x5f4   :  { %7889 = vmatprep.subr.mxu0 %v9024_v1 }
 0x69a   :  { %v742_v44 = vpop.f32.mrf.mxu1 }
 0x69b   :  { %v816_v45 = vadd.f32 %v815_v24, %v742_v44 }
 0x69c   :  { %v7812_v46 = vpop.f32.mrf.mxu1 }
 0x69d   :  { %v819_v47 = vadd.f32 %v9154_v10, %v816_v45 }
 0x69f   :  { %v7228_v49 = vmul.f32 -1.442695, %v819_v47 }
 0x6a1   :  { %8610 = vpow2.f32 %v7228_v49 }
 0x6a2   :  { %v916_v50 = vpop.f32.mrf.mxu0  ;;  %v986_v51 = vpop.f32.mrf.mxu1 }
 0x6a3   :  { %v987_v52 = vadd.f32 %v986_v51, %v916_v50 }
 0x6a4   :  { %v7828_v53 = vpop.f32.mrf.mxu0  ;;  %v7839_v54 = vpop.f32.mrf.mxu1 }
 0x6a5   :  { %v990_v55 = vadd.f32 %v9222_v48, %v987_v52 }
 0x6a7   :  { %v7232_v56 = vmul.f32 -1.442695, %v990_v55 }
 0x6a9   :  { %8612 = vpow2.f32 %v7232_v56 }
 0x6aa   :  { %v1092_v57 = vpop.f32.mrf.mxu0 }
 0x6ac   :  { %v1162_v59 = vpop.f32.mrf.mxu1  ;;  %v7850_v60 = vpop.f32.mrf.mxu0 }
 0x6ad   :  { %v1163_v61 = vadd.f32 %v1162_v59, %v1092_v57  ;;  %v1193_v59 = vld [vmem:[#allocation3 + $0x18] sm:$0xff] }
 0x6ae   :  { %v8611_v62 = vpop.eup %8610  ;;  %v7861_v63 = vpop.f32.mrf.mxu1  ;;  %7876 = vmatmul.mubr.msk.f32.vlgmr.msra.gmra.mxu1 %vm219_vm1, %v1193_v59 }
 0x6af   :  { %v823_v0 = vadd.f32 1.0, %v8611_v62  ;;  %v1166_v5 = vadd.f32 %v9321_v58, %v1163_v61  ;;  %7879 = vmatpush3.msra.mxu1 %v9183_v36  ;;  %7886 = vmatprep.mubr.msk.f32.mxu1 %vm9025_vm0, %v9024_v1 }
 0x6b0   :  { %7880 = vmatprep.subr.mxu1 %v9024_v1 }
 0x6b1   :  { %8614 = vrcp.f32 %v823_v0  ;;  %v7235_v8 = vmul.f32 -1.442695, %v1166_v5  ;;  %7881 = vmatpush3.msra.mxu1 %v9187_v38 }
 0x6b2   :  { %7882 = vmatprep.subr.mxu1 %v9024_v1 }
 0x6b3   :  { %8616 = vpow2.f32 %v7235_v8  ;;  %7883 = vmatpush3.msra.mxu1 %v9193_v39 }
 0x6b4   :  { %7884 = vmatprep.subr.mxu1 %v9024_v1 }
 0x6b5   :  { %7885 = vmatpush3.msra.mxu1 %v9200_v40 }
 0x6b6   :  { %v8613_v9 = vpop.eup %8612  ;;  %7900 = vmatprep.subr.mxu1 %v9024_v1 }
 0x6b7   :  { %v994_v11 = vadd.f32 1.0, %v8613_v9 }
 0x6b9   :  { %8618 = vrcp.f32 %v994_v11 }
 0x6be   :  { %v8615_v12 = vpop.eup %8614 }
 0x6bf   :  { %v826_v14 = vmul.f32 2.0, %v8615_v12  ;;  %v828_v47 = vmul.f32 %v8615_v12, %v9230_v13 }
 0x6c0   :  { %v8617_v15 = vpop.eup %8616 }
 0x6c1   :  { %v1170_v17 = vadd.f32 1.0, %v8617_v15  ;;  %v7229_v18 = vadd.f32 -1.0, %v826_v14  ;;  %v9389_v14 = vld [vmem:[#allocation10 + $0x58] sm:$0xff] }
 0x6c3   :  { %8620 = vrcp.f32 %v1170_v17  ;;  %830 = vrot.lane.b32.xlu0 %v7229_v18, %s9026_s13  ;;  %v9394_v17 = vld [vmem:[#allocation8 + $0x58] sm:$0xff]  ;;  %v9398_v18 = vld [vmem:[#allocation10 + $0x50] sm:$0xff] }
 0x6c6   :  { %v8619_v19 = vpop.eup %8618 }
 0x6c7   :  { %v997_v20 = vmul.f32 2.0, %v8619_v19  ;;  %v999_v51 = vmul.f32 %v8619_v19, %v9233_v16 }
 0x6c9   :  { %v7233_v21 = vadd.f32 -1.0, %v997_v20  ;;  %v9406_v20 = vld [vmem:[#allocation10 + $0x48] sm:$0xff] }
 0x6cb   :  { %1001 = vrot.lane.b32.xlu1 %v7233_v21, %s9026_s13  ;;  %v9410_v21 = vld [vmem:[#allocation8 + $0x48] sm:$0xff] }
 0x6d0   :  { %v8621_v22 = vpop.eup %8620 }
 0x6d1   :  { %v1173_v23 = vmul.f32 2.0, %v8621_v22  ;;  %v1175_v55 = vmul.f32 0.0, %v8621_v22 }
 0x6d3   :  { %v7236_v24 = vadd.f32 -1.0, %v1173_v23  ;;  %v9420_v23 = vld [vmem:[#allocation8 + $0x40] sm:$0xff] }
 0x6d5   :  { %1177 = vrot.lane.b32.xlu0 %v7236_v24, %s9026_s13 }
 0x735   :  { %v831_v25 = vpop.permute.xlu0 %830 }
 0x736   :  { %v833_v26 = vmul.f32 %v8615_v12, %v831_v25 }
 0x738   :  { %835 = vrot.lane.b32.xlu1 %v833_v26, %s9027_s14 }
 0x73d   :  { %v1002_v32 = vpop.permute.xlu1 %1001 }
 0x73e   :  { %v1004_v44 = vmul.f32 %v8619_v19, %v1002_v32 }
 0x740   :  { %1006 = vrot.lane.b32.xlu0 %v1004_v44, %s9027_s14 }
 0x747   :  { %v1178_v45 = vpop.permute.xlu0 %1177 }
 0x748   :  { %v1180_v46 = vmul.f32 %v8621_v22, %v1178_v45 }
 0x74a   :  { %1182 = vrot.lane.b32.xlu1 %v1180_v46, %s9027_s14 }
 0x76e   :  { %v9358_v8 = vpop.f32.mrf.mxu1 }
 0x770   :  { %v7877_v9 = vpop.f32.mrf.mxu1 }
 0x7aa   :  { %v836_v49 = vpop.permute.xlu1 %835 }
 0x7ab   :  { %v9331_v50 = vadd.f32 %v836_v49, %v828_v47 }
 0x7ad   :  { %8622 = vtanh.f32 %v9331_v50 }
 0x7b2   :  { %v1007_v52 = vpop.permute.xlu0 %1006 }
 0x7b3   :  { %v9335_v53 = vadd.f32 %v1007_v52, %v999_v51 }
 0x7b5   :  { %8624 = vtanh.f32 %v9335_v53 }
 0x7ba   :  { %v8623_v54 = vpop.eup %8622 }
 0x7bb   :  { %841 = vrot.lane.b32.xlu0 %v8623_v54, %s9026_s13 }
 0x7bc   :  { %v1183_v56 = vpop.permute.xlu1 %1182 }
 0x7bd   :  { %v9339_v57 = vadd.f32 %v1183_v56, %v1175_v55 }
 0x7bf   :  { %8626 = vtanh.f32 %v9339_v57 }
 0x7c2   :  { %v8625_v13 = vpop.eup %8624 }
 0x7c3   :  { %1012 = vrot.lane.b32.xlu1 %v8625_v13, %s9026_s13 }
 0x7cc   :  { %v8627_v16 = vpop.eup %8626 }
 0x7cd   :  { %1188 = vrot.lane.b32.xlu0 %v8627_v16, %s9026_s13 }
 0x82d   :  { %v842_v60 = vpop.permute.xlu0 %841 }
 0x82e   :  { %v844_v61 = vmul.f32 %v8615_v12, %v842_v60  ;;  %v9454_v60 = vld [vmem:[%s10655_s6 + $0x2] ss:$0 sm:$0xff] }
 0x830   :  { %1195 = vrot.lane.b32.xlu1 %v844_v61, %s9027_s14 }
 0x835   :  { %v1013_v62 = vpop.permute.xlu1 %1012 }
 0x836   :  { %v1015_v63 = vmul.f32 %v8619_v19, %v1013_v62  ;;  %v9402_v19 = vld [vmem:[#allocation8 + $0x50] sm:$0xff] }
 0x838   :  { %1369 = vrot.lane.b32.xlu0 %v1015_v63, %s9027_s14 }
 0x83f   :  { %v1189_v0 = vpop.permute.xlu0 %1188 }
 0x840   :  { %v1191_v5 = vmul.f32 %v8621_v22, %v1189_v0  ;;  %v9414_v22 = vld [vmem:[#allocation10 + $0x40] sm:$0xff] }
 0x842   :  { %1540 = vrot.lane.b32.xlu1 %v1191_v5, %s9027_s14 }
 0x8a2   :  { %v1196_v11 = vpop.permute.xlu1 %1195 }
 0x8a3   :  { %7871 = vmatmul.mubr.msk.f32.vlgmr.msra.gmra.mxu0 %vm145_vm2, %v1196_v11 }
 0x8a4   :  { %7890 = vmatpush3.msra.mxu0 %v9162_v27  ;;  %7897 = vmatprep.mubr.msk.f32.mxu0 %vm9025_vm0, %v9024_v1 }
 0x8a5   :  { %7891 = vmatprep.subr.mxu0 %v9024_v1 }
 0x8a6   :  { %7892 = vmatpush3.msra.mxu0 %v9165_v28 }
 0x8a7   :  { %7893 = vmatprep.subr.mxu0 %v9024_v1 }
 0x8a8   :  { %7894 = vmatpush3.msra.mxu0 %v9171_v29 }
 0x8a9   :  { %7895 = vmatprep.subr.mxu0 %v9024_v1 }
 0x8aa   :  { %7896 = vmatpush3.msra.mxu0 %v9175_v30  ;;  %v1370_v12 = vpop.permute.xlu0 %1369 }
 0x8ab   :  { %7887 = vmatmul.mubr.msk.f32.vlgmr.msra.gmra.mxu1 %vm145_vm2, %v1370_v12  ;;  %7898 = vmatmul.mubr.msk.f32.vlgmr.msra.gmra.mxu0 %vm145_vm2, %v1196_v11 }
 0x8ac   :  { %7901 = vmatpush3.msra.mxu1 %v9260_v31  ;;  %7911 = vmatprep.subr.mxu0 %v9024_v1 }
 0x8ad   :  { %7902 = vmatprep.subr.mxu1 %v9024_v1  ;;  %7912 = vmatpush3.msra.mxu0 %v9263_v33 }
 0x8ae   :  { %7903 = vmatpush3.msra.mxu1 %v9267_v34  ;;  %7913 = vmatprep.subr.mxu0 %v9024_v1 }
 0x8af   :  { %7904 = vmatprep.subr.mxu1 %v9024_v1  ;;  %7914 = vmatpush3.msra.mxu0 %v9271_v35 }
 0x8b0   :  { %7905 = vmatpush3.msra.mxu1 %v9275_v37  ;;  %7915 = vmatprep.subr.mxu0 %v9024_v1 }
 0x8b1   :  { %7906 = vmatprep.subr.mxu1 %v9024_v1  ;;  %7916 = vmatpush3.msra.mxu0 %v9279_v41 }
 0x8b2   :  { %7907 = vmatpush3.msra.mxu1 %v9283_v42  ;;  %7917 = vmatprep.subr.mxu0 %v9024_v1 }
 0x8b3   :  { %7918 = vmatpush3.msra.mxu0 %v9289_v43  ;;  %7919 = vmatprep.mubr.msk.f32.mxu0 %vm9025_vm0, %v9024_v1 }
 0x8b4   :  { %v1541_v15 = vpop.permute.xlu1 %1540  ;;  %7908 = vmatprep.mubr.msk.f32.mxu1 %vm9025_vm0, %v9024_v1  ;;  %7922 = vmatprep.subr.mxu1 %v9024_v1 }
 0x8b5   :  { %7909 = vmatmul.mubr.msk.f32.vlgmr.msra.gmra.mxu1 %vm145_vm2, %v1541_v15  ;;  %7920 = vmatmul.mubr.msk.f32.vlgmr.msra.gmra.mxu0 %vm145_vm2, %v1370_v12 }
 0x8b6   :  { %7923 = vmatpush3.msra.mxu1 %v9389_v14  ;;  %7933 = vmatprep.subr.mxu0 %v9024_v1 }
 0x8b7   :  { %7924 = vmatprep.subr.mxu1 %v9024_v1  ;;  %7934 = vmatpush3.msra.mxu0 %v9394_v17 }
 0x8b8   :  { %7925 = vmatpush3.msra.mxu1 %v9398_v18  ;;  %7935 = vmatprep.subr.mxu0 %v9024_v1 }
 0x8b9   :  { %7926 = vmatprep.subr.mxu1 %v9024_v1  ;;  %7936 = vmatpush3.msra.mxu0 %v9402_v19 }
 0x8ba   :  { %7927 = vmatpush3.msra.mxu1 %v9406_v20  ;;  %7937 = vmatprep.subr.mxu0 %v9024_v1 }
 0x8bb   :  { %7928 = vmatprep.subr.mxu1 %v9024_v1  ;;  %7938 = vmatpush3.msra.mxu0 %v9410_v21 }
 0x8bc   :  { %7929 = vmatpush3.msra.mxu1 %v9414_v22  ;;  %7930 = vmatprep.mubr.msk.f32.mxu1 %vm9025_vm0, %v9024_v1 }
 0x8bd   :  { %7939 = vmatprep.subr.mxu0 %v9024_v1  ;;  %7931 = vmatmul.mubr.f32.vlgmr.msra.gmra.mxu1 %v9024_v1 }
 0x8be   :  { %7940 = vmatpush3.msra.mxu0 %v9420_v23  ;;  %7941 = vmatprep.mubr.msk.f32.mxu0 %vm9025_vm0, %v9024_v1 }
 0x8bf   :  { %7942 = vmatmul.mubr.msk.f32.vlgmr.msra.gmra.mxu0 %vm145_vm2, %v1541_v15  ;;  %7944 = vmatprep.subr.mxu1 %v9024_v1 }
 0x8c0   :  { %7945 = vmatpush3.msra.mxu1 %v9115_v2  ;;  %7955 = vmatprep.subr.mxu0 %v9024_v1 }
 0x8c1   :  { %7946 = vmatprep.subr.mxu1 %v9024_v1  ;;  %7956 = vmatpush3.msra.mxu0 %v9120_v4 }
 0x8c2   :  { %7947 = vmatpush3.msra.mxu1 %v9117_v3  ;;  %7957 = vmatprep.mubr.msk.f32.mxu0 %vm9025_vm0, %v9024_v1 }
 0x8c3   :  { %7948 = vmatprep.subr.mxu1 %v9024_v1  ;;  %7960 = vmatprep.subr.mxu0 %v9024_v1 }
 0x8c4   :  { %7949 = vmatpush3.msra.mxu1 %v9123_v6  ;;  %7952 = vmatprep.mubr.msk.f32.mxu1 %vm9025_vm0, %v9024_v1 }
 0x8c5   :  { %7950 = vmatprep.subr.mxu1 %v9024_v1 }
 0x8c6   :  { %7951 = vmatpush3.msra.mxu1 %v9129_v7 }
 0x8c7   :  { %7971 = vmatprep.subr.mxu1 %v9024_v1 }
 0x963   :  { %v1265_v2 = vpop.f32.mrf.mxu0 }
 0x964   :  { %v1339_v3 = vadd.f32 %v9358_v8, %v1265_v2 }
 0x965   :  { %v7872_v4 = vpop.f32.mrf.mxu0 }
 0x966   :  { %v1342_v24 = vadd.f32 %v9154_v10, %v1339_v3 }
 0x968   :  { %v7239_v25 = vmul.f32 -1.442695, %v1342_v24 }
 0x96a   :  { %8628 = vpow2.f32 %v7239_v25 }
 0x96b   :  { %v1439_v26 = vpop.f32.mrf.mxu1  ;;  %v1509_v32 = vpop.f32.mrf.mxu0 }
 0x96c   :  { %v1510_v6 = vadd.f32 %v1509_v32, %v1439_v26 }
 0x96d   :  { %v7888_v44 = vpop.f32.mrf.mxu1  ;;  %v7899_v45 = vpop.f32.mrf.mxu0 }
 0x96e   :  { %v1513_v46 = vadd.f32 %v9222_v48, %v1510_v6 }
 0x970   :  { %v7243_v47 = vmul.f32 -1.442695, %v1513_v46 }
 0x972   :  { %8630 = vpow2.f32 %v7243_v47 }
 0x975   :  { %v1610_v7 = vpop.f32.mrf.mxu1  ;;  %v1680_v49 = vpop.f32.mrf.mxu0 }
 0x976   :  { %v1681_v51 = vadd.f32 %v1680_v49, %v1610_v7 }
 0x977   :  { %v8629_v52 = vpop.eup %8628  ;;  %v7910_v54 = vpop.f32.mrf.mxu1 }
 0x978   :  { %v7921_v55 = vpop.f32.mrf.mxu0  ;;  %v1346_v56 = vadd.f32 1.0, %v8629_v52  ;;  %v1684_v10 = vadd.f32 %v9321_v58, %v1681_v51 }
 0x97a   :  { %8632 = vrcp.f32 %v1346_v56  ;;  %v7247_v13 = vmul.f32 -1.442695, %v1684_v10 }
 0x97c   :  { %8634 = vpow2.f32 %v7247_v13 }
 0x97d   :  { %v1786_v59 = vpop.f32.mrf.mxu1 }
 0x97f   :  { %v8631_v16 = vpop.eup %8630  ;;  %v1856_v61 = vpop.f32.mrf.mxu0 }
 0x980   :  { %v7932_v62 = vpop.f32.mrf.mxu1  ;;  %v1517_v63 = vadd.f32 1.0, %v8631_v16  ;;  %v1857_v0 = vadd.f32 %v1856_v61, %v1786_v59 }
 0x981   :  { %v7943_v5 = vpop.f32.mrf.mxu0 }
 0x982   :  { %8636 = vrcp.f32 %v1517_v63  ;;  %v1860_v8 = vadd.f32 %v9454_v60, %v1857_v0 }
 0x984   :  { %v7250_v9 = vmul.f32 -1.442695, %v1860_v8 }
 0x986   :  { %8638 = vpow2.f32 %v7250_v9 }
 0x987   :  { %v9457_v11 = vpop.eup %8632 }
 0x988   :  { %v1349_v12 = vmul.f32 2.0, %v9457_v11  ;;  %v1351_v59 = vmul.f32 %v9457_v11, %v9331_v50 }
 0x989   :  { %v8635_v15 = vpop.eup %8634 }
 0x98a   :  { %v1688_v2 = vadd.f32 1.0, %v8635_v15  ;;  %v7240_v3 = vadd.f32 -1.0, %v1349_v12 }
 0x98c   :  { %8640 = vrcp.f32 %v1688_v2  ;;  %1353 = vrot.lane.b32.xlu0 %v7240_v3, %s9026_s13 }
 0x98f   :  { %v9461_v4 = vpop.eup %8636 }
 0x990   :  { %v1520_v24 = vmul.f32 2.0, %v9461_v4  ;;  %v1522_v62 = vmul.f32 %v9461_v4, %v9335_v53 }
 0x992   :  { %v7244_v25 = vadd.f32 -1.0, %v1520_v24  ;;  %v1887_v24 = vld [vmem:[#allocation3 + $0x20] sm:$0xff] }
 0x993   :  { %v8639_v26 = vpop.eup %8638  ;;  %7958 = vmatmul.mubr.msk.f32.vlgmr.msra.gmra.mxu0 %vm219_vm1, %v1887_v24 }
 0x994   :  { %v1864_v32 = vadd.f32 1.0, %v8639_v26  ;;  %1524 = vrot.lane.b32.xlu1 %v7244_v25, %s9026_s13  ;;  %7961 = vmatpush3.msra.mxu0 %v9183_v36 }
 0x995   :  { %7968 = vmatprep.mubr.msk.f32.mxu0 %vm9025_vm0, %v9024_v1  ;;  %7962 = vmatprep.subr.mxu0 %v9024_v1 }
 0x996   :  { %8642 = vrcp.f32 %v1864_v32  ;;  %7963 = vmatpush3.msra.mxu0 %v9187_v38 }
 0x997   :  { %7964 = vmatprep.subr.mxu0 %v9024_v1 }
 0x998   :  { %7965 = vmatpush3.msra.mxu0 %v9193_v39 }
 0x999   :  { %v8641_v6 = vpop.eup %8640  ;;  %7966 = vmatprep.subr.mxu0 %v9024_v1 }
 0x99a   :  { %v1691_v44 = vmul.f32 2.0, %v8641_v6  ;;  %v1693_v8 = vmul.f32 %v8641_v6, %v9339_v57  ;;  %7967 = vmatpush3.msra.mxu0 %v9200_v40 }
 0x99b   :  { %7982 = vmatprep.subr.mxu0 %v9024_v1 }
 0x99c   :  { %v7248_v45 = vadd.f32 -1.0, %v1691_v44 }
 0x99e   :  { %1695 = vrot.lane.b32.xlu0 %v7248_v45, %s9026_s13 }
 0x9a3   :  { %v8643_v46 = vpop.eup %8642 }
 0x9a4   :  { %v1867_v47 = vmul.f32 2.0, %v8643_v46  ;;  %v1869_v15 = vmul.f32 0.0, %v8643_v46 }
 0x9a6   :  { %v7251_v7 = vadd.f32 -1.0, %v1867_v47 }
 0x9a8   :  { %1871 = vrot.lane.b32.xlu1 %v7251_v7, %s9026_s13 }
 0x9fe   :  { %v1354_v49 = vpop.permute.xlu0 %1353 }
 0x9ff   :  { %v1356_v51 = vmul.f32 %v9457_v11, %v1354_v49 }
 0xa01   :  { %1358 = vrot.lane.b32.xlu0 %v1356_v51, %s9027_s14 }
 0xa06   :  { %v1525_v52 = vpop.permute.xlu1 %1524 }
 0xa07   :  { %v1527_v54 = vmul.f32 %v9461_v4, %v1525_v52 }
 0xa09   :  { %1529 = vrot.lane.b32.xlu1 %v1527_v54, %s9027_s14  ;;  %v9636_v54 = vld [vmem:[%s10654_s5] ss:$0 sm:$0xff] }
 0xa10   :  { %v1696_v55 = vpop.permute.xlu0 %1695 }
 0xa11   :  { %v1698_v56 = vmul.f32 %v8641_v6, %v1696_v55 }
 0xa13   :  { %1700 = vrot.lane.b32.xlu0 %v1698_v56, %s9027_s14 }
 0xa1a   :  { %v1872_v10 = vpop.permute.xlu1 %1871 }
 0xa1b   :  { %v1874_v13 = vmul.f32 %v8643_v46, %v1872_v10 }
 0xa1d   :  { %1876 = vrot.lane.b32.xlu1 %v1874_v13, %s9027_s14 }
 0xa53   :  { %v9511_v45 = vpop.f32.mrf.mxu0 }
 0xa55   :  { %v7959_v47 = vpop.f32.mrf.mxu0 }
 0xa73   :  { %v1359_v16 = vpop.permute.xlu0 %1358 }
 0xa74   :  { %v9475_v61 = vadd.f32 %v1359_v16, %v1351_v59 }
 0xa76   :  { %8644 = vtanh.f32 %v9475_v61 }
 0xa7b   :  { %v1530_v63 = vpop.permute.xlu1 %1529 }
 0xa7c   :  { %v9480_v0 = vadd.f32 %v1530_v63, %v1522_v62 }
 0xa7e   :  { %8646 = vtanh.f32 %v9480_v0 }
 0xa83   :  { %v8645_v5 = vpop.eup %8644 }
 0xa84   :  { %1364 = vrot.lane.b32.xlu0 %v8645_v5, %s9026_s13 }
 0xa85   :  { %v1701_v9 = vpop.permute.xlu0 %1700 }
 0xa86   :  { %v9485_v50 = vadd.f32 %v1701_v9, %v1693_v8 }
 0xa88   :  { %8648 = vtanh.f32 %v9485_v50 }
 0xa8b   :  { %v8647_v12 = vpop.eup %8646 }
 0xa8c   :  { %1535 = vrot.lane.b32.xlu1 %v8647_v12, %s9026_s13 }
 0xa8f   :  { %v1877_v53 = vpop.permute.xlu1 %1876 }
 0xa90   :  { %v9489_v2 = vadd.f32 %v1877_v53, %v1869_v15 }
 0xa92   :  { %8650 = vtanh.f32 %v9489_v2 }
 0xa95   :  { %v8649_v3 = vpop.eup %8648 }
 0xa96   :  { %1706 = vrot.lane.b32.xlu0 %v8649_v3, %s9026_s13 }
 0xa9f   :  { %v8651_v57 = vpop.eup %8650 }
 0xaa0   :  { %1882 = vrot.lane.b32.xlu1 %v8651_v57, %s9026_s13 }
 0xaf6   :  { %v1365_v36 = vpop.permute.xlu0 %1364 }
 0xaf7   :  { %v1367_v25 = vmul.f32 %v9457_v11, %v1365_v36 }
 0xaf9   :  { %1889 = vrot.lane.b32.xlu0 %v1367_v25, %s9027_s14 }
 0xafe   :  { %v1536_v26 = vpop.permute.xlu1 %1535 }
 0xaff   :  { %v1538_v38 = vmul.f32 %v9461_v4, %v1536_v26  ;;  %v9615_v4 = vld [vmem:[#allocation7 + $0x10] sm:$0xff] }
 0xb01   :  { %2063 = vrot.lane.b32.xlu1 %v1538_v38, %s9027_s14 }
 0xb08   :  { %v1707_v39 = vpop.permute.xlu0 %1706 }
 0xb09   :  { %v1709_v32 = vmul.f32 %v8641_v6, %v1707_v39  ;;  %v9623_v6 = vld [vmem:[#allocation7 + $0x8] sm:$0xff] }
 0xb0b   :  { %2234 = vrot.lane.b32.xlu0 %v1709_v32, %s9027_s14 }
 0xb12   :  { %v1883_v40 = vpop.permute.xlu1 %1882 }
 0xb13   :  { %v1885_v44 = vmul.f32 %v8643_v46, %v1883_v40  ;;  %v9628_v46 = vld [vmem:[#allocation7] sm:$0xff] }
 0xb15   :  { %2405 = vrot.lane.b32.xlu1 %v1885_v44, %s9027_s14 }
 0xb6b   :  { %v1890_v7 = vpop.permute.xlu0 %1889 }
 0xb6c   :  { %7953 = vmatmul.mubr.msk.f32.vlgmr.msra.gmra.mxu1 %vm145_vm2, %v1890_v7 }
 0xb6d   :  { %7972 = vmatpush3.msra.mxu1 %v9162_v27  ;;  %7979 = vmatprep.mubr.msk.f32.mxu1 %vm9025_vm0, %v9024_v1 }
 0xb6e   :  { %7973 = vmatprep.subr.mxu1 %v9024_v1 }
 0xb6f   :  { %7974 = vmatpush3.msra.mxu1 %v9165_v28  ;;  %v9564_v28 = vld [vmem:[#allocation10 + $0x78] sm:$0xff] }
 0xb70   :  { %7975 = vmatprep.subr.mxu1 %v9024_v1 }
 0xb71   :  { %7976 = vmatpush3.msra.mxu1 %v9171_v29 }
 0xb72   :  { %7977 = vmatprep.subr.mxu1 %v9024_v1 }
 0xb73   :  { %7978 = vmatpush3.msra.mxu1 %v9175_v30  ;;  %v2064_v11 = vpop.permute.xlu1 %2063  ;;  %v9569_v30 = vld [vmem:[#allocation8 + $0x78] sm:$0xff] }
 0xb74   :  { %7969 = vmatmul.mubr.msk.f32.vlgmr.msra.gmra.mxu0 %vm145_vm2, %v2064_v11  ;;  %7980 = vmatmul.mubr.msk.f32.vlgmr.msra.gmra.mxu1 %vm145_vm2, %v1890_v7 }
 0xb75   :  { %7983 = vmatpush3.msra.mxu0 %v9260_v31  ;;  %7993 = vmatprep.subr.mxu1 %v9024_v1  ;;  %v9573_v31 = vld [vmem:[#allocation10 + $0x70] sm:$0xff] }
 0xb76   :  { %7984 = vmatprep.subr.mxu0 %v9024_v1  ;;  %7994 = vmatpush3.msra.mxu1 %v9263_v33  ;;  %v9577_v33 = vld [vmem:[#allocation8 + $0x70] sm:$0xff] }
 0xb77   :  { %7985 = vmatpush3.msra.mxu0 %v9267_v34  ;;  %7995 = vmatprep.subr.mxu1 %v9024_v1  ;;  %v9581_v34 = vld [vmem:[#allocation10 + $0x68] sm:$0xff] }
 0xb78   :  { %7986 = vmatprep.subr.mxu0 %v9024_v1  ;;  %7996 = vmatpush3.msra.mxu1 %v9271_v35  ;;  %v9585_v35 = vld [vmem:[#allocation8 + $0x68] sm:$0xff] }
 0xb79   :  { %7987 = vmatpush3.msra.mxu0 %v9275_v37  ;;  %7997 = vmatprep.subr.mxu1 %v9024_v1  ;;  %v9589_v37 = vld [vmem:[#allocation10 + $0x60] sm:$0xff] }
 0xb7a   :  { %7988 = vmatprep.subr.mxu0 %v9024_v1  ;;  %7998 = vmatpush3.msra.mxu1 %v9279_v41  ;;  %v9595_v41 = vld [vmem:[#allocation8 + $0x60] sm:$0xff] }
 0xb7b   :  { %7989 = vmatpush3.msra.mxu0 %v9283_v42  ;;  %7999 = vmatprep.subr.mxu1 %v9024_v1  ;;  %v9607_v42 = vld [vmem:[#allocation7 + $0x18] sm:$0xff] }
 0xb7c   :  { %8000 = vmatpush3.msra.mxu1 %v9289_v43  ;;  %8001 = vmatprep.mubr.msk.f32.mxu1 %vm9025_vm0, %v9024_v1  ;;  %v9612_v43 = vld [vmem:[#allocation5] sm:$0xff] }
 0xb7d   :  { %v2235_v27 = vpop.permute.xlu0 %2234  ;;  %7990 = vmatprep.mubr.msk.f32.mxu0 %vm9025_vm0, %v9024_v1  ;;  %8004 = vmatprep.subr.mxu0 %v9024_v1 }
 0xb7e   :  { %7991 = vmatmul.mubr.msk.f32.vlgmr.msra.gmra.mxu0 %vm145_vm2, %v2235_v27  ;;  %8002 = vmatmul.mubr.msk.f32.vlgmr.msra.gmra.mxu1 %vm145_vm2, %v2064_v11 }
 0xb7f   :  { %8005 = vmatpush3.msra.mxu0 %v9389_v14  ;;  %8015 = vmatprep.subr.mxu1 %v9024_v1 }
 0xb80   :  { %8006 = vmatprep.subr.mxu0 %v9024_v1  ;;  %8016 = vmatpush3.msra.mxu1 %v9394_v17 }
 0xb81   :  { %8007 = vmatpush3.msra.mxu0 %v9398_v18  ;;  %8017 = vmatprep.subr.mxu1 %v9024_v1 }
 0xb82   :  { %8008 = vmatprep.subr.mxu0 %v9024_v1  ;;  %8018 = vmatpush3.msra.mxu1 %v9402_v19 }
 0xb83   :  { %8009 = vmatpush3.msra.mxu0 %v9406_v20  ;;  %8019 = vmatprep.subr.mxu1 %v9024_v1 }
 0xb84   :  { %8010 = vmatprep.subr.mxu0 %v9024_v1  ;;  %8020 = vmatpush3.msra.mxu1 %v9410_v21 }
 0xb85   :  { %8011 = vmatpush3.msra.mxu0 %v9414_v22  ;;  %8021 = vmatprep.subr.mxu1 %v9024_v1 }
 0xb86   :  { %8012 = vmatprep.mubr.msk.f32.mxu0 %vm9025_vm0, %v9024_v1  ;;  %8022 = vmatpush3.msra.mxu1 %v9420_v23 }
 0xb87   :  { %8023 = vmatprep.mubr.msk.f32.mxu1 %vm9025_vm0, %v9024_v1  ;;  %8026 = vmatprep.subr.mxu0 %v9024_v1  ;;  %v2406_v29 = vpop.permute.xlu1 %2405 }
 0xb88   :  { %8013 = vmatmul.mubr.msk.f32.vlgmr.msra.gmra.mxu0 %vm145_vm2, %v2406_v29  ;;  %8024 = vmatmul.mubr.msk.f32.vlgmr.msra.gmra.mxu1 %vm145_vm2, %v2235_v27  ;;  %v9648_v27 = vld [vmem:[%s10655_s6 + $0x3] ss:$0 sm:$0xff] }
 0xb89   :  { %8027 = vmatpush3.msra.mxu0 %v9564_v28  ;;  %8037 = vmatprep.subr.mxu1 %v9024_v1 }
 0xb8a   :  { %8028 = vmatprep.subr.mxu0 %v9024_v1  ;;  %8038 = vmatpush3.msra.mxu1 %v9569_v30 }
 0xb8b   :  { %8029 = vmatpush3.msra.mxu0 %v9573_v31  ;;  %8039 = vmatprep.subr.mxu1 %v9024_v1 }
 0xb8c   :  { %8030 = vmatprep.subr.mxu0 %v9024_v1  ;;  %8040 = vmatpush3.msra.mxu1 %v9577_v33 }
 0xb8d   :  { %8031 = vmatpush3.msra.mxu0 %v9581_v34  ;;  %8041 = vmatprep.subr.mxu1 %v9024_v1 }
 0xb8e   :  { %8032 = vmatprep.subr.mxu0 %v9024_v1  ;;  %8042 = vmatpush3.msra.mxu1 %v9585_v35 }
 0xb8f   :  { %8033 = vmatpush3.msra.mxu0 %v9589_v37  ;;  %8034 = vmatprep.mubr.msk.f32.mxu0 %vm9025_vm0, %v9024_v1 }
 0xb90   :  { %8043 = vmatprep.subr.mxu1 %v9024_v1  ;;  %8035 = vmatmul.mubr.f32.vlgmr.msra.gmra.mxu0 %v9024_v1 }
 0xb91   :  { %8044 = vmatpush3.msra.mxu1 %v9595_v41  ;;  %8045 = vmatprep.mubr.msk.f32.mxu1 %vm9025_vm0, %v9024_v1 }
 0xb92   :  { %8046 = vmatmul.mubr.msk.f32.vlgmr.msra.gmra.mxu1 %vm145_vm2, %v2406_v29  ;;  %8048 = vmatprep.subr.mxu0 %v9024_v1 }
 0xb93   :  { %8049 = vmatpush3.msra.mxu0 %v9607_v42  ;;  %8059 = vmatprep.subr.mxu1 %v9024_v1 }
 0xb94   :  { %8050 = vmatprep.subr.mxu0 %v9024_v1  ;;  %8060 = vmatpush3.msra.mxu1 %v9612_v43 }
 0xb95   :  { %8051 = vmatpush3.msra.mxu0 %v9615_v4  ;;  %8061 = vmatprep.mubr.msk.f32.mxu1 %vm9025_vm0, %v9024_v1 }
 0xb96   :  { %8052 = vmatprep.subr.mxu0 %v9024_v1  ;;  %8056 = vmatprep.mubr.msk.f32.mxu0 %vm9025_vm0, %v9024_v1 }
 0xb97   :  { %8053 = vmatpush3.msra.mxu0 %v9623_v6  ;;  %8064 = vmatprep.subr.mxu1 %v9024_v1 }
 0xb98   :  { %8054 = vmatprep.subr.mxu0 %v9024_v1 }
 0xb99   :  { %8055 = vmatpush3.msra.mxu0 %v9628_v46 }
 0xb9a   :  { %8075 = vmatprep.subr.mxu0 %v9024_v1 }
 0xc2c   :  { %v1959_v49 = vpop.f32.mrf.mxu1 }
 0xc2d   :  { %v2033_v51 = vadd.f32 %v9511_v45, %v1959_v49 }
 0xc2e   :  { %v7954_v52 = vpop.f32.mrf.mxu1 }
 0xc2f   :  { %v2036_v55 = vadd.f32 %v9636_v54, %v2033_v51 }
 0xc31   :  { %v7254_v56 = vmul.f32 -1.442695, %v2036_v55 }
 0xc33   :  { %8652 = vpow2.f32 %v7254_v56 }
 0xc34   :  { %v2133_v10 = vpop.f32.mrf.mxu0  ;;  %v2203_v13 = vpop.f32.mrf.mxu1 }
 0xc35   :  { %v2204_v59 = vadd.f32 %v2203_v13, %v2133_v10 }
 0xc36   :  { %v7970_v16 = vpop.f32.mrf.mxu0  ;;  %v7981_v62 = vpop.f32.mrf.mxu1 }
 0xc37   :  { %v2207_v63 = vadd.f32 %v9222_v48, %v2204_v59 }
 0xc39   :  { %v7258_v5 = vmul.f32 -1.442695, %v2207_v63 }
 0xc3b   :  { %8654 = vpow2.f32 %v7258_v5 }
 0xc3e   :  { %v2304_v8 = vpop.f32.mrf.mxu0  ;;  %v2374_v9 = vpop.f32.mrf.mxu1 }
 0xc3f   :  { %v2375_v12 = vadd.f32 %v2374_v9, %v2304_v8 }
 0xc40   :  { %v8653_v15 = vpop.eup %8652  ;;  %v7992_v53 = vpop.f32.mrf.mxu0 }
 0xc41   :  { %v8003_v3 = vpop.f32.mrf.mxu1  ;;  %v2040_v24 = vadd.f32 1.0, %v8653_v15  ;;  %v2378_v57 = vadd.f32 %v9321_v58, %v2375_v12 }
 0xc43   :  { %8656 = vrcp.f32 %v2040_v24  ;;  %v7262_v36 = vmul.f32 -1.442695, %v2378_v57 }
 0xc45   :  { %8658 = vpow2.f32 %v7262_v36 }
 0xc48   :  { %v8655_v25 = vpop.eup %8654  ;;  %v2475_v26 = vpop.f32.mrf.mxu0 }
 0xc49   :  { %v2545_v38 = vpop.f32.mrf.mxu1  ;;  %v2211_v39 = vadd.f32 1.0, %v8655_v25 }
 0xc4a   :  { %v2546_v32 = vadd.f32 %v2545_v38, %v2475_v26  ;;  %v8014_v48 = vpop.f32.mrf.mxu0 }
 0xc4b   :  { %v8025_v40 = vpop.f32.mrf.mxu1  ;;  %8660 = vrcp.f32 %v2211_v39 }
 0xc4c   :  { %v2549_v44 = vadd.f32 %v9454_v60, %v2546_v32 }
 0xc4e   :  { %v7266_v45 = vmul.f32 -1.442695, %v2549_v44 }
 0xc50   :  { %8662 = vpow2.f32 %v7266_v45  ;;  %v9642_v47 = vpop.eup %8656  ;;  %v2651_v7 = vpop.f32.mrf.mxu0 }
 0xc51   :  { %v2043_v58 = vmul.f32 2.0, %v9642_v47 }
 0xc52   :  { %v8659_v11 = vpop.eup %8658  ;;  %v2721_v29 = vpop.f32.mrf.mxu1 }
 0xc53   :  { %v8036_v49 = vpop.f32.mrf.mxu0  ;;  %v2382_v51 = vadd.f32 1.0, %v8659_v11  ;;  %v2722_v52 = vadd.f32 %v2721_v29, %v2651_v7  ;;  %v7255_v55 = vadd.f32 -1.0, %v2043_v58  ;;  %v2045_v29 = vmul.f32 %v9642_v47, %v9475_v61 }
 0xc54   :  { %v8047_v56 = vpop.f32.mrf.mxu1 }
 0xc55   :  { %8664 = vrcp.f32 %v2382_v51  ;;  %v2725_v10 = vadd.f32 %v9648_v27, %v2722_v52  ;;  %2047 = vrot.lane.b32.xlu0 %v7255_v55, %s9026_s13 }
 0xc57   :  { %v7269_v13 = vmul.f32 -1.442695, %v2725_v10 }
 0xc58   :  { %v9652_v59 = vpop.eup %8660 }
 0xc59   :  { %8666 = vpow2.f32 %v7269_v13  ;;  %v2214_v16 = vmul.f32 2.0, %v9652_v59  ;;  %v2216_v52 = vmul.f32 %v9652_v59, %v9480_v0 }
 0xc5b   :  { %v7259_v62 = vadd.f32 -1.0, %v2214_v16 }
 0xc5d   :  { %v8663_v63 = vpop.eup %8662  ;;  %2218 = vrot.lane.b32.xlu1 %v7259_v62, %s9026_s13 }
 0xc5e   :  { %v2553_v5 = vadd.f32 1.0, %v8663_v63 }
 0xc60   :  { %8668 = vrcp.f32 %v2553_v5 }
 0xc62   :  { %v9656_v8 = vpop.eup %8664 }
 0xc63   :  { %v2385_v9 = vmul.f32 2.0, %v9656_v8  ;;  %v2387_v13 = vmul.f32 %v9656_v8, %v9485_v50 }
 0xc65   :  { %v7263_v12 = vadd.f32 -1.0, %v2385_v9 }
 0xc66   :  { %v8667_v15 = vpop.eup %8666 }
 0xc67   :  { %v2729_v53 = vadd.f32 1.0, %v8667_v15  ;;  %2389 = vrot.lane.b32.xlu0 %v7263_v12, %s9026_s13 }
 0xc69   :  { %8670 = vrcp.f32 %v2729_v53 }
 0xc6d   :  { %v9660_v3 = vpop.eup %8668 }
 0xc6e   :  { %v2556_v24 = vmul.f32 2.0, %v9660_v3  ;;  %v2558_v0 = vmul.f32 %v9660_v3, %v9489_v2  ;;  %v9707_v2 = vld [vmem:[#allocation10 + $0x18] sm:$0xff] }
 0xc70   :  { %v7267_v57 = vadd.f32 -1.0, %v2556_v24  ;;  %v2770_v24 = vld [vmem:[#allocation3 + $0x28] sm:$0xff] }
 0xc71   :  { %8062 = vmatmul.mubr.msk.f32.vlgmr.msra.gmra.mxu1 %vm219_vm1, %v2770_v24 }
 0xc72   :  { %2560 = vrot.lane.b32.xlu1 %v7267_v57, %s9026_s13  ;;  %8065 = vmatpush3.msra.mxu1 %v9707_v2  ;;  %v9713_v57 = vld [vmem:[#allocation10 + $0x10] sm:$0xff] }
 0xc73   :  { %8072 = vmatprep.mubr.msk.f32.mxu1 %vm9025_vm0, %v9024_v1  ;;  %8066 = vmatprep.subr.mxu1 %v9024_v1 }
 0xc74   :  { %8067 = vmatpush3.msra.mxu1 %v9713_v57 }
 0xc75   :  { %8068 = vmatprep.subr.mxu1 %v9024_v1 }
 0xc76   :  { %v9664_v36 = vpop.eup %8670 }
 0xc77   :  { %v2732_v25 = vmul.f32 2.0, %v9664_v36  ;;  %v2734_v50 = vmul.f32 0.0, %v9664_v36 }
 0xc79   :  { %v7270_v26 = vadd.f32 -1.0, %v2732_v25  ;;  %v9717_v25 = vld [vmem:[#allocation10 + $0x8] sm:$0xff] }
 0xc7a   :  { %8069 = vmatpush3.msra.mxu1 %v9717_v25 }
 0xc7b   :  { %2736 = vrot.lane.b32.xlu0 %v7270_v26, %s9026_s13  ;;  %8070 = vmatprep.subr.mxu1 %v9024_v1  ;;  %v9721_v26 = vld [vmem:[#allocation10] sm:$0xff] }
 0xc7c   :  { %8071 = vmatpush3.msra.mxu1 %v9721_v26 }
 0xc7d   :  { %8086 = vmatprep.subr.mxu1 %v9024_v1 }
 0xcc7   :  { %v2048_v38 = vpop.permute.xlu0 %2047 }
 0xcc8   :  { %v2050_v39 = vmul.f32 %v9642_v47, %v2048_v38 }
 0xcca   :  { %2052 = vrot.lane.b32.xlu1 %v2050_v39, %s9027_s14 }
 0xccf   :  { %v2219_v32 = vpop.permute.xlu1 %2218 }
 0xcd0   :  { %v2221_v48 = vmul.f32 %v9652_v59, %v2219_v32 }
 0xcd2   :  { %2223 = vrot.lane.b32.xlu0 %v2221_v48, %s9027_s14 }
 0xcd9   :  { %v2390_v40 = vpop.permute.xlu0 %2389 }
 0xcda   :  { %v2392_v44 = vmul.f32 %v9656_v8, %v2390_v40 }
 0xcdc   :  { %2394 = vrot.lane.b32.xlu1 %v2392_v44, %s9027_s14 }
 0xce4   :  { %v2561_v45 = vpop.permute.xlu1 %2560 }
 0xce5   :  { %v2563_v7 = vmul.f32 %v9660_v3, %v2561_v45 }
 0xce7   :  { %2565 = vrot.lane.b32.xlu0 %v2563_v7, %s9027_s14 }
 0xced   :  { %v2737_v58 = vpop.permute.xlu0 %2736 }
 0xcee   :  { %v2739_v11 = vmul.f32 %v9664_v36, %v2737_v58 }
 0xcf0   :  { %2741 = vrot.lane.b32.xlu1 %v2739_v11, %s9027_s14 }
 0xd3c   :  { %v2053_v49 = vpop.permute.xlu1 %2052 }
 0xd3d   :  { %v9680_v51 = vadd.f32 %v2053_v49, %v2045_v29 }
 0xd3f   :  { %8672 = vtanh.f32 %v9680_v51 }
 0xd44   :  { %v2224_v55 = vpop.permute.xlu0 %2223 }
 0xd45   :  { %v9685_v56 = vadd.f32 %v2224_v55, %v2216_v52  ;;  %v9756_v52 = vld [vmem:[#allocation8] sm:$0xff] }
 0xd47   :  { %8674 = vtanh.f32 %v9685_v56 }
 0xd4c   :  { %v8673_v10 = vpop.eup %8672 }
 0xd4d   :  { %2058 = vrot.lane.b32.xlu0 %v8673_v10, %s9026_s13  ;;  %v9762_v10 = vld [vmem:[#allocation10 + $0x38] sm:$0xff] }
 0xd4e   :  { %v2395_v61 = vpop.permute.xlu1 %2394 }
 0xd4f   :  { %v9691_v16 = vadd.f32 %v2395_v61, %v2387_v13  ;;  %v9765_v13 = vld [vmem:[#allocation8 + $0x38] sm:$0xff]  ;;  %v9770_v61 = vld [vmem:[#allocation10 + $0x30] sm:$0xff] }
 0xd51   :  { %8676 = vtanh.f32 %v9691_v16 }
 0xd54   :  { %v8675_v62 = vpop.eup %8674 }
 0xd55   :  { %2229 = vrot.lane.b32.xlu1 %v8675_v62, %s9026_s13  ;;  %v9773_v62 = vld [vmem:[#allocation8 + $0x30] sm:$0xff] }
 0xd59   :  { %v2566_v63 = vpop.permute.xlu0 %2565 }
 0xd5a   :  { %v9697_v5 = vadd.f32 %v2566_v63, %v2558_v0  ;;  %v9778_v0 = vld [vmem:[#allocation10 + $0x28] sm:$0xff] }
 0xd5b   :  { %v9781_v63 = vld [vmem:[#allocation8 + $0x28] sm:$0xff] }
 0xd5c   :  { %8678 = vtanh.f32 %v9697_v5 }
 0xd5e   :  { %v8677_v9 = vpop.eup %8676 }
 0xd5f   :  { %2400 = vrot.lane.b32.xlu0 %v8677_v9, %s9026_s13  ;;  %v9788_v9 = vld [vmem:[#allocation8 + $0x20] sm:$0xff] }
 0xd62   :  { %v2742_v12 = vpop.permute.xlu1 %2741 }
 0xd63   :  { %v9702_v15 = vadd.f32 %v2742_v12, %v2734_v50  ;;  %v9791_v50 = vld [vmem:[#allocation10 + $0x20] sm:$0xff] }
 0xd65   :  { %8680 = vtanh.f32 %v9702_v15 }
 0xd69   :  { %v8679_v53 = vpop.eup %8678 }
 0xd6a   :  { %2571 = vrot.lane.b32.xlu1 %v8679_v53, %s9026_s13 }
 0xd72   :  { %v8681_v38 = vpop.eup %8680 }
 0xd73   :  { %2747 = vrot.lane.b32.xlu0 %v8681_v38, %s9026_s13 }
 0xdbf   :  { %v2059_v39 = vpop.permute.xlu0 %2058 }
 0xdc0   :  { %v2061_v32 = vmul.f32 %v9642_v47, %v2059_v39 }
 0xdc2   :  { %2772 = vrot.lane.b32.xlu1 %v2061_v32, %s9027_s14  ;;  %v9863_v32 = vld [vmem:[%s10655_s6] ss:$0 sm:$0xff] }
 0xdc7   :  { %v2230_v48 = vpop.permute.xlu1 %2229 }
 0xdc8   :  { %v2232_v40 = vmul.f32 %v9652_v59, %v2230_v48  ;;  %v9739_v59 = vpop.f32.mrf.mxu1 }
 0xdca   :  { %2946 = vrot.lane.b32.xlu0 %v2232_v40, %s9027_s14  ;;  %v8063_v29 = vpop.f32.mrf.mxu1 }
 0xdd1   :  { %v2401_v44 = vpop.permute.xlu0 %2400 }
 0xdd2   :  { %v2403_v45 = vmul.f32 %v9656_v8, %v2401_v44  ;;  %v9742_v8 = vld [vmem:[#allocation8 + $0x18] sm:$0xff] }
 0xdd4   :  { %3117 = vrot.lane.b32.xlu1 %v2403_v45, %s9027_s14 }
 0xddc   :  { %v2572_v7 = vpop.permute.xlu1 %2571 }
 0xddd   :  { %v2574_v58 = vmul.f32 %v9660_v3, %v2572_v7  ;;  %v9748_v3 = vld [vmem:[#allocation8 + $0x10] sm:$0xff] }
 0xddf   :  { %3288 = vrot.lane.b32.xlu0 %v2574_v58, %s9027_s14 }
 0xde5   :  { %v2748_v11 = vpop.permute.xlu0 %2747 }
 0xde6   :  { %v9735_v47 = vmul.f32 %v9664_v36, %v2748_v11  ;;  %v9752_v36 = vld [vmem:[#allocation8 + $0x8] sm:$0xff] }
 0xde8   :  { %3459 = vrot.lane.b32.xlu1 %v9735_v47, %s9027_s14 }
 0xe34   :  { %v2773_v49 = vpop.permute.xlu1 %2772 }
 0xe35   :  { %8057 = vmatmul.mubr.msk.f32.vlgmr.msra.gmra.mxu0 %vm145_vm2, %v2773_v49 }
 0xe36   :  { %8076 = vmatpush3.msra.mxu0 %v9742_v8  ;;  %8083 = vmatprep.mubr.msk.f32.mxu0 %vm9025_vm0, %v9024_v1 }
 0xe37   :  { %8077 = vmatprep.subr.mxu0 %v9024_v1 }
 0xe38   :  { %8078 = vmatpush3.msra.mxu0 %v9748_v3 }
 0xe39   :  { %8079 = vmatprep.subr.mxu0 %v9024_v1 }
 0xe3a   :  { %8080 = vmatpush3.msra.mxu0 %v9752_v36 }
 0xe3b   :  { %8081 = vmatprep.subr.mxu0 %v9024_v1 }
 0xe3c   :  { %8082 = vmatpush3.msra.mxu0 %v9756_v52  ;;  %v2947_v55 = vpop.permute.xlu0 %2946 }
 0xe3d   :  { %8073 = vmatmul.mubr.msk.f32.vlgmr.msra.gmra.mxu1 %vm145_vm2, %v2947_v55  ;;  %8084 = vmatmul.mubr.msk.f32.vlgmr.msra.gmra.mxu0 %vm145_vm2, %v2773_v49  ;;  %v9869_v49 = vld [vmem:[%s10655_s6 + $0x1] ss:$0 sm:$0xff] }
 0xe3e   :  { %8097 = vmatprep.subr.mxu0 %v9024_v1  ;;  %8087 = vmatpush3.msra.mxu1 %v9762_v10 }
 0xe3f   :  { %8098 = vmatpush3.msra.mxu0 %v9765_v13  ;;  %8088 = vmatprep.subr.mxu1 %v9024_v1 }
 0xe40   :  { %8099 = vmatprep.subr.mxu0 %v9024_v1  ;;  %8089 = vmatpush3.msra.mxu1 %v9770_v61 }
 0xe41   :  { %8100 = vmatpush3.msra.mxu0 %v9773_v62  ;;  %8090 = vmatprep.subr.mxu1 %v9024_v1 }
 0xe42   :  { %8101 = vmatprep.subr.mxu0 %v9024_v1  ;;  %8091 = vmatpush3.msra.mxu1 %v9778_v0 }
 0xe43   :  { %8102 = vmatpush3.msra.mxu0 %v9781_v63  ;;  %8092 = vmatprep.subr.mxu1 %v9024_v1 }
 0xe44   :  { %8103 = vmatprep.subr.mxu0 %v9024_v1  ;;  %8105 = vmatprep.mubr.msk.f32.mxu0 %vm9025_vm0, %v9024_v1 }
 0xe45   :  { %8104 = vmatpush3.msra.mxu0 %v9788_v9  ;;  %8093 = vmatpush3.msra.mxu1 %v9791_v50 }
 0xe46   :  { %v3118_v12 = vpop.permute.xlu1 %3117  ;;  %8094 = vmatprep.mubr.msk.f32.mxu1 %vm9025_vm0, %v9024_v1  ;;  %8106 = vmatmul.mubr.msk.f32.vlgmr.msra.gmra.mxu0 %vm145_vm2, %v2947_v55 }
 0xe47   :  { %8095 = vmatmul.mubr.msk.f32.vlgmr.msra.gmra.mxu1 %vm145_vm2, %v3118_v12  ;;  %8108 = vmatprep.subr.mxu1 %v9024_v1 }
 0xe48   :  { %8119 = vmatprep.subr.mxu0 %v9024_v1  ;;  %8109 = vmatpush3.msra.mxu1 %v9389_v14 }
 0xe49   :  { %8120 = vmatpush3.msra.mxu0 %v9394_v17  ;;  %8110 = vmatprep.subr.mxu1 %v9024_v1 }
 0xe4a   :  { %8121 = vmatprep.subr.mxu0 %v9024_v1  ;;  %8111 = vmatpush3.msra.mxu1 %v9398_v18 }
 0xe4b   :  { %8122 = vmatpush3.msra.mxu0 %v9402_v19  ;;  %8112 = vmatprep.subr.mxu1 %v9024_v1 }
 0xe4c   :  { %8123 = vmatprep.subr.mxu0 %v9024_v1  ;;  %8113 = vmatpush3.msra.mxu1 %v9406_v20 }
 0xe4d   :  { %8124 = vmatpush3.msra.mxu0 %v9410_v21  ;;  %8114 = vmatprep.subr.mxu1 %v9024_v1 }
 0xe4e   :  { %8125 = vmatprep.subr.mxu0 %v9024_v1  ;;  %8115 = vmatpush3.msra.mxu1 %v9414_v22 }
 0xe4f   :  { %8116 = vmatprep.mubr.msk.f32.mxu1 %vm9025_vm0, %v9024_v1  ;;  %8126 = vmatpush3.msra.mxu0 %v9420_v23 }
 0xe50   :  { %8127 = vmatprep.mubr.msk.f32.mxu0 %vm9025_vm0, %v9024_v1  ;;  %8130 = vmatprep.subr.mxu1 %v9024_v1 }
 0xe51   :  { %v3289_v14 = vpop.permute.xlu0 %3288  ;;  %8128 = vmatmul.mubr.msk.f32.vlgmr.msra.gmra.mxu0 %vm145_vm2, %v3118_v12  ;;  %8141 = vmatprep.subr.mxu0 %v9024_v1 }
 0xe52   :  { %8117 = vmatmul.mubr.msk.f32.vlgmr.msra.gmra.mxu1 %vm145_vm2, %v3289_v14  ;;  %8142 = vmatpush3.msra.mxu0 %v9569_v30 }
 0xe53   :  { %8131 = vmatpush3.msra.mxu1 %v9564_v28  ;;  %8143 = vmatprep.subr.mxu0 %v9024_v1 }
 0xe54   :  { %8132 = vmatprep.subr.mxu1 %v9024_v1  ;;  %8144 = vmatpush3.msra.mxu0 %v9577_v33 }
 0xe55   :  { %8133 = vmatpush3.msra.mxu1 %v9573_v31  ;;  %8145 = vmatprep.subr.mxu0 %v9024_v1 }
 0xe56   :  { %8134 = vmatprep.subr.mxu1 %v9024_v1  ;;  %8146 = vmatpush3.msra.mxu0 %v9585_v35 }
 0xe57   :  { %8135 = vmatpush3.msra.mxu1 %v9581_v34  ;;  %8147 = vmatprep.subr.mxu0 %v9024_v1 }
 0xe58   :  { %8136 = vmatprep.subr.mxu1 %v9024_v1  ;;  %8138 = vmatprep.mubr.msk.f32.mxu1 %vm9025_vm0, %v9024_v1 }
 0xe59   :  { %8137 = vmatpush3.msra.mxu1 %v9589_v37  ;;  %8148 = vmatpush3.msra.mxu0 %v9595_v41 }
 0xe5a   :  { %v3460_v17 = vpop.permute.xlu1 %3459  ;;  %8149 = vmatprep.mubr.msk.f32.mxu0 %vm9025_vm0, %v9024_v1  ;;  %8152 = vmatprep.subr.mxu1 %v9024_v1 }
 0xe5b   :  { %8139 = vmatmul.mubr.msk.f32.vlgmr.msra.gmra.mxu1 %vm145_vm2, %v3460_v17  ;;  %8150 = vmatmul.mubr.msk.f32.vlgmr.msra.gmra.mxu0 %vm145_vm2, %v3289_v14 }
 0xe5c   :  { %8153 = vmatpush3.msra.mxu1 %v9607_v42  ;;  %8163 = vmatprep.subr.mxu0 %v9024_v1 }
 0xe5d   :  { %8154 = vmatprep.subr.mxu1 %v9024_v1  ;;  %8164 = vmatpush3.msra.mxu0 %v9612_v43 }
 0xe5e   :  { %8155 = vmatpush3.msra.mxu1 %v9615_v4  ;;  %8165 = vmatprep.mubr.msk.f32.mxu0 %vm9025_vm0, %v9024_v1 }
 0xe5f   :  { %8156 = vmatprep.subr.mxu1 %v9024_v1  ;;  %8160 = vmatprep.mubr.msk.f32.mxu1 %vm9025_vm0, %v9024_v1 }
 0xe60   :  { %8157 = vmatpush3.msra.mxu1 %v9623_v6  ;;  %8168 = vmatprep.subr.mxu0 %v9024_v1 }
 0xe61   :  { %8158 = vmatprep.subr.mxu1 %v9024_v1 }
 0xe62   :  { %8159 = vmatpush3.msra.mxu1 %v9628_v46 }
 0xe63   :  { %8179 = vmatprep.subr.mxu1 %v9024_v1 }
 0xef5   :  { %v2842_v18 = vpop.f32.mrf.mxu0 }
 0xef6   :  { %v2916_v19 = vadd.f32 %v9739_v59, %v2842_v18 }
 0xef7   :  { %v8058_v20 = vpop.f32.mrf.mxu0 }
 0xef8   :  { %v2919_v21 = vadd.f32 %v9636_v54, %v2916_v19 }
 0xefa   :  { %v7273_v22 = vmul.f32 -1.442695, %v2919_v21 }
 0xefc   :  { %8682 = vpow2.f32 %v7273_v22 }
 0xefd   :  { %v3016_v23 = vpop.f32.mrf.mxu1  ;;  %v3086_v53 = vpop.f32.mrf.mxu0 }
 0xefe   :  { %v3087_v24 = vadd.f32 %v3086_v53, %v3016_v23 }
 0xeff   :  { %v8074_v38 = vpop.f32.mrf.mxu1  ;;  %v8085_v39 = vpop.f32.mrf.mxu0 }
 0xf00   :  { %v3090_v48 = vadd.f32 %v9863_v32, %v3087_v24 }
 0xf02   :  { %v7277_v40 = vmul.f32 -1.442695, %v3090_v48 }
 0xf04   :  { %8684 = vpow2.f32 %v7277_v40 }
 0xf06   :  { %v3257_v44 = vpop.f32.mrf.mxu0 }
 0xf07   :  { %v3187_v45 = vpop.f32.mrf.mxu1 }
 0xf08   :  { %v3258_v7 = vadd.f32 %v3257_v44, %v3187_v45  ;;  %v8107_v58 = vpop.f32.mrf.mxu0 }
 0xf09   :  { %v8683_v11 = vpop.eup %8682  ;;  %v8096_v59 = vpop.f32.mrf.mxu1 }
 0xf0a   :  { %v2923_v29 = vadd.f32 1.0, %v8683_v11  ;;  %v3261_v55 = vadd.f32 %v9869_v49, %v3258_v7 }
 0xf0c   :  { %8686 = vrcp.f32 %v2923_v29  ;;  %v7281_v12 = vmul.f32 -1.442695, %v3261_v55 }
 0xf0e   :  { %8688 = vpow2.f32 %v7281_v12 }
 0xf11   :  { %v8685_v14 = vpop.eup %8684  ;;  %v3428_v18 = vpop.f32.mrf.mxu0 }
 0xf12   :  { %v3358_v17 = vpop.f32.mrf.mxu1  ;;  %v3094_v19 = vadd.f32 1.0, %v8685_v14 }
 0xf13   :  { %v3429_v20 = vadd.f32 %v3428_v18, %v3358_v17  ;;  %v8129_v22 = vpop.f32.mrf.mxu0 }
 0xf14   :  { %v8118_v21 = vpop.f32.mrf.mxu1  ;;  %8690 = vrcp.f32 %v3094_v19 }
 0xf15   :  { %v3432_v23 = vadd.f32 %v9454_v60, %v3429_v20 }
 0xf17   :  { %v7285_v53 = vmul.f32 -1.442695, %v3432_v23 }
 0xf19   :  { %8692 = vpow2.f32 %v7285_v53  ;;  %v9873_v24 = vpop.eup %8686 }
 0xf1a   :  { %v2926_v38 = vmul.f32 2.0, %v9873_v24 }
 0xf1b   :  { %v8689_v39 = vpop.eup %8688  ;;  %v3529_v48 = vpop.f32.mrf.mxu1 }
 0xf1c   :  { %v3599_v40 = vpop.f32.mrf.mxu0  ;;  %v3265_v44 = vadd.f32 1.0, %v8689_v39  ;;  %v7274_v7 = vadd.f32 -1.0, %v2926_v38 }
 0xf1d   :  { %v3600_v45 = vadd.f32 %v3599_v40, %v3529_v48  ;;  %v8140_v58 = vpop.f32.mrf.mxu1 }
 0xf1e   :  { %v8151_v11 = vpop.f32.mrf.mxu0  ;;  %8694 = vrcp.f32 %v3265_v44  ;;  %2930 = vrot.lane.b32.xlu0 %v7274_v7, %s9026_s13 }
 0xf1f   :  { %v3603_v59 = vadd.f32 %v9648_v27, %v3600_v45 }
 0xf21   :  { %v7289_v60 = vmul.f32 -1.442695, %v3603_v59  ;;  %v9878_v29 = vpop.eup %8690 }
 0xf22   :  { %v3097_v55 = vmul.f32 2.0, %v9878_v29 }
 0xf23   :  { %8696 = vpow2.f32 %v7289_v60 }
 0xf24   :  { %v7278_v12 = vadd.f32 -1.0, %v3097_v55 }
 0xf26   :  { %v8693_v14 = vpop.eup %8692  ;;  %3101 = vrot.lane.b32.xlu1 %v7278_v12, %s9026_s13 }
 0xf27   :  { %v3436_v17 = vadd.f32 1.0, %v8693_v14 }
 0xf29   :  { %8698 = vrcp.f32 %v3436_v17  ;;  %v2928_v17 = vmul.f32 %v9873_v24, %v9680_v51 }
 0xf2b   :  { %v9882_v18 = vpop.eup %8694 }
 0xf2c   :  { %v3268_v19 = vmul.f32 2.0, %v9882_v18 }
 0xf2e   :  { %v7282_v20 = vadd.f32 -1.0, %v3268_v19 }
 0xf30   :  { %v8697_v21 = vpop.eup %8696  ;;  %3272 = vrot.lane.b32.xlu0 %v7282_v20, %s9026_s13 }
 0xf31   :  { %v3607_v22 = vadd.f32 1.0, %v8697_v21  ;;  %v3099_v21 = vmul.f32 %v9878_v29, %v9685_v56 }
 0xf33   :  { %8700 = vrcp.f32 %v3607_v22 }
 0xf36   :  { %v9886_v23 = vpop.eup %8698 }
 0xf37   :  { %v3439_v53 = vmul.f32 2.0, %v9886_v23  ;;  %v3441_v56 = vmul.f32 %v9886_v23, %v9697_v5 }
 0xf39   :  { %v7286_v38 = vadd.f32 -1.0, %v3439_v53 }
 0xf3b   :  { %3443 = vrot.lane.b32.xlu1 %v7286_v38, %s9026_s13 }
 0xf40   :  { %v9890_v39 = vpop.eup %8700 }
 0xf41   :  { %v3610_v48 = vmul.f32 2.0, %v9890_v39 }
 0xf43   :  { %v7290_v40 = vadd.f32 -1.0, %v3610_v48  ;;  %v3270_v48 = vmul.f32 %v9882_v18, %v9691_v16  ;;  %v3612_v16 = vmul.f32 %v9890_v39, %v9702_v15 }
 0xf45   :  { %3614 = vrot.lane.b32.xlu0 %v7290_v40, %s9026_s13 }
 0xf90   :  { %v2931_v44 = vpop.permute.xlu0 %2930 }
 0xf91   :  { %v2933_v45 = vmul.f32 %v9873_v24, %v2931_v44 }
 0xf93   :  { %2935 = vrot.lane.b32.xlu1 %v2933_v45, %s9027_s14 }
 0xf98   :  { %v3102_v7 = vpop.permute.xlu1 %3101 }
 0xf99   :  { %v3104_v58 = vmul.f32 %v9878_v29, %v3102_v7 }
 0xf9b   :  { %3106 = vrot.lane.b32.xlu0 %v3104_v58, %s9027_s14 }
 0xfa2   :  { %v3273_v11 = vpop.permute.xlu0 %3272 }
 0xfa3   :  { %v3275_v59 = vmul.f32 %v9882_v18, %v3273_v11 }
 0xfa5   :  { %3277 = vrot.lane.b32.xlu1 %v3275_v59, %s9027_s14 }
 0xfad   :  { %v3444_v60 = vpop.permute.xlu1 %3443 }
 0xfae   :  { %v3446_v55 = vmul.f32 %v9886_v23, %v3444_v60 }
 0xfb0   :  { %3448 = vrot.lane.b32.xlu0 %v3446_v55, %s9027_s14  ;;  %v3644_v55 = vld [vmem:[#allocation3 + $0x30] sm:$0xff] }
 0xfb1   :  { %8166 = vmatmul.mubr.msk.f32.vlgmr.msra.gmra.mxu0 %vm219_vm1, %v3644_v55  ;;  %v10024_v55 = vld [vmem:[#allocation8 + $0x40] sm:$0xff] }
 0xfb2   :  { %8169 = vmatpush3.msra.mxu0 %v9707_v2  ;;  %8176 = vmatprep.mubr.msk.f32.mxu0 %vm9025_vm0, %v9024_v1 }
 0xfb3   :  { %8170 = vmatprep.subr.mxu0 %v9024_v1 }
 0xfb4   :  { %8171 = vmatpush3.msra.mxu0 %v9713_v57 }
 0xfb5   :  { %8172 = vmatprep.subr.mxu0 %v9024_v1 }
 0xfb6   :  { %8173 = vmatpush3.msra.mxu0 %v9717_v25 }
 0xfb7   :  { %v3615_v12 = vpop.permute.xlu0 %3614  ;;  %8174 = vmatprep.subr.mxu0 %v9024_v1 }
 0xfb8   :  { %v3617_v14 = vmul.f32 %v9890_v39, %v3615_v12  ;;  %8175 = vmatpush3.msra.mxu0 %v9721_v26 }
 0xfb9   :  { %8190 = vmatprep.subr.mxu0 %v9024_v1 }
 0xfba   :  { %3619 = vrot.lane.b32.xlu1 %v3617_v14, %s9027_s14 }
0x1005   :  { %v2936_v19 = vpop.permute.xlu1 %2935 }
0x1006   :  { %v9906_v20 = vadd.f32 %v2936_v19, %v2928_v17 }
0x1008   :  { %8702 = vtanh.f32 %v9906_v20 }
0x100d   :  { %v3107_v22 = vpop.permute.xlu0 %3106 }
0x100e   :  { %v9911_v53 = vadd.f32 %v3107_v22, %v3099_v21 }
0x1010   :  { %8704 = vtanh.f32 %v9911_v53 }
0x1015   :  { %v8703_v38 = vpop.eup %8702 }
0x1016   :  { %2941 = vrot.lane.b32.xlu0 %v8703_v38, %s9026_s13 }
0x1017   :  { %v3278_v51 = vpop.permute.xlu1 %3277 }
0x1018   :  { %v9917_v40 = vadd.f32 %v3278_v51, %v3270_v48 }
0x101a   :  { %8706 = vtanh.f32 %v9917_v40 }
0x101d   :  { %v8705_v44 = vpop.eup %8704 }
0x101e   :  { %3112 = vrot.lane.b32.xlu1 %v8705_v44, %s9026_s13 }
0x1022   :  { %v3449_v45 = vpop.permute.xlu0 %3448 }
0x1023   :  { %v9923_v7 = vadd.f32 %v3449_v45, %v3441_v56  ;;  %v9998_v56 = vld [vmem:[#allocation8 + $0x58] sm:$0xff]  ;;  %v10003_v45 = vld [vmem:[#allocation10 + $0x50] sm:$0xff] }
0x1025   :  { %8708 = vtanh.f32 %v9923_v7 }
0x1027   :  { %v8707_v58 = vpop.eup %8706 }
0x1028   :  { %3283 = vrot.lane.b32.xlu0 %v8707_v58, %s9026_s13  ;;  %v10006_v58 = vld [vmem:[#allocation8 + $0x50] sm:$0xff] }
0x102c   :  { %v3620_v11 = vpop.permute.xlu1 %3619 }
0x102d   :  { %v9929_v59 = vadd.f32 %v3620_v11, %v3612_v16  ;;  %v10011_v16 = vld [vmem:[#allocation10 + $0x48] sm:$0xff] }
0x102e   :  { %v10014_v11 = vld [vmem:[#allocation8 + $0x48] sm:$0xff] }
0x102f   :  { %8710 = vtanh.f32 %v9929_v59 }
0x1032   :  { %v8709_v60 = vpop.eup %8708 }
0x1033   :  { %3454 = vrot.lane.b32.xlu1 %v8709_v60, %s9026_s13  ;;  %v10019_v60 = vld [vmem:[#allocation10 + $0x40] sm:$0xff] }
0x103c   :  { %v8711_v5 = vpop.eup %8710 }
0x103d   :  { %3625 = vrot.lane.b32.xlu0 %v8711_v5, %s9026_s13 }
0x1088   :  { %v2942_v15 = vpop.permute.xlu0 %2941 }
0x1089   :  { %v2944_v12 = vmul.f32 %v9873_v24, %v2942_v15 }
0x108b   :  { %3646 = vrot.lane.b32.xlu1 %v2944_v12, %s9027_s14 }
0x1090   :  { %v3113_v14 = vpop.permute.xlu1 %3112 }
0x1091   :  { %v3115_v17 = vmul.f32 %v9878_v29, %v3113_v14  ;;  %v9958_v29 = vpop.f32.mrf.mxu0 }
0x1093   :  { %3820 = vrot.lane.b32.xlu0 %v3115_v17, %s9027_s14  ;;  %v8167_v51 = vpop.f32.mrf.mxu0 }
0x109a   :  { %v3284_v19 = vpop.permute.xlu0 %3283 }
0x109b   :  { %v3286_v21 = vmul.f32 %v9882_v18, %v3284_v19 }
0x109d   :  { %3991 = vrot.lane.b32.xlu1 %v3286_v21, %s9027_s14 }
0x10a5   :  { %v3455_v22 = vpop.permute.xlu1 %3454 }
0x10a6   :  { %v3457_v38 = vmul.f32 %v9886_v23, %v3455_v22 }
0x10a8   :  { %4162 = vrot.lane.b32.xlu0 %v3457_v38, %s9027_s14 }
0x10af   :  { %v3626_v48 = vpop.permute.xlu0 %3625 }
0x10b0   :  { %v9954_v24 = vmul.f32 %v9890_v39, %v3626_v48  ;;  %v9995_v39 = vld [vmem:[#allocation10 + $0x58] sm:$0xff] }
0x10b2   :  { %4333 = vrot.lane.b32.xlu1 %v9954_v24, %s9027_s14 }
0x10fd   :  { %v3647_v44 = vpop.permute.xlu1 %3646 }
0x10fe   :  { %8161 = vmatmul.mubr.msk.f32.vlgmr.msra.gmra.mxu1 %vm145_vm2, %v3647_v44 }
0x10ff   :  { %8180 = vmatpush3.msra.mxu1 %v9742_v8  ;;  %8187 = vmatprep.mubr.msk.f32.mxu1 %vm9025_vm0, %v9024_v1 }
0x1100   :  { %8181 = vmatprep.subr.mxu1 %v9024_v1 }
0x1101   :  { %8182 = vmatpush3.msra.mxu1 %v9748_v3 }
0x1102   :  { %8183 = vmatprep.subr.mxu1 %v9024_v1 }
0x1103   :  { %8184 = vmatpush3.msra.mxu1 %v9752_v36 }
0x1104   :  { %8185 = vmatprep.subr.mxu1 %v9024_v1 }
0x1105   :  { %8186 = vmatpush3.msra.mxu1 %v9756_v52  ;;  %v3821_v18 = vpop.permute.xlu0 %3820 }
0x1106   :  { %8177 = vmatmul.mubr.msk.f32.vlgmr.msra.gmra.mxu0 %vm145_vm2, %v3821_v18  ;;  %8188 = vmatmul.mubr.msk.f32.vlgmr.msra.gmra.mxu1 %vm145_vm2, %v3647_v44 }
0x1107   :  { %8201 = vmatprep.subr.mxu1 %v9024_v1  ;;  %8191 = vmatpush3.msra.mxu0 %v9762_v10 }
0x1108   :  { %8202 = vmatpush3.msra.mxu1 %v9765_v13  ;;  %8192 = vmatprep.subr.mxu0 %v9024_v1 }
0x1109   :  { %8203 = vmatprep.subr.mxu1 %v9024_v1  ;;  %8193 = vmatpush3.msra.mxu0 %v9770_v61 }
0x110a   :  { %8204 = vmatpush3.msra.mxu1 %v9773_v62  ;;  %8194 = vmatprep.subr.mxu0 %v9024_v1 }
0x110b   :  { %8205 = vmatprep.subr.mxu1 %v9024_v1  ;;  %8195 = vmatpush3.msra.mxu0 %v9778_v0 }
0x110c   :  { %8206 = vmatpush3.msra.mxu1 %v9781_v63  ;;  %8196 = vmatprep.subr.mxu0 %v9024_v1 }
0x110d   :  { %8207 = vmatprep.subr.mxu1 %v9024_v1  ;;  %8209 = vmatprep.mubr.msk.f32.mxu1 %vm9025_vm0, %v9024_v1 }
0x110e   :  { %8208 = vmatpush3.msra.mxu1 %v9788_v9  ;;  %8197 = vmatpush3.msra.mxu0 %v9791_v50 }
0x110f   :  { %v3992_v23 = vpop.permute.xlu1 %3991  ;;  %8198 = vmatprep.mubr.msk.f32.mxu0 %vm9025_vm0, %v9024_v1  ;;  %8210 = vmatmul.mubr.msk.f32.vlgmr.msra.gmra.mxu1 %vm145_vm2, %v3821_v18 }
0x1110   :  { %8199 = vmatmul.mubr.msk.f32.vlgmr.msra.gmra.mxu0 %vm145_vm2, %v3992_v23  ;;  %8212 = vmatprep.subr.mxu0 %v9024_v1 }
0x1111   :  { %8223 = vmatprep.subr.mxu1 %v9024_v1  ;;  %8213 = vmatpush3.msra.mxu0 %v9995_v39 }
0x1112   :  { %8224 = vmatpush3.msra.mxu1 %v9998_v56  ;;  %8214 = vmatprep.subr.mxu0 %v9024_v1 }
0x1113   :  { %8225 = vmatprep.subr.mxu1 %v9024_v1  ;;  %8215 = vmatpush3.msra.mxu0 %v10003_v45 }
0x1114   :  { %8226 = vmatpush3.msra.mxu1 %v10006_v58  ;;  %8216 = vmatprep.subr.mxu0 %v9024_v1 }
0x1115   :  { %8227 = vmatprep.subr.mxu1 %v9024_v1  ;;  %8217 = vmatpush3.msra.mxu0 %v10011_v16 }
0x1116   :  { %8228 = vmatpush3.msra.mxu1 %v10014_v11  ;;  %8218 = vmatprep.subr.mxu0 %v9024_v1 }
0x1117   :  { %8229 = vmatprep.subr.mxu1 %v9024_v1  ;;  %8219 = vmatpush3.msra.mxu0 %v10019_v60 }
0x1118   :  { %8220 = vmatprep.mubr.msk.f32.mxu0 %vm9025_vm0, %v9024_v1  ;;  %8230 = vmatpush3.msra.mxu1 %v10024_v55 }
0x1119   :  { %8231 = vmatprep.mubr.msk.f32.mxu1 %vm9025_vm0, %v9024_v1  ;;  %8234 = vmatprep.subr.mxu0 %v9024_v1 }
0x111a   :  { %v4163_v5 = vpop.permute.xlu0 %4162  ;;  %8232 = vmatmul.mubr.msk.f32.vlgmr.msra.gmra.mxu1 %vm145_vm2, %v3992_v23  ;;  %8245 = vmatprep.subr.mxu1 %v9024_v1 }
0x111b   :  { %8221 = vmatmul.mubr.msk.f32.vlgmr.msra.gmra.mxu0 %vm145_vm2, %v4163_v5  ;;  %8246 = vmatpush3.msra.mxu1 %v9569_v30 }
0x111c   :  { %8235 = vmatpush3.msra.mxu0 %v9564_v28  ;;  %8247 = vmatprep.subr.mxu1 %v9024_v1 }
0x111d   :  { %8236 = vmatprep.subr.mxu0 %v9024_v1  ;;  %8248 = vmatpush3.msra.mxu1 %v9577_v33 }
0x111e   :  { %8237 = vmatpush3.msra.mxu0 %v9573_v31  ;;  %8249 = vmatprep.subr.mxu1 %v9024_v1 }
0x111f   :  { %8238 = vmatprep.subr.mxu0 %v9024_v1  ;;  %8250 = vmatpush3.msra.mxu1 %v9585_v35 }
0x1120   :  { %8239 = vmatpush3.msra.mxu0 %v9581_v34  ;;  %8251 = vmatprep.subr.mxu1 %v9024_v1 }
0x1121   :  { %8240 = vmatprep.subr.mxu0 %v9024_v1  ;;  %8242 = vmatprep.mubr.msk.f32.mxu0 %vm9025_vm0, %v9024_v1 }
0x1122   :  { %8241 = vmatpush3.msra.mxu0 %v9589_v37  ;;  %8252 = vmatpush3.msra.mxu1 %v9595_v41 }
0x1123   :  { %8253 = vmatprep.mubr.msk.f32.mxu1 %vm9025_vm0, %v9024_v1  ;;  %8256 = vmatprep.subr.mxu0 %v9024_v1 }
0x1124   :  { %v4334_v28 = vpop.permute.xlu1 %4333  ;;  %8254 = vmatmul.mubr.msk.f32.vlgmr.msra.gmra.mxu1 %vm145_vm2, %v4163_v5  ;;  %8267 = vmatprep.subr.mxu1 %v9024_v1 }
0x1125   :  { %8243 = vmatmul.mubr.msk.f32.vlgmr.msra.gmra.mxu0 %vm145_vm2, %v4334_v28  ;;  %8268 = vmatpush3.msra.mxu1 %v9612_v43  ;;  %v10076_v28 = vld [vmem:[%s10655_s6 + $0x2] ss:$0 sm:$0xff] }
0x1126   :  { %8257 = vmatpush3.msra.mxu0 %v9607_v42  ;;  %8269 = vmatprep.mubr.msk.f32.mxu1 %vm9025_vm0, %v9024_v1 }
0x1127   :  { %8258 = vmatprep.subr.mxu0 %v9024_v1  ;;  %8264 = vmatprep.mubr.msk.f32.mxu0 %vm9025_vm0, %v9024_v1 }
0x1128   :  { %8259 = vmatpush3.msra.mxu0 %v9615_v4  ;;  %8272 = vmatprep.subr.mxu1 %v9024_v1 }
0x1129   :  { %8260 = vmatprep.subr.mxu0 %v9024_v1 }
0x112a   :  { %8261 = vmatpush3.msra.mxu0 %v9623_v6 }
0x112b   :  { %8262 = vmatprep.subr.mxu0 %v9024_v1 }
0x112c   :  { %8263 = vmatpush3.msra.mxu0 %v9628_v46 }
0x112d   :  { %8283 = vmatprep.subr.mxu0 %v9024_v1 }
0x11be   :  { %v3716_v30 = vpop.f32.mrf.mxu1 }
0x11bf   :  { %v3790_v31 = vadd.f32 %v9958_v29, %v3716_v30 }
0x11c0   :  { %v8162_v33 = vpop.f32.mrf.mxu1 }
0x11c1   :  { %v3793_v34 = vadd.f32 %v9636_v54, %v3790_v31 }
0x11c3   :  { %v7293_v35 = vmul.f32 -1.442695, %v3793_v34 }
0x11c5   :  { %8712 = vpow2.f32 %v7293_v35 }
0x11c6   :  { %v3890_v37 = vpop.f32.mrf.mxu0  ;;  %v3960_v41 = vpop.f32.mrf.mxu1 }
0x11c7   :  { %v3961_v42 = vadd.f32 %v3960_v41, %v3890_v37 }
0x11c8   :  { %v8178_v43 = vpop.f32.mrf.mxu0  ;;  %v8189_v4 = vpop.f32.mrf.mxu1 }
0x11c9   :  { %v3964_v6 = vadd.f32 %v9863_v32, %v3961_v42 }
0x11cb   :  { %v7297_v15 = vmul.f32 -1.442695, %v3964_v6 }
0x11cd   :  { %8714 = vpow2.f32 %v7297_v15 }
0x11cf   :  { %v4131_v46 = vpop.f32.mrf.mxu1 }
0x11d0   :  { %v4061_v12 = vpop.f32.mrf.mxu0 }
0x11d1   :  { %v4132_v14 = vadd.f32 %v4131_v46, %v4061_v12  ;;  %v8211_v17 = vpop.f32.mrf.mxu1 }
0x11d2   :  { %v8713_v19 = vpop.eup %8712  ;;  %v8200_v21 = vpop.f32.mrf.mxu0 }
0x11d3   :  { %v3797_v22 = vadd.f32 1.0, %v8713_v19  ;;  %v4135_v54 = vadd.f32 %v9869_v49, %v4132_v14 }
0x11d5   :  { %8716 = vrcp.f32 %v3797_v22  ;;  %v7301_v38 = vmul.f32 -1.442695, %v4135_v54 }
0x11d7   :  { %8718 = vpow2.f32 %v7301_v38 }
0x11da   :  { %v8715_v48 = vpop.eup %8714  ;;  %v4302_v51 = vpop.f32.mrf.mxu1 }
0x11db   :  { %v4232_v29 = vpop.f32.mrf.mxu0  ;;  %v3968_v44 = vadd.f32 1.0, %v8715_v48 }
0x11dc   :  { %v4303_v18 = vadd.f32 %v4302_v51, %v4232_v29  ;;  %v8233_v5 = vpop.f32.mrf.mxu1 }
0x11dd   :  { %v8222_v23 = vpop.f32.mrf.mxu0  ;;  %8720 = vrcp.f32 %v3968_v44 }
0x11de   :  { %v4306_v30 = vadd.f32 %v10076_v28, %v4303_v18 }
0x11e0   :  { %v7305_v31 = vmul.f32 -1.442695, %v4306_v30 }
0x11e2   :  { %8722 = vpow2.f32 %v7305_v31  ;;  %v10079_v33 = vpop.eup %8716 }
0x11e3   :  { %v3800_v34 = vmul.f32 2.0, %v10079_v33 }
0x11e4   :  { %v8719_v35 = vpop.eup %8718  ;;  %v4473_v41 = vpop.f32.mrf.mxu1 }
0x11e5   :  { %v4403_v37 = vpop.f32.mrf.mxu0  ;;  %v4139_v42 = vadd.f32 1.0, %v8719_v35  ;;  %v7294_v4 = vadd.f32 -1.0, %v3800_v34 }
0x11e6   :  { %v4474_v43 = vadd.f32 %v4473_v41, %v4403_v37  ;;  %v8255_v15 = vpop.f32.mrf.mxu1 }
0x11e7   :  { %v8244_v6 = vpop.f32.mrf.mxu0  ;;  %8724 = vrcp.f32 %v4139_v42  ;;  %3804 = vrot.lane.b32.xlu0 %v7294_v4, %s9026_s13 }
0x11e8   :  { %v4477_v46 = vadd.f32 %v9648_v27, %v4474_v43 }
0x11ea   :  { %v7309_v12 = vmul.f32 -1.442695, %v4477_v46  ;;  %v10084_v14 = vpop.eup %8720  ;;  %v3802_v46 = vmul.f32 %v10079_v33, %v9906_v20 }
0x11eb   :  { %v3971_v17 = vmul.f32 2.0, %v10084_v14 }
0x11ec   :  { %8726 = vpow2.f32 %v7309_v12 }
0x11ed   :  { %v7298_v19 = vadd.f32 -1.0, %v3971_v17 }
0x11ef   :  { %v8723_v21 = vpop.eup %8722  ;;  %3975 = vrot.lane.b32.xlu1 %v7298_v19, %s9026_s13  ;;  %v3973_v19 = vmul.f32 %v10084_v14, %v9911_v53 }
0x11f0   :  { %v4310_v22 = vadd.f32 1.0, %v8723_v21 }
0x11f2   :  { %8728 = vrcp.f32 %v4310_v22 }
0x11f4   :  { %v10088_v54 = vpop.eup %8724 }
0x11f5   :  { %v4142_v38 = vmul.f32 2.0, %v10088_v54 }
0x11f7   :  { %v7302_v48 = vadd.f32 -1.0, %v4142_v38 }
0x11f9   :  { %v8727_v27 = vpop.eup %8726  ;;  %4146 = vrot.lane.b32.xlu0 %v7302_v48, %s9026_s13  ;;  %v4144_v48 = vmul.f32 %v10088_v54, %v9917_v40 }
0x11fa   :  { %v4481_v29 = vadd.f32 1.0, %v8727_v27 }
0x11fc   :  { %8730 = vrcp.f32 %v4481_v29 }
0x11ff   :  { %v10092_v51 = vpop.eup %8728 }
0x1200   :  { %v4313_v44 = vmul.f32 2.0, %v10092_v51  ;;  %v4315_v53 = vmul.f32 %v10092_v51, %v9923_v7 }
0x1202   :  { %v7306_v18 = vadd.f32 -1.0, %v4313_v44 }
0x1204   :  { %4317 = vrot.lane.b32.xlu1 %v7306_v18, %s9026_s13 }
0x1209   :  { %v10096_v23 = vpop.eup %8730 }
0x120a   :  { %v4484_v5 = vmul.f32 2.0, %v10096_v23  ;;  %v4486_v40 = vmul.f32 %v10096_v23, %v9929_v59 }
0x120c   :  { %v7310_v30 = vadd.f32 -1.0, %v4484_v5 }
0x120e   :  { %4488 = vrot.lane.b32.xlu0 %v7310_v30, %s9026_s13 }
0x1259   :  { %v3805_v31 = vpop.permute.xlu0 %3804 }
0x125a   :  { %v3807_v34 = vmul.f32 %v10079_v33, %v3805_v31 }
0x125c   :  { %3809 = vrot.lane.b32.xlu1 %v3807_v34, %s9027_s14 }
0x1261   :  { %v3976_v35 = vpop.permute.xlu1 %3975 }
0x1262   :  { %v3978_v37 = vmul.f32 %v10084_v14, %v3976_v35  ;;  %v4518_v35 = vld [vmem:[#allocation3 + $0x38] sm:$0xff] }
0x1263   :  { %8270 = vmatmul.mubr.msk.f32.vlgmr.msra.gmra.mxu1 %vm219_vm1, %v4518_v35 }
0x1264   :  { %3980 = vrot.lane.b32.xlu0 %v3978_v37, %s9027_s14  ;;  %8273 = vmatpush3.msra.mxu1 %v9707_v2 }
0x1265   :  { %8280 = vmatprep.mubr.msk.f32.mxu1 %vm9025_vm0, %v9024_v1  ;;  %8274 = vmatprep.subr.mxu1 %v9024_v1 }
0x1266   :  { %8275 = vmatpush3.msra.mxu1 %v9713_v57 }
0x1267   :  { %8276 = vmatprep.subr.mxu1 %v9024_v1 }
0x1268   :  { %8277 = vmatpush3.msra.mxu1 %v9717_v25 }
0x1269   :  { %8278 = vmatprep.subr.mxu1 %v9024_v1 }
0x126a   :  { %8279 = vmatpush3.msra.mxu1 %v9721_v26 }
0x126b   :  { %v4147_v41 = vpop.permute.xlu0 %4146  ;;  %8294 = vmatprep.subr.mxu1 %v9024_v1 }
0x126c   :  { %v4149_v42 = vmul.f32 %v10088_v54, %v4147_v41 }
0x126e   :  { %4151 = vrot.lane.b32.xlu1 %v4149_v42, %s9027_s14 }
0x1276   :  { %v4318_v43 = vpop.permute.xlu1 %4317 }
0x1277   :  { %v4320_v4 = vmul.f32 %v10092_v51, %v4318_v43 }
0x1279   :  { %4322 = vrot.lane.b32.xlu0 %v4320_v4, %s9027_s14 }
0x1280   :  { %v4489_v6 = vpop.permute.xlu0 %4488 }
0x1281   :  { %v4491_v15 = vmul.f32 %v10096_v23, %v4489_v6 }
0x1283   :  { %4493 = vrot.lane.b32.xlu1 %v4491_v15, %s9027_s14  ;;  %v8876_v15 = vld [vmem:[#allocation8 + $0x8] sm:$0xff] }
0x12ce   :  { %v3810_v12 = vpop.permute.xlu1 %3809 }
0x12cf   :  { %v10112_v17 = vadd.f32 %v3810_v12, %v3802_v46  ;;  %v8877_v46 = vld [vmem:[#allocation10 + $0x10] sm:$0xff]  ;;  %v8878_v12 = vld [vmem:[#allocation8] sm:$0xff] }
0x12d1   :  { %8732 = vtanh.f32 %v10112_v17 }
0x12d6   :  { %v3981_v21 = vpop.permute.xlu0 %3980 }
0x12d7   :  { %v10117_v22 = vadd.f32 %v3981_v21, %v3973_v19  ;;  %v8879_v19 = vld [vmem:[#allocation10 + $0x8] sm:$0xff]  ;;  %v8880_v21 = vld [vmem:[#allocation10] sm:$0xff] }
0x12d9   :  { %8734 = vtanh.f32 %v10117_v22 }
0x12de   :  { %v8733_v38 = vpop.eup %8732 }
0x12df   :  { %3815 = vrot.lane.b32.xlu0 %v8733_v38, %s9026_s13 }
0x12e0   :  { %v4152_v20 = vpop.permute.xlu1 %4151 }
0x12e1   :  { %v10123_v27 = vadd.f32 %v4152_v20, %v4144_v48 }
0x12e3   :  { %8736 = vtanh.f32 %v10123_v27 }
0x12e6   :  { %v8735_v29 = vpop.eup %8734 }
0x12e7   :  { %3986 = vrot.lane.b32.xlu1 %v8735_v29, %s9026_s13  ;;  %v8881_v29 = vld [vmem:[%s10654_s5] ss:$0 sm:$0xff] }
0x12eb   :  { %v4323_v44 = vpop.permute.xlu0 %4322 }
0x12ec   :  { %v10129_v18 = vadd.f32 %v4323_v44, %v4315_v53 }
0x12ee   :  { %8738 = vtanh.f32 %v10129_v18 }
0x12f0   :  { %v8737_v5 = vpop.eup %8736 }
0x12f1   :  { %4157 = vrot.lane.b32.xlu0 %v8737_v5, %s9026_s13 }
0x12f5   :  { %v4494_v30 = vpop.permute.xlu1 %4493 }
0x12f6   :  { %v10135_v31 = vadd.f32 %v4494_v30, %v4486_v40 }
0x12f8   :  { %8740 = vtanh.f32 %v10135_v31 }
0x12fb   :  { %v8739_v34 = vpop.eup %8738 }
0x12fc   :  { %4328 = vrot.lane.b32.xlu1 %v8739_v34, %s9026_s13 }
0x1305   :  { %v8741_v7 = vpop.eup %8740 }
0x1306   :  { %4499 = vrot.lane.b32.xlu0 %v8741_v7, %s9026_s13 }
0x1351   :  { %v3816_v2 = vpop.permute.xlu0 %3815 }
0x1352   :  { %v3818_v59 = vmul.f32 %v10079_v33, %v3816_v2 }
0x1354   :  { %4520 = vrot.lane.b32.xlu1 %v3818_v59, %s9027_s14 }
0x1359   :  { %v3987_v37 = vpop.permute.xlu1 %3986 }
0x135a   :  { %v3989_v57 = vmul.f32 %v10084_v14, %v3987_v37  ;;  %v10164_v14 = vpop.f32.mrf.mxu1 }
0x135c   :  { %4694 = vrot.lane.b32.xlu0 %v3989_v57, %s9027_s14  ;;  %v8271_v4 = vpop.f32.mrf.mxu1 }
0x1363   :  { %v4158_v25 = vpop.permute.xlu0 %4157 }
0x1364   :  { %v4160_v41 = vmul.f32 %v10088_v54, %v4158_v25 }
0x1366   :  { %4865 = vrot.lane.b32.xlu1 %v4160_v41, %s9027_s14 }
0x136e   :  { %v4329_v26 = vpop.permute.xlu1 %4328 }
0x136f   :  { %v4331_v42 = vmul.f32 %v10092_v51, %v4329_v26  ;;  %v8874_v51 = vld [vmem:[#allocation8 + $0x10] sm:$0xff] }
0x1371   :  { %5036 = vrot.lane.b32.xlu0 %v4331_v42, %s9027_s14 }
0x1378   :  { %v4500_v43 = vpop.permute.xlu0 %4499 }
0x1379   :  { %v10160_v33 = vmul.f32 %v10096_v23, %v4500_v43  ;;  %v8875_v23 = vld [vmem:[#allocation10 + $0x18] sm:$0xff] }
0x137b   :  { %5207 = vrot.lane.b32.xlu1 %v10160_v33, %s9027_s14 }
0x13c6   :  { %v4521_v6 = vpop.permute.xlu1 %4520 }
0x13c7   :  { %8265 = vmatmul.mubr.msk.f32.vlgmr.msra.gmra.mxu0 %vm145_vm2, %v4521_v6 }
0x13c8   :  { %8284 = vmatpush3.msra.mxu0 %v9742_v8  ;;  %8291 = vmatprep.mubr.msk.f32.mxu0 %vm9025_vm0, %v9024_v1 }
0x13c9   :  { %8285 = vmatprep.subr.mxu0 %v9024_v1 }
0x13ca   :  { %8286 = vmatpush3.msra.mxu0 %v9748_v3 }
0x13cb   :  { %8287 = vmatprep.subr.mxu0 %v9024_v1 }
0x13cc   :  { %8288 = vmatpush3.msra.mxu0 %v9752_v36  ;;  %v10223_v36 = vld [vmem:[#allocation10 + $0x78] sm:$0xff] }
0x13cd   :  { %8289 = vmatprep.subr.mxu0 %v9024_v1 }
0x13ce   :  { %8290 = vmatpush3.msra.mxu0 %v9756_v52  ;;  %v4695_v54 = vpop.permute.xlu0 %4694  ;;  %v10226_v52 = vld [vmem:[#allocation8 + $0x78] sm:$0xff] }
0x13cf   :  { %8281 = vmatmul.mubr.msk.f32.vlgmr.msra.gmra.mxu1 %vm145_vm2, %v4695_v54  ;;  %8292 = vmatmul.mubr.msk.f32.vlgmr.msra.gmra.mxu0 %vm145_vm2, %v4521_v6 }
0x13d0   :  { %8305 = vmatprep.subr.mxu0 %v9024_v1  ;;  %8295 = vmatpush3.msra.mxu1 %v9762_v10  ;;  %v10231_v10 = vld [vmem:[#allocation10 + $0x70] sm:$0xff] }
0x13d1   :  { %8306 = vmatpush3.msra.mxu0 %v9765_v13  ;;  %8296 = vmatprep.subr.mxu1 %v9024_v1  ;;  %v10234_v13 = vld [vmem:[#allocation8 + $0x70] sm:$0xff] }
0x13d2   :  { %8307 = vmatprep.subr.mxu0 %v9024_v1  ;;  %8297 = vmatpush3.msra.mxu1 %v9770_v61  ;;  %v10239_v61 = vld [vmem:[#allocation10 + $0x68] sm:$0xff] }
0x13d3   :  { %8308 = vmatpush3.msra.mxu0 %v9773_v62  ;;  %8298 = vmatprep.subr.mxu1 %v9024_v1  ;;  %v10242_v62 = vld [vmem:[#allocation8 + $0x68] sm:$0xff] }
0x13d4   :  { %8309 = vmatprep.subr.mxu0 %v9024_v1  ;;  %8299 = vmatpush3.msra.mxu1 %v9778_v0  ;;  %v10247_v0 = vld [vmem:[#allocation10 + $0x60] sm:$0xff] }
0x13d5   :  { %8310 = vmatpush3.msra.mxu0 %v9781_v63  ;;  %8300 = vmatprep.subr.mxu1 %v9024_v1  ;;  %v10252_v63 = vld [vmem:[#allocation8 + $0x60] sm:$0xff] }
0x13d6   :  { %8311 = vmatprep.subr.mxu0 %v9024_v1  ;;  %8313 = vmatprep.mubr.msk.f32.mxu0 %vm9025_vm0, %v9024_v1 }
0x13d7   :  { %8312 = vmatpush3.msra.mxu0 %v9788_v9  ;;  %8301 = vmatpush3.msra.mxu1 %v9791_v50  ;;  %v8873_v50 = vld [vmem:[#allocation8 + $0x18] sm:$0xff] }
0x13d8   :  { %v4866_v8 = vpop.permute.xlu1 %4865  ;;  %8302 = vmatprep.mubr.msk.f32.mxu1 %vm9025_vm0, %v9024_v1  ;;  %8314 = vmatmul.mubr.msk.f32.vlgmr.msra.gmra.mxu0 %vm145_vm2, %v4695_v54 }
0x13d9   :  { %8303 = vmatmul.mubr.msk.f32.vlgmr.msra.gmra.mxu1 %vm145_vm2, %v4866_v8  ;;  %8316 = vmatprep.subr.mxu1 %v9024_v1 }
0x13da   :  { %8327 = vmatprep.subr.mxu0 %v9024_v1  ;;  %8317 = vmatpush3.msra.mxu1 %v9995_v39 }
0x13db   :  { %8328 = vmatpush3.msra.mxu0 %v9998_v56  ;;  %8318 = vmatprep.subr.mxu1 %v9024_v1 }
0x13dc   :  { %8329 = vmatprep.subr.mxu0 %v9024_v1  ;;  %8319 = vmatpush3.msra.mxu1 %v10003_v45 }
0x13dd   :  { %8330 = vmatpush3.msra.mxu0 %v10006_v58  ;;  %8320 = vmatprep.subr.mxu1 %v9024_v1 }
0x13de   :  { %8331 = vmatprep.subr.mxu0 %v9024_v1  ;;  %8321 = vmatpush3.msra.mxu1 %v10011_v16 }
0x13df   :  { %8332 = vmatpush3.msra.mxu0 %v10014_v11  ;;  %8322 = vmatprep.subr.mxu1 %v9024_v1 }
0x13e0   :  { %8333 = vmatprep.subr.mxu0 %v9024_v1  ;;  %8323 = vmatpush3.msra.mxu1 %v10019_v60 }
0x13e1   :  { %8324 = vmatprep.mubr.msk.f32.mxu1 %vm9025_vm0, %v9024_v1  ;;  %8334 = vmatpush3.msra.mxu0 %v10024_v55 }
0x13e2   :  { %8335 = vmatprep.mubr.msk.f32.mxu0 %vm9025_vm0, %v9024_v1  ;;  %8338 = vmatprep.subr.mxu1 %v9024_v1 }
0x13e3   :  { %v5037_v3 = vpop.permute.xlu0 %5036  ;;  %8336 = vmatmul.mubr.msk.f32.vlgmr.msra.gmra.mxu0 %vm145_vm2, %v4866_v8  ;;  %8349 = vmatprep.subr.mxu0 %v9024_v1 }
0x13e4   :  { %8325 = vmatmul.mubr.msk.f32.vlgmr.msra.gmra.mxu1 %vm145_vm2, %v5037_v3  ;;  %8350 = vmatpush3.msra.mxu0 %v10226_v52 }
0x13e5   :  { %8339 = vmatpush3.msra.mxu1 %v10223_v36  ;;  %8351 = vmatprep.subr.mxu0 %v9024_v1 }
0x13e6   :  { %8340 = vmatprep.subr.mxu1 %v9024_v1  ;;  %8352 = vmatpush3.msra.mxu0 %v10234_v13 }
0x13e7   :  { %8341 = vmatpush3.msra.mxu1 %v10231_v10  ;;  %8353 = vmatprep.subr.mxu0 %v9024_v1 }
0x13e8   :  { %8342 = vmatprep.subr.mxu1 %v9024_v1  ;;  %8354 = vmatpush3.msra.mxu0 %v10242_v62 }
0x13e9   :  { %8343 = vmatpush3.msra.mxu1 %v10239_v61  ;;  %8355 = vmatprep.subr.mxu0 %v9024_v1 }
0x13ea   :  { %8344 = vmatprep.subr.mxu1 %v9024_v1  ;;  %8346 = vmatprep.mubr.msk.f32.mxu1 %vm9025_vm0, %v9024_v1 }
0x13eb   :  { %8345 = vmatpush3.msra.mxu1 %v10247_v0  ;;  %8356 = vmatpush3.msra.mxu0 %v10252_v63 }
0x13ec   :  { %8357 = vmatprep.mubr.msk.f32.mxu0 %vm9025_vm0, %v9024_v1  ;;  %8371 = vmatprep.subr.mxu0 %v9024_v1 }
0x13ed   :  { %v5208_v9 = vpop.permute.xlu1 %5207  ;;  %8358 = vmatmul.mubr.msk.f32.vlgmr.msra.gmra.mxu0 %vm145_vm2, %v5037_v3  ;;  %8360 = vmatprep.subr.mxu1 %v9024_v1 }
0x13ee   :  { %8347 = vmatmul.mubr.msk.f32.vlgmr.msra.gmra.mxu1 %vm145_vm2, %v5208_v9  ;;  %8372 = vmatpush3.msra.mxu0 %v8873_v50 }
0x13ef   :  { %8373 = vmatprep.subr.mxu0 %v9024_v1  ;;  %8379 = vmatprep.mubr.msk.f32.mxu0 %vm9025_vm0, %v9024_v1 }
0x13f0   :  { %8374 = vmatpush3.msra.mxu0 %v8874_v51  ;;  %8361 = vmatpush3.msra.mxu1 %v8875_v23 }
0x13f1   :  { %8375 = vmatprep.subr.mxu0 %v9024_v1  ;;  %8362 = vmatprep.subr.mxu1 %v9024_v1 }
0x13f2   :  { %8376 = vmatpush3.msra.mxu0 %v8876_v15  ;;  %8363 = vmatpush3.msra.mxu1 %v8877_v46 }
0x13f3   :  { %8377 = vmatprep.subr.mxu0 %v9024_v1  ;;  %8364 = vmatprep.subr.mxu1 %v9024_v1 }
0x13f4   :  { %8378 = vmatpush3.msra.mxu0 %v8878_v12  ;;  %8365 = vmatpush3.msra.mxu1 %v8879_v19 }
0x13f5   :  { %8393 = vmatprep.subr.mxu0 %v9024_v1  ;;  %8366 = vmatprep.subr.mxu1 %v9024_v1 }
0x13f6   :  { %8367 = vmatpush3.msra.mxu1 %v8880_v21  ;;  %8368 = vmatprep.mubr.msk.f32.mxu1 %vm9025_vm0, %v9024_v1 }
0x13f7   :  { %8382 = vmatprep.subr.mxu1 %v9024_v1 }
0x1487   :  { %v4590_v38 = vpop.f32.mrf.mxu0 }
0x1488   :  { %v4664_v48 = vadd.f32 %v10164_v14, %v4590_v38 }
0x1489   :  { %v8266_v20 = vpop.f32.mrf.mxu0 }
0x148a   :  { %v4667_v53 = vadd.f32 %v8881_v29, %v4664_v48  ;;  %v10286_v29 = vld [vmem:[%s10655_s6 + $0x3] ss:$0 sm:$0xff] }
0x148c   :  { %v7313_v44 = vmul.f32 -1.442695, %v4667_v53 }
0x148e   :  { %8742 = vpow2.f32 %v7313_v44 }
0x148f   :  { %v4764_v5 = vpop.f32.mrf.mxu1  ;;  %v4834_v40 = vpop.f32.mrf.mxu0 }
0x1490   :  { %v4835_v30 = vadd.f32 %v4834_v40, %v4764_v5 }
0x1491   :  { %v8282_v34 = vpop.f32.mrf.mxu1  ;;  %v8293_v35 = vpop.f32.mrf.mxu0 }
0x1492   :  { %v4838_v7 = vadd.f32 %v9863_v32, %v4835_v30 }
0x1494   :  { %v7317_v2 = vmul.f32 -1.442695, %v4838_v7 }
0x1496   :  { %8744 = vpow2.f32 %v7317_v2 }
0x1498   :  { %v5005_v59 = vpop.f32.mrf.mxu0 }
0x1499   :  { %v4935_v37 = vpop.f32.mrf.mxu1 }
0x149a   :  { %v5006_v57 = vadd.f32 %v5005_v59, %v4935_v37  ;;  %v8315_v25 = vpop.f32.mrf.mxu0 }
0x149b   :  { %v8743_v41 = vpop.eup %8742  ;;  %v8304_v26 = vpop.f32.mrf.mxu1 }
0x149c   :  { %v4671_v42 = vadd.f32 1.0, %v8743_v41  ;;  %v5009_v43 = vadd.f32 %v9869_v49, %v5006_v57 }
0x149e   :  { %8746 = vrcp.f32 %v4671_v42  ;;  %v7321_v14 = vmul.f32 -1.442695, %v5009_v43 }
0x14a0   :  { %8748 = vpow2.f32 %v7321_v14 }
0x14a3   :  { %v8745_v4 = vpop.eup %8744  ;;  %v5176_v54 = vpop.f32.mrf.mxu0 }
0x14a4   :  { %v5106_v6 = vpop.f32.mrf.mxu1  ;;  %v4842_v8 = vadd.f32 1.0, %v8745_v4 }
0x14a5   :  { %v5177_v3 = vadd.f32 %v5176_v54, %v5106_v6  ;;  %v8337_v9 = vpop.f32.mrf.mxu0 }
0x14a6   :  { %v8326_v32 = vpop.f32.mrf.mxu1  ;;  %8750 = vrcp.f32 %v4842_v8 }
0x14a7   :  { %v5180_v50 = vadd.f32 %v10076_v28, %v5177_v3 }
0x14a9   :  { %v7325_v51 = vmul.f32 -1.442695, %v5180_v50 }
0x14ab   :  { %8752 = vpow2.f32 %v7325_v51  ;;  %v10280_v23 = vpop.eup %8746 }
0x14ac   :  { %v4674_v15 = vmul.f32 2.0, %v10280_v23 }
0x14ad   :  { %v8749_v49 = vpop.eup %8748  ;;  %v5347_v12 = vpop.f32.mrf.mxu0 }
0x14ae   :  { %v5277_v46 = vpop.f32.mrf.mxu1  ;;  %v5013_v19 = vadd.f32 1.0, %v8749_v49  ;;  %v7314_v38 = vadd.f32 -1.0, %v4674_v15  ;;  %v4676_v49 = vmul.f32 %v10280_v23, %v10112_v17 }
0x14af   :  { %v5348_v21 = vadd.f32 %v5347_v12, %v5277_v46  ;;  %v8359_v20 = vpop.f32.mrf.mxu0 }
0x14b0   :  { %v8348_v48 = vpop.f32.mrf.mxu1  ;;  %8754 = vrcp.f32 %v5013_v19  ;;  %4678 = vrot.lane.b32.xlu0 %v7314_v38, %s9026_s13 }
0x14b1   :  { %v5351_v53 = vadd.f32 %v10286_v29, %v5348_v21 }
0x14b3   :  { %v7329_v44 = vmul.f32 -1.442695, %v5351_v53  ;;  %v10290_v5 = vpop.eup %8750 }
0x14b4   :  { %v4845_v40 = vmul.f32 2.0, %v10290_v5  ;;  %v4847_v19 = vmul.f32 %v10290_v5, %v10117_v22 }
0x14b5   :  { %8756 = vpow2.f32 %v7329_v44 }
0x14b6   :  { %v7318_v30 = vadd.f32 -1.0, %v4845_v40 }
0x14b8   :  { %v8753_v34 = vpop.eup %8752  ;;  %4849 = vrot.lane.b32.xlu1 %v7318_v30, %s9026_s13 }
0x14b9   :  { %v5184_v35 = vadd.f32 1.0, %v8753_v34 }
0x14bb   :  { %8758 = vrcp.f32 %v5184_v35 }
0x14bd   :  { %v10294_v7 = vpop.eup %8754 }
0x14be   :  { %v5016_v2 = vmul.f32 2.0, %v10294_v7  ;;  %v5018_v20 = vmul.f32 %v10294_v7, %v10123_v27 }
0x14c0   :  { %v7322_v59 = vadd.f32 -1.0, %v5016_v2 }
0x14c2   :  { %v8757_v37 = vpop.eup %8756  ;;  %5020 = vrot.lane.b32.xlu0 %v7322_v59, %s9026_s13 }
0x14c3   :  { %v5355_v57 = vadd.f32 1.0, %v8757_v37 }
0x14c5   :  { %8760 = vrcp.f32 %v5355_v57 }
0x14c8   :  { %v10298_v25 = vpop.eup %8758 }
0x14c9   :  { %v5187_v41 = vmul.f32 2.0, %v10298_v25  ;;  %v5189_v22 = vmul.f32 %v10298_v25, %v10129_v18 }
0x14cb   :  { %v7326_v26 = vadd.f32 -1.0, %v5187_v41 }
0x14cd   :  { %5191 = vrot.lane.b32.xlu1 %v7326_v26, %s9026_s13 }
0x14d2   :  { %v8761_v42 = vpop.eup %8760 }
0x14d3   :  { %v5358_v43 = vmul.f32 2.0, %v8761_v42  ;;  %v5360_v27 = vmul.f32 %v8761_v42, %v10135_v31 }
0x14d5   :  { %v7330_v14 = vadd.f32 -1.0, %v5358_v43 }
0x14d7   :  { %5362 = vrot.lane.b32.xlu0 %v7330_v14, %s9026_s13 }
0x1522   :  { %v4679_v4 = vpop.permute.xlu0 %4678 }
0x1523   :  { %v4681_v6 = vmul.f32 %v10280_v23, %v4679_v4 }
0x1525   :  { %4683 = vrot.lane.b32.xlu1 %v4681_v6, %s9027_s14 }
0x152a   :  { %v4850_v54 = vpop.permute.xlu1 %4849 }
0x152b   :  { %v4852_v8 = vmul.f32 %v10290_v5, %v4850_v54 }
0x152d   :  { %4854 = vrot.lane.b32.xlu0 %v4852_v8, %s9027_s14  ;;  %v10365_v8 = vld [vmem:[#allocation8 + $0x20] sm:$0xff] }
0x1534   :  { %v5021_v3 = vpop.permute.xlu0 %5020 }
0x1535   :  { %v5023_v32 = vmul.f32 %v10294_v7, %v5021_v3  ;;  %v10371_v3 = vld [vmem:[#allocation10 + $0x38] sm:$0xff] }
0x1537   :  { %5025 = vrot.lane.b32.xlu1 %v5023_v32, %s9027_s14  ;;  %v10377_v32 = vld [vmem:[#allocation10 + $0x30] sm:$0xff] }
0x153f   :  { %v5192_v9 = vpop.permute.xlu1 %5191 }
0x1540   :  { %v5194_v50 = vmul.f32 %v10298_v25, %v5192_v9  ;;  %v8889_v9 = vld [vmem:[#allocation10 + $0x28] sm:$0xff] }
0x1542   :  { %5196 = vrot.lane.b32.xlu0 %v5194_v50, %s9027_s14 }
0x1549   :  { %v5363_v51 = vpop.permute.xlu0 %5362 }
0x154a   :  { %v5365_v15 = vmul.f32 %v8761_v42, %v5363_v51 }
0x154c   :  { %5367 = vrot.lane.b32.xlu1 %v5365_v15, %s9027_s14 }
0x1597   :  { %v4684_v46 = vpop.permute.xlu1 %4683 }
0x1598   :  { %v4686_v12 = vadd.f32 %v4684_v46, %v4676_v49  ;;  %v8891_v49 = vld [vmem:[%s10655_s6] ss:$0 sm:$0xff] }
0x159a   :  { %8762 = vtanh.f32 %v4686_v12 }
0x159f   :  { %v4855_v21 = vpop.permute.xlu0 %4854 }
0x15a0   :  { %v10316_v38 = vadd.f32 %v4855_v21, %v4847_v19 }
0x15a2   :  { %8764 = vtanh.f32 %v10316_v38 }
0x15a7   :  { %v8763_v48 = vpop.eup %8762 }
0x15a8   :  { %4689 = vrot.lane.b32.xlu0 %v8763_v48, %s9026_s13 }
0x15a9   :  { %v5026_v53 = vpop.permute.xlu1 %5025 }
0x15aa   :  { %v10322_v44 = vadd.f32 %v5026_v53, %v5018_v20 }
0x15ac   :  { %8766 = vtanh.f32 %v10322_v44 }
0x15af   :  { %v8765_v17 = vpop.eup %8764 }
0x15b0   :  { %4860 = vrot.lane.b32.xlu1 %v8765_v17, %s9026_s13  ;;  %v10452_v17 = vld [vmem:[%s10655_s6 + $0x1] ss:$0 sm:$0xff] }
0x15b4   :  { %v5197_v40 = vpop.permute.xlu0 %5196 }
0x15b5   :  { %v10328_v30 = vadd.f32 %v5197_v40, %v5189_v22 }
0x15b7   :  { %8768 = vtanh.f32 %v10328_v30 }
0x15b9   :  { %v8767_v34 = vpop.eup %8766 }
0x15ba   :  { %5031 = vrot.lane.b32.xlu0 %v8767_v34, %s9026_s13 }
0x15be   :  { %v5368_v35 = vpop.permute.xlu1 %5367 }
0x15bf   :  { %v10333_v2 = vadd.f32 %v5368_v35, %v5360_v27 }
0x15c1   :  { %8770 = vtanh.f32 %v10333_v2 }
0x15c4   :  { %v8769_v59 = vpop.eup %8768 }
0x15c5   :  { %5202 = vrot.lane.b32.xlu1 %v8769_v59, %s9026_s13 }
0x15ce   :  { %v8771_v37 = vpop.eup %8770 }
0x15cf   :  { %5373 = vrot.lane.b32.xlu0 %v8771_v37, %s9026_s13 }
0x161a   :  { %v4690_v18 = vpop.permute.xlu0 %4689 }
0x161b   :  { %v4692_v57 = vmul.f32 %v10280_v23, %v4690_v18 }
0x161d   :  { %5467 = vrot.lane.b32.xlu0 %v4692_v57, %s9027_s14 }
0x1622   :  { %v4861_v41 = vpop.permute.xlu1 %4860 }
0x1623   :  { %v4863_v26 = vmul.f32 %v10290_v5, %v4861_v41  ;;  %v10351_v5 = vld [vmem:[#allocation8 + $0x38] sm:$0xff] }
0x1625   :  { %5392 = vrot.lane.b32.xlu1 %v4863_v26, %s9027_s14 }
0x162c   :  { %v5032_v31 = vpop.permute.xlu0 %5031 }
0x162d   :  { %v5034_v43 = vmul.f32 %v10294_v7, %v5032_v31  ;;  %v10357_v7 = vld [vmem:[#allocation8 + $0x30] sm:$0xff] }
0x162f   :  { %5568 = vrot.lane.b32.xlu1 %v5034_v43, %s9027_s14 }
0x1637   :  { %v5203_v14 = vpop.permute.xlu1 %5202 }
0x1638   :  { %v5205_v4 = vmul.f32 %v10298_v25, %v5203_v14  ;;  %v10361_v25 = vld [vmem:[#allocation8 + $0x28] sm:$0xff] }
0x163a   :  { %5739 = vrot.lane.b32.xlu0 %v5205_v4, %s9027_s14 }
0x1641   :  { %v5374_v6 = vpop.permute.xlu0 %5373 }
0x1642   :  { %v10346_v54 = vmul.f32 %v8761_v42, %v5374_v6 }
0x1644   :  { %5910 = vrot.lane.b32.xlu1 %v10346_v54, %s9027_s14 }
0x168f   :  { %v5468_v23 = vpop.permute.xlu0 %5467 }
0x1690   :  { %8380 = vmatmul.mubr.msk.f32.vlgmr.msra.gmra.mxu0 %vm145_vm2, %v5468_v23 }
0x1691   :  { %8394 = vmatpush3.msra.mxu0 %v10351_v5  ;;  %8401 = vmatprep.mubr.msk.f32.mxu0 %vm9025_vm0, %v9024_v1 }
0x1692   :  { %8395 = vmatprep.subr.mxu0 %v9024_v1 }
0x1693   :  { %8396 = vmatpush3.msra.mxu0 %v10357_v7 }
0x1694   :  { %8397 = vmatprep.subr.mxu0 %v9024_v1 }
0x1695   :  { %8398 = vmatpush3.msra.mxu0 %v10361_v25 }
0x1696   :  { %8399 = vmatprep.subr.mxu0 %v9024_v1 }
0x1697   :  { %v5393_v42 = vpop.permute.xlu1 %5392  ;;  %8400 = vmatpush3.msra.mxu0 %v10365_v8 }
0x1698   :  { %8369 = vmatmul.mubr.msk.f32.vlgmr.msra.gmra.mxu1 %vm145_vm2, %v5393_v42  ;;  %8402 = vmatmul.mubr.msk.f32.vlgmr.msra.gmra.mxu0 %vm145_vm2, %v5393_v42 }
0x1699   :  { %8415 = vmatprep.subr.mxu0 %v9024_v1  ;;  %8383 = vmatpush3.msra.mxu1 %v10371_v3 }
0x169a   :  { %8416 = vmatpush3.msra.mxu0 %v9998_v56  ;;  %8384 = vmatprep.subr.mxu1 %v9024_v1  ;;  %v8890_v56 = vld [vmem:[#allocation10 + $0x20] sm:$0xff] }
0x169b   :  { %8417 = vmatprep.subr.mxu0 %v9024_v1  ;;  %8385 = vmatpush3.msra.mxu1 %v10377_v32 }
0x169c   :  { %8418 = vmatpush3.msra.mxu0 %v10006_v58  ;;  %8386 = vmatprep.subr.mxu1 %v9024_v1 }
0x169d   :  { %8419 = vmatprep.subr.mxu0 %v9024_v1  ;;  %8387 = vmatpush3.msra.mxu1 %v8889_v9 }
0x169e   :  { %8420 = vmatpush3.msra.mxu0 %v10014_v11  ;;  %8388 = vmatprep.subr.mxu1 %v9024_v1 }
0x169f   :  { %8421 = vmatprep.subr.mxu0 %v9024_v1  ;;  %8389 = vmatpush3.msra.mxu1 %v8890_v56 }
0x16a0   :  { %8390 = vmatprep.mubr.msk.f32.mxu1 %vm9025_vm0, %v9024_v1  ;;  %8422 = vmatpush3.msra.mxu0 %v10024_v55 }
0x16a1   :  { %v5569_v58 = vpop.permute.xlu1 %5568  ;;  %8423 = vmatprep.mubr.msk.f32.mxu0 %vm9025_vm0, %v9024_v1  ;;  %8404 = vmatprep.subr.mxu1 %v9024_v1 }
0x16a2   :  { %8391 = vmatmul.mubr.msk.f32.vlgmr.msra.gmra.mxu1 %vm145_vm2, %v5569_v58  ;;  %8424 = vmatmul.mubr.msk.f32.vlgmr.msra.gmra.mxu0 %vm145_vm2, %v5569_v58 }
0x16a3   :  { %8437 = vmatprep.subr.mxu0 %v9024_v1  ;;  %8405 = vmatpush3.msra.mxu1 %v9995_v39 }
0x16a4   :  { %8438 = vmatpush3.msra.mxu0 %v10226_v52  ;;  %8406 = vmatprep.subr.mxu1 %v9024_v1 }
0x16a5   :  { %8439 = vmatprep.subr.mxu0 %v9024_v1  ;;  %8407 = vmatpush3.msra.mxu1 %v10003_v45 }
0x16a6   :  { %8440 = vmatpush3.msra.mxu0 %v10234_v13  ;;  %8408 = vmatprep.subr.mxu1 %v9024_v1 }
0x16a7   :  { %8441 = vmatprep.subr.mxu0 %v9024_v1  ;;  %8409 = vmatpush3.msra.mxu1 %v10011_v16 }
0x16a8   :  { %8442 = vmatpush3.msra.mxu0 %v10242_v62  ;;  %8410 = vmatprep.subr.mxu1 %v9024_v1 }
0x16a9   :  { %8443 = vmatprep.subr.mxu0 %v9024_v1  ;;  %8411 = vmatpush3.msra.mxu1 %v10019_v60 }
0x16aa   :  { %8412 = vmatprep.mubr.msk.f32.mxu1 %vm9025_vm0, %v9024_v1  ;;  %8444 = vmatpush3.msra.mxu0 %v10252_v63 }
0x16ab   :  { %8445 = vmatprep.mubr.msk.f32.mxu0 %vm9025_vm0, %v9024_v1  ;;  %8426 = vmatprep.subr.mxu1 %v9024_v1 }
0x16ac   :  { %v5740_v39 = vpop.permute.xlu0 %5739  ;;  %8459 = vmatprep.subr.mxu0 %v9024_v1 }
0x16ad   :  { %8413 = vmatmul.mubr.msk.f32.vlgmr.msra.gmra.mxu1 %vm145_vm2, %v5740_v39  ;;  %8446 = vmatmul.mubr.msk.f32.vlgmr.msra.gmra.mxu0 %vm145_vm2, %v5740_v39 }
0x16ae   :  { %8427 = vmatpush3.msra.mxu1 %v10223_v36  ;;  %8434 = vmatprep.mubr.msk.f32.mxu1 %vm9025_vm0, %v9024_v1 }
0x16af   :  { %8428 = vmatprep.subr.mxu1 %v9024_v1  ;;  %8460 = vmatpush3.msra.mxu0 %v10351_v5 }
0x16b0   :  { %8429 = vmatpush3.msra.mxu1 %v10231_v10  ;;  %8461 = vmatprep.subr.mxu0 %v9024_v1 }
0x16b1   :  { %8430 = vmatprep.subr.mxu1 %v9024_v1  ;;  %8462 = vmatpush3.msra.mxu0 %v10357_v7 }
0x16b2   :  { %8431 = vmatpush3.msra.mxu1 %v10239_v61  ;;  %8463 = vmatprep.subr.mxu0 %v9024_v1 }
0x16b3   :  { %8432 = vmatprep.subr.mxu1 %v9024_v1  ;;  %8464 = vmatpush3.msra.mxu0 %v10361_v25 }
0x16b4   :  { %8433 = vmatpush3.msra.mxu1 %v10247_v0  ;;  %8465 = vmatprep.subr.mxu0 %v9024_v1 }
0x16b5   :  { %8467 = vmatprep.mubr.msk.f32.mxu0 %vm9025_vm0, %v9024_v1  ;;  %8466 = vmatpush3.msra.mxu0 %v10365_v8 }
0x16b6   :  { %v5911_v45 = vpop.permute.xlu1 %5910  ;;  %8448 = vmatprep.subr.mxu1 %v9024_v1  ;;  %8481 = vmatprep.subr.mxu0 %v9024_v1 }
0x16b7   :  { %8435 = vmatmul.mubr.msk.f32.vlgmr.msra.gmra.mxu1 %vm145_vm2, %v5911_v45 }
0x16b8   :  { %8449 = vmatpush3.msra.mxu1 %v10371_v3  ;;  %8456 = vmatprep.mubr.msk.f32.mxu1 %vm9025_vm0, %v9024_v1 }
0x16b9   :  { %8450 = vmatprep.subr.mxu1 %v9024_v1 }
0x16ba   :  { %8451 = vmatpush3.msra.mxu1 %v10377_v32 }
0x16bb   :  { %8452 = vmatprep.subr.mxu1 %v9024_v1 }
0x16bc   :  { %8453 = vmatpush3.msra.mxu1 %v8889_v9 }
0x16bd   :  { %8454 = vmatprep.subr.mxu1 %v9024_v1 }
0x16be   :  { %8455 = vmatpush3.msra.mxu1 %v8890_v56 }
0x16bf   :  { %8470 = vmatprep.subr.mxu1 %v9024_v1 }
0x1750   :  { %v5537_v16 = vpop.f32.mrf.mxu0 }
0x1752   :  { %v8381_v11 = vpop.f32.mrf.mxu0 }
0x1758   :  { %v5462_v60 = vpop.f32.mrf.mxu1  ;;  %v5708_v55 = vpop.f32.mrf.mxu0 }
0x1759   :  { %v5538_v50 = vadd.f32 %v5537_v16, %v5462_v60 }
0x175a   :  { %v8370_v51 = vpop.f32.mrf.mxu1  ;;  %v8403_v15 = vpop.f32.mrf.mxu0 }
0x175b   :  { %v5541_v46 = vadd.f32 %v8891_v49, %v5538_v50 }
0x175d   :  { %v7333_v12 = vmul.f32 -1.442695, %v5541_v46 }
0x175f   :  { %8772 = vpow2.f32 %v7333_v12 }
0x1762   :  { %v5638_v19 = vpop.f32.mrf.mxu1  ;;  %v5879_v21 = vpop.f32.mrf.mxu0 }
0x1763   :  { %v5709_v48 = vadd.f32 %v5708_v55, %v5638_v19 }
0x1764   :  { %v8392_v20 = vpop.f32.mrf.mxu1  ;;  %v8425_v53 = vpop.f32.mrf.mxu0 }
0x1765   :  { %v5712_v22 = vadd.f32 %v10452_v17, %v5709_v48 }
0x1767   :  { %v7337_v40 = vmul.f32 -1.442695, %v5712_v22 }
0x1769   :  { %8774 = vpow2.f32 %v7337_v40 }
0x176c   :  { %v8773_v34 = vpop.eup %8772 }
0x176d   :  { %v5809_v27 = vpop.f32.mrf.mxu1  ;;  %v6050_v35 = vpop.f32.mrf.mxu0  ;;  %v5545_v59 = vadd.f32 1.0, %v8773_v34 }
0x176e   :  { %v5880_v37 = vadd.f32 %v5879_v21, %v5809_v27 }
0x176f   :  { %v8414_v18 = vpop.f32.mrf.mxu1  ;;  %v8447_v57 = vpop.f32.mrf.mxu0  ;;  %8776 = vrcp.f32 %v5545_v59 }
0x1770   :  { %v5883_v41 = vadd.f32 %v10076_v28, %v5880_v37 }
0x1772   :  { %v7341_v26 = vmul.f32 -1.442695, %v5883_v41 }
0x1774   :  { %8778 = vpow2.f32 %v7341_v26 }
0x1776   :  { %v8775_v31 = vpop.eup %8774 }
0x1777   :  { %v5980_v43 = vpop.f32.mrf.mxu1  ;;  %v5716_v14 = vadd.f32 1.0, %v8775_v31 }
0x1778   :  { %v6051_v4 = vadd.f32 %v6050_v35, %v5980_v43 }
0x1779   :  { %v8436_v6 = vpop.f32.mrf.mxu1  ;;  %8780 = vrcp.f32 %v5716_v14 }
0x177a   :  { %v6054_v23 = vadd.f32 %v10286_v29, %v6051_v4 }
0x177c   :  { %v7345_v5 = vmul.f32 -1.442695, %v6054_v23  ;;  %v8777_v7 = vpop.eup %8776 }
0x177d   :  { %v5548_v25 = vmul.f32 2.0, %v8777_v7  ;;  %v5550_v48 = vmul.f32 %v8777_v7, %v10316_v38 }
0x177e   :  { %8782 = vpow2.f32 %v7345_v5 }
0x177f   :  { %v7334_v42 = vadd.f32 -1.0, %v5548_v25  ;;  %v8894_v25 = vld [vmem:[#allocation8 + $0x50] sm:$0xff] }
0x1781   :  { %v8779_v8 = vpop.eup %8778  ;;  %5552 = vrot.lane.b32.xlu0 %v7334_v42, %s9026_s13  ;;  %v8895_v42 = vld [vmem:[#allocation8 + $0x48] sm:$0xff] }
0x1782   :  { %v5887_v3 = vadd.f32 1.0, %v8779_v8  ;;  %v8896_v8 = vld [vmem:[#allocation8 + $0x40] sm:$0xff] }
0x1784   :  { %8784 = vrcp.f32 %v5887_v3 }
0x1786   :  { %v8781_v28 = vpop.eup %8780 }
0x1787   :  { %v5719_v32 = vmul.f32 2.0, %v8781_v28  ;;  %v5721_v22 = vmul.f32 %v8781_v28, %v10322_v44 }
0x1789   :  { %v7338_v9 = vadd.f32 -1.0, %v5719_v32  ;;  %v8898_v32 = vld [vmem:[#allocation10 + $0x50] sm:$0xff] }
0x178b   :  { %v8783_v56 = vpop.eup %8782  ;;  %5723 = vrot.lane.b32.xlu1 %v7338_v9, %s9026_s13  ;;  %v8899_v9 = vld [vmem:[#allocation10 + $0x48] sm:$0xff] }
0x178c   :  { %v6058_v58 = vadd.f32 1.0, %v8783_v56  ;;  %v8900_v56 = vld [vmem:[#allocation10 + $0x40] sm:$0xff] }
0x178e   :  { %8786 = vrcp.f32 %v6058_v58 }
0x1791   :  { %v8785_v39 = vpop.eup %8784 }
0x1792   :  { %v5890_v45 = vmul.f32 2.0, %v8785_v39  ;;  %v5892_v35 = vmul.f32 %v8785_v39, %v10328_v30 }
0x1794   :  { %v7342_v16 = vadd.f32 -1.0, %v5890_v45 }
0x1796   :  { %5894 = vrot.lane.b32.xlu0 %v7342_v16, %s9026_s13 }
0x179b   :  { %v8787_v11 = vpop.eup %8786 }
0x179c   :  { %v6061_v60 = vmul.f32 2.0, %v8787_v11  ;;  %v6063_v44 = vmul.f32 %v8787_v11, %v10333_v2 }
0x179e   :  { %v7346_v55 = vadd.f32 -1.0, %v6061_v60 }
0x17a0   :  { %6065 = vrot.lane.b32.xlu1 %v7346_v55, %s9026_s13 }
0x17f3   :  { %v5553_v50 = vpop.permute.xlu0 %5552 }
0x17f4   :  { %v5555_v51 = vmul.f32 %v8777_v7, %v5553_v50 }
0x17f6   :  { %5557 = vrot.lane.b32.xlu0 %v5555_v51, %s9027_s14 }
0x17fd   :  { %v5724_v15 = vpop.permute.xlu1 %5723 }
0x17fe   :  { %v5726_v49 = vmul.f32 %v8781_v28, %v5724_v15 }
0x1800   :  { %5728 = vrot.lane.b32.xlu1 %v5726_v49, %s9027_s14 }
0x1808   :  { %v5895_v46 = vpop.permute.xlu0 %5894 }
0x1809   :  { %v5897_v12 = vmul.f32 %v8785_v39, %v5895_v46 }
0x180b   :  { %5899 = vrot.lane.b32.xlu0 %v5897_v12, %s9027_s14  ;;  %v10543_v12 = vld [vmem:[%s10655_s6 + $0x2] ss:$0 sm:$0xff] }
0x1812   :  { %v6066_v19 = vpop.permute.xlu1 %6065 }
0x1813   :  { %v6068_v21 = vmul.f32 %v8787_v11, %v6066_v19 }
0x1815   :  { %6070 = vrot.lane.b32.xlu1 %v6068_v21, %s9027_s14 }
0x1868   :  { %v5558_v20 = vpop.permute.xlu0 %5557 }
0x1869   :  { %v5560_v53 = vadd.f32 %v5558_v20, %v5550_v48 }
0x186b   :  { %8788 = vtanh.f32 %v5560_v53 }
0x1872   :  { %v5729_v40 = vpop.permute.xlu1 %5728 }
0x1873   :  { %v10467_v34 = vadd.f32 %v5729_v40, %v5721_v22 }
0x1875   :  { %8790 = vtanh.f32 %v10467_v34 }
0x1878   :  { %v8789_v27 = vpop.eup %8788 }
0x1879   :  { %5563 = vrot.lane.b32.xlu0 %v8789_v27, %s9026_s13 }
0x187d   :  { %v5900_v59 = vpop.permute.xlu0 %5899 }
0x187e   :  { %v10472_v37 = vadd.f32 %v5900_v59, %v5892_v35 }
0x1880   :  { %8792 = vtanh.f32 %v10472_v37 }
0x1882   :  { %v8791_v38 = vpop.eup %8790 }
0x1883   :  { %5734 = vrot.lane.b32.xlu1 %v8791_v38, %s9026_s13 }
0x1887   :  { %v6071_v18 = vpop.permute.xlu1 %6070 }
0x1888   :  { %v10477_v57 = vadd.f32 %v6071_v18, %v6063_v44 }
0x188a   :  { %8794 = vtanh.f32 %v10477_v57 }
0x188d   :  { %v8793_v41 = vpop.eup %8792 }
0x188e   :  { %5905 = vrot.lane.b32.xlu0 %v8793_v41, %s9026_s13 }
0x1897   :  { %v8795_v26 = vpop.eup %8794 }
0x1898   :  { %6076 = vrot.lane.b32.xlu1 %v8795_v26, %s9026_s13 }
0x18eb   :  { %v5564_v30 = vpop.permute.xlu0 %5563 }
0x18ec   :  { %v5566_v31 = vmul.f32 %v8777_v7, %v5564_v30  ;;  %v8893_v7 = vld [vmem:[#allocation8 + $0x58] sm:$0xff] }
0x18ee   :  { %6170 = vrot.lane.b32.xlu1 %v5566_v31, %s9027_s14 }
0x18f5   :  { %v5735_v43 = vpop.permute.xlu1 %5734 }
0x18f6   :  { %v5737_v14 = vmul.f32 %v8781_v28, %v5735_v43  ;;  %v8897_v28 = vld [vmem:[#allocation10 + $0x58] sm:$0xff] }
0x18f8   :  { %6095 = vrot.lane.b32.xlu0 %v5737_v14, %s9027_s14 }
0x1900   :  { %v5906_v2 = vpop.permute.xlu0 %5905 }
0x1901   :  { %v5908_v4 = vmul.f32 %v8785_v39, %v5906_v2 }
0x1903   :  { %6271 = vrot.lane.b32.xlu0 %v5908_v4, %s9027_s14 }
0x190a   :  { %v6077_v6 = vpop.permute.xlu1 %6076 }
0x190b   :  { %v10485_v23 = vmul.f32 %v8787_v11, %v6077_v6 }
0x190d   :  { %6442 = vrot.lane.b32.xlu1 %v10485_v23, %s9027_s14 }
0x1960   :  { %v6171_v5 = vpop.permute.xlu1 %6170 }
0x1961   :  { %8468 = vmatmul.mubr.msk.f32.vlgmr.msra.gmra.mxu0 %vm145_vm2, %v6171_v5 }
0x1962   :  { %8482 = vmatpush3.msra.mxu0 %v8893_v7  ;;  %8489 = vmatprep.mubr.msk.f32.mxu0 %vm9025_vm0, %v9024_v1 }
0x1963   :  { %8483 = vmatprep.subr.mxu0 %v9024_v1 }
0x1964   :  { %8484 = vmatpush3.msra.mxu0 %v8894_v25 }
0x1965   :  { %8485 = vmatprep.subr.mxu0 %v9024_v1 }
0x1966   :  { %8486 = vmatpush3.msra.mxu0 %v8895_v42 }
0x1967   :  { %8487 = vmatprep.subr.mxu0 %v9024_v1 }
0x1968   :  { %8488 = vmatpush3.msra.mxu0 %v8896_v8 }
0x1969   :  { %8503 = vmatprep.subr.mxu0 %v9024_v1 }
0x196a   :  { %v6096_v3 = vpop.permute.xlu0 %6095 }
0x196b   :  { %8457 = vmatmul.mubr.msk.f32.vlgmr.msra.gmra.mxu1 %vm145_vm2, %v6096_v3  ;;  %8490 = vmatmul.mubr.msk.f32.vlgmr.msra.gmra.mxu0 %vm145_vm2, %v6096_v3 }
0x196c   :  { %8471 = vmatpush3.msra.mxu1 %v8897_v28  ;;  %8504 = vmatpush3.msra.mxu0 %v10226_v52 }
0x196d   :  { %8472 = vmatprep.subr.mxu1 %v9024_v1  ;;  %8505 = vmatprep.subr.mxu0 %v9024_v1 }
0x196e   :  { %8473 = vmatpush3.msra.mxu1 %v8898_v32  ;;  %8506 = vmatpush3.msra.mxu0 %v10234_v13 }
0x196f   :  { %8474 = vmatprep.subr.mxu1 %v9024_v1  ;;  %8507 = vmatprep.subr.mxu0 %v9024_v1 }
0x1970   :  { %8475 = vmatpush3.msra.mxu1 %v8899_v9  ;;  %8508 = vmatpush3.msra.mxu0 %v10242_v62 }
0x1971   :  { %8476 = vmatprep.subr.mxu1 %v9024_v1  ;;  %8509 = vmatprep.subr.mxu0 %v9024_v1 }
0x1972   :  { %8477 = vmatpush3.msra.mxu1 %v8900_v56  ;;  %8478 = vmatprep.mubr.msk.f32.mxu1 %vm9025_vm0, %v9024_v1 }
0x1973   :  { %8510 = vmatpush3.msra.mxu0 %v10252_v63  ;;  %8511 = vmatprep.mubr.msk.f32.mxu0 %vm9025_vm0, %v9024_v1 }
0x1974   :  { %8492 = vmatprep.subr.mxu1 %v9024_v1  ;;  %8525 = vmatprep.subr.mxu0 %v9024_v1 }
0x1975   :  { %v6272_v58 = vpop.permute.xlu0 %6271 }
0x1976   :  { %8479 = vmatmul.mubr.msk.f32.vlgmr.msra.gmra.mxu1 %vm145_vm2, %v6272_v58  ;;  %8512 = vmatmul.mubr.msk.f32.vlgmr.msra.gmra.mxu0 %vm145_vm2, %v6272_v58 }
0x1977   :  { %8493 = vmatpush3.msra.mxu1 %v10223_v36  ;;  %8500 = vmatprep.mubr.msk.f32.mxu1 %vm9025_vm0, %v9024_v1 }
0x1978   :  { %8494 = vmatprep.subr.mxu1 %v9024_v1  ;;  %8526 = vmatpush3.msra.mxu0 %v8893_v7 }
0x1979   :  { %8495 = vmatpush3.msra.mxu1 %v10231_v10  ;;  %8527 = vmatprep.subr.mxu0 %v9024_v1 }
0x197a   :  { %8496 = vmatprep.subr.mxu1 %v9024_v1  ;;  %8528 = vmatpush3.msra.mxu0 %v8894_v25 }
0x197b   :  { %8497 = vmatpush3.msra.mxu1 %v10239_v61  ;;  %8529 = vmatprep.subr.mxu0 %v9024_v1 }
0x197c   :  { %8498 = vmatprep.subr.mxu1 %v9024_v1  ;;  %8530 = vmatpush3.msra.mxu0 %v8895_v42 }
0x197d   :  { %8499 = vmatpush3.msra.mxu1 %v10247_v0  ;;  %8531 = vmatprep.subr.mxu0 %v9024_v1 }
0x197e   :  { %8532 = vmatpush3.msra.mxu0 %v8896_v8  ;;  %8533 = vmatprep.mubr.msk.f32.mxu0 %vm9025_vm0, %v9024_v1 }
0x197f   :  { %v6443_v36 = vpop.permute.xlu1 %6442  ;;  %8514 = vmatprep.subr.mxu1 %v9024_v1  ;;  %8547 = vmatprep.subr.mxu0 %v9024_v1 }
0x1980   :  { %8501 = vmatmul.mubr.msk.f32.vlgmr.msra.gmra.mxu1 %vm145_vm2, %v6443_v36 }
0x1981   :  { %8515 = vmatpush3.msra.mxu1 %v8897_v28  ;;  %8522 = vmatprep.mubr.msk.f32.mxu1 %vm9025_vm0, %v9024_v1 }
0x1982   :  { %8516 = vmatprep.subr.mxu1 %v9024_v1 }
0x1983   :  { %8517 = vmatpush3.msra.mxu1 %v8898_v32 }
0x1984   :  { %8518 = vmatprep.subr.mxu1 %v9024_v1 }
0x1985   :  { %8519 = vmatpush3.msra.mxu1 %v8899_v9 }
0x1986   :  { %8520 = vmatprep.subr.mxu1 %v9024_v1 }
0x1987   :  { %8521 = vmatpush3.msra.mxu1 %v8900_v56 }
0x1988   :  { %8536 = vmatprep.subr.mxu1 %v9024_v1 }
0x1a21   :  { %v6240_v10 = vpop.f32.mrf.mxu0 }
0x1a23   :  { %v8469_v61 = vpop.f32.mrf.mxu0 }
0x1a2b   :  { %v6165_v0 = vpop.f32.mrf.mxu1  ;;  %v6411_v39 = vpop.f32.mrf.mxu0 }
0x1a2c   :  { %v6241_v45 = vadd.f32 %v6240_v10, %v6165_v0 }
0x1a2d   :  { %v8458_v16 = vpop.f32.mrf.mxu1  ;;  %v8491_v11 = vpop.f32.mrf.mxu0 }
0x1a2e   :  { %v6244_v60 = vadd.f32 %v10452_v17, %v6241_v45 }
0x1a30   :  { %v7349_v55 = vmul.f32 -1.442695, %v6244_v60 }
0x1a32   :  { %8796 = vpow2.f32 %v7349_v55 }
0x1a36   :  { %v6341_v50 = vpop.f32.mrf.mxu1  ;;  %v6582_v51 = vpop.f32.mrf.mxu0 }
0x1a37   :  { %v6412_v15 = vadd.f32 %v6411_v39, %v6341_v50 }
0x1a38   :  { %v8480_v49 = vpop.f32.mrf.mxu1  ;;  %v8513_v46 = vpop.f32.mrf.mxu0 }
0x1a39   :  { %v6415_v19 = vadd.f32 %v10543_v12, %v6412_v15  ;;  %v8907_v15 = vld [vmem:[#allocation8 + $0x68] sm:$0xff]  ;;  %v8908_v49 = vld [vmem:[#allocation10 + $0x60] sm:$0xff] }
0x1a3a   :  { %v8909_v46 = vld [vmem:[#allocation8 + $0x60] sm:$0xff] }
0x1a3b   :  { %v7353_v21 = vmul.f32 -1.442695, %v6415_v19 }
0x1a3d   :  { %8798 = vpow2.f32 %v7353_v21 }
0x1a3f   :  { %v8797_v48 = vpop.eup %8796 }
0x1a40   :  { %v6512_v20 = vpop.f32.mrf.mxu1  ;;  %v6248_v53 = vadd.f32 1.0, %v8797_v48 }
0x1a41   :  { %v6583_v17 = vadd.f32 %v6582_v51, %v6512_v20  ;;  %v8906_v51 = vld [vmem:[#allocation10 + $0x68] sm:$0xff] }
0x1a42   :  { %v8502_v22 = vpop.f32.mrf.mxu1  ;;  %8800 = vrcp.f32 %v6248_v53 }
0x1a43   :  { %v6586_v40 = vadd.f32 %v10286_v29, %v6583_v17 }
0x1a45   :  { %v7357_v27 = vmul.f32 -1.442695, %v6586_v40 }
0x1a47   :  { %8802 = vpow2.f32 %v7357_v27 }
0x1a4a   :  { %v8799_v35 = vpop.eup %8798 }
0x1a4b   :  { %v6419_v59 = vadd.f32 1.0, %v8799_v35 }
0x1a4d   :  { %8804 = vrcp.f32 %v6419_v59 }
0x1a4f   :  { %v8801_v38 = vpop.eup %8800 }
0x1a50   :  { %v6251_v44 = vmul.f32 2.0, %v8801_v38  ;;  %v6253_v3 = vmul.f32 %v8801_v38, %v10467_v34 }
0x1a52   :  { %v7350_v18 = vadd.f32 -1.0, %v6251_v44 }
0x1a54   :  { %v8803_v41 = vpop.eup %8802  ;;  %6255 = vrot.lane.b32.xlu0 %v7350_v18, %s9026_s13 }
0x1a55   :  { %v6590_v26 = vadd.f32 1.0, %v8803_v41 }
0x1a57   :  { %8806 = vrcp.f32 %v6590_v26 }
0x1a5a   :  { %v8805_v30 = vpop.eup %8804 }
0x1a5b   :  { %v6422_v31 = vmul.f32 2.0, %v8805_v30  ;;  %v6424_v9 = vmul.f32 %v8805_v30, %v10472_v37 }
0x1a5d   :  { %v7354_v43 = vadd.f32 -1.0, %v6422_v31 }
0x1a5f   :  { %6426 = vrot.lane.b32.xlu1 %v7354_v43, %s9026_s13 }
0x1a64   :  { %v8807_v14 = vpop.eup %8806 }
0x1a65   :  { %v6593_v2 = vmul.f32 2.0, %v8807_v14  ;;  %v6595_v10 = vmul.f32 %v8807_v14, %v10477_v57 }
0x1a67   :  { %v7358_v4 = vadd.f32 -1.0, %v6593_v2 }
0x1a69   :  { %6597 = vrot.lane.b32.xlu0 %v7358_v4, %s9026_s13 }
0x1ac6   :  { %v6256_v6 = vpop.permute.xlu0 %6255 }
0x1ac7   :  { %v6258_v5 = vmul.f32 %v8801_v38, %v6256_v6 }
0x1ac9   :  { %6260 = vrot.lane.b32.xlu1 %v6258_v5, %s9027_s14 }
0x1ad1   :  { %v6427_v7 = vpop.permute.xlu1 %6426 }
0x1ad2   :  { %v6429_v25 = vmul.f32 %v8805_v30, %v6427_v7 }
0x1ad4   :  { %6431 = vrot.lane.b32.xlu0 %v6429_v25, %s9027_s14 }
0x1adb   :  { %v6598_v42 = vpop.permute.xlu0 %6597 }
0x1adc   :  { %v6600_v8 = vmul.f32 %v8807_v14, %v6598_v42 }
0x1ade   :  { %6602 = vrot.lane.b32.xlu1 %v6600_v8, %s9027_s14 }
0x1b3b   :  { %v6261_v28 = vpop.permute.xlu1 %6260 }
0x1b3c   :  { %v6263_v32 = vadd.f32 %v6261_v28, %v6253_v3 }
0x1b3e   :  { %8808 = vtanh.f32 %v6263_v32 }
0x1b46   :  { %v6432_v56 = vpop.permute.xlu0 %6431 }
0x1b47   :  { %v10555_v58 = vadd.f32 %v6432_v56, %v6424_v9 }
0x1b49   :  { %8810 = vtanh.f32 %v10555_v58 }
0x1b4b   :  { %v8809_v36 = vpop.eup %8808 }
0x1b4c   :  { %6266 = vrot.lane.b32.xlu0 %v8809_v36, %s9026_s13 }
0x1b50   :  { %v6603_v61 = vpop.permute.xlu1 %6602 }
0x1b51   :  { %v10560_v0 = vadd.f32 %v6603_v61, %v6595_v10 }
0x1b53   :  { %8812 = vtanh.f32 %v10560_v0 }
0x1b56   :  { %v8811_v34 = vpop.eup %8810 }
0x1b57   :  { %6437 = vrot.lane.b32.xlu1 %v8811_v34, %s9026_s13 }
0x1b60   :  { %v8813_v39 = vpop.eup %8812 }
0x1b61   :  { %6608 = vrot.lane.b32.xlu0 %v8813_v39, %s9026_s13 }
0x1bbe   :  { %v6267_v37 = vpop.permute.xlu0 %6266 }
0x1bbf   :  { %v6269_v45 = vmul.f32 %v8801_v38, %v6267_v37 }
0x1bc1   :  { %6702 = vrot.lane.b32.xlu0 %v6269_v45, %s9027_s14 }
0x1bc9   :  { %v6438_v16 = vpop.permute.xlu1 %6437 }
0x1bca   :  { %v6440_v11 = vmul.f32 %v8805_v30, %v6438_v16 }
0x1bcc   :  { %6627 = vrot.lane.b32.xlu1 %v6440_v11, %s9027_s14 }
0x1bd3   :  { %v6609_v57 = vpop.permute.xlu0 %6608 }
0x1bd4   :  { %v10567_v60 = vmul.f32 %v8807_v14, %v6609_v57 }
0x1bd6   :  { %6803 = vrot.lane.b32.xlu1 %v10567_v60, %s9027_s14 }
0x1c33   :  { %v6703_v55 = vpop.permute.xlu0 %6702 }
0x1c34   :  { %8534 = vmatmul.mubr.msk.f32.vlgmr.msra.gmra.mxu0 %vm145_vm2, %v6703_v55  ;;  %v8910_v55 = vld [vmem:[%s10655_s6 + $0x3] ss:$0 sm:$0xff] }
0x1c35   :  { %8548 = vmatpush3.msra.mxu0 %v10226_v52  ;;  %8555 = vmatprep.mubr.msk.f32.mxu0 %vm9025_vm0, %v9024_v1  ;;  %v8902_v52 = vld [vmem:[#allocation10 + $0x78] sm:$0xff] }
0x1c36   :  { %8549 = vmatprep.subr.mxu0 %v9024_v1 }
0x1c37   :  { %8550 = vmatpush3.msra.mxu0 %v10234_v13  ;;  %v8903_v13 = vld [vmem:[#allocation8 + $0x78] sm:$0xff] }
0x1c38   :  { %8551 = vmatprep.subr.mxu0 %v9024_v1 }
0x1c39   :  { %8552 = vmatpush3.msra.mxu0 %v10242_v62  ;;  %v8904_v62 = vld [vmem:[#allocation10 + $0x70] sm:$0xff] }
0x1c3a   :  { %8553 = vmatprep.subr.mxu0 %v9024_v1 }
0x1c3b   :  { %8554 = vmatpush3.msra.mxu0 %v10252_v63  ;;  %v8905_v63 = vld [vmem:[#allocation8 + $0x70] sm:$0xff] }
0x1c3c   :  { %8569 = vmatprep.subr.mxu0 %v9024_v1 }
0x1c3e   :  { %v6628_v50 = vpop.permute.xlu1 %6627 }
0x1c3f   :  { %8523 = vmatmul.mubr.msk.f32.vlgmr.msra.gmra.mxu1 %vm145_vm2, %v6628_v50  ;;  %8556 = vmatmul.mubr.msk.f32.vlgmr.msra.gmra.mxu0 %vm145_vm2, %v6628_v50 }
0x1c40   :  { %8537 = vmatpush3.msra.mxu1 %v8902_v52  ;;  %8544 = vmatprep.mubr.msk.f32.mxu1 %vm9025_vm0, %v9024_v1 }
0x1c41   :  { %8538 = vmatprep.subr.mxu1 %v9024_v1  ;;  %8570 = vmatpush3.msra.mxu0 %v8903_v13 }
0x1c42   :  { %8539 = vmatpush3.msra.mxu1 %v8904_v62  ;;  %8571 = vmatprep.subr.mxu0 %v9024_v1 }
0x1c43   :  { %8540 = vmatprep.subr.mxu1 %v9024_v1  ;;  %8572 = vmatpush3.msra.mxu0 %v8905_v63 }
0x1c44   :  { %8541 = vmatpush3.msra.mxu1 %v8906_v51  ;;  %8573 = vmatprep.subr.mxu0 %v9024_v1 }
0x1c45   :  { %8542 = vmatprep.subr.mxu1 %v9024_v1  ;;  %8574 = vmatpush3.msra.mxu0 %v8907_v15 }
0x1c46   :  { %8543 = vmatpush3.msra.mxu1 %v8908_v49  ;;  %8575 = vmatprep.subr.mxu0 %v9024_v1 }
0x1c47   :  { %8576 = vmatpush3.msra.mxu0 %v8909_v46  ;;  %8577 = vmatprep.mubr.msk.f32.mxu0 %vm9025_vm0, %v9024_v1 }
0x1c48   :  { %v6804_v19 = vpop.permute.xlu1 %6803  ;;  %8558 = vmatprep.subr.mxu1 %v9024_v1 }
0x1c49   :  { %8545 = vmatmul.mubr.msk.f32.vlgmr.msra.gmra.mxu1 %vm145_vm2, %v6804_v19 }
0x1c4a   :  { %8559 = vmatpush3.msra.mxu1 %v8902_v52  ;;  %8566 = vmatprep.mubr.msk.f32.mxu1 %vm9025_vm0, %v9024_v1 }
0x1c4b   :  { %8560 = vmatprep.subr.mxu1 %v9024_v1 }
0x1c4c   :  { %8561 = vmatpush3.msra.mxu1 %v8904_v62 }
0x1c4d   :  { %8562 = vmatprep.subr.mxu1 %v9024_v1 }
0x1c4e   :  { %8563 = vmatpush3.msra.mxu1 %v8906_v51 }
0x1c4f   :  { %8564 = vmatprep.subr.mxu1 %v9024_v1 }
0x1c50   :  { %8565 = vmatpush3.msra.mxu1 %v8908_v49  ;;  %v138_v49 = vld [vmem:[%s10656_s7] sm:$0xff] }
0x1cf4   :  { %v6772_v21 = vpop.f32.mrf.mxu0 }
0x1cf6   :  { %v8535_v48 = vpop.f32.mrf.mxu0 }
0x1cff   :  { %v6697_v20 = vpop.f32.mrf.mxu1  ;;  %v6943_v53 = vpop.f32.mrf.mxu0 }
0x1d00   :  { %v6773_v17 = vadd.f32 %v6772_v21, %v6697_v20 }
0x1d01   :  { %v8524_v22 = vpop.f32.mrf.mxu1  ;;  %v8557_v40 = vpop.f32.mrf.mxu0 }
0x1d02   :  { %v6776_v27 = vadd.f32 %v10543_v12, %v6773_v17 }
0x1d04   :  { %v7361_v35 = vmul.f32 -1.442695, %v6776_v27 }
0x1d06   :  { %8814 = vpow2.f32 %v7361_v35 }
0x1d09   :  { %v6873_v59 = vpop.f32.mrf.mxu1 }
0x1d0a   :  { %v6944_v38 = vadd.f32 %v6943_v53, %v6873_v59 }
0x1d0b   :  { %v8546_v44 = vpop.f32.mrf.mxu1 }
0x1d0c   :  { %v6947_v18 = vadd.f32 %v10286_v29, %v6944_v38 }
0x1d0e   :  { %v7365_v41 = vmul.f32 -1.442695, %v6947_v18 }
0x1d10   :  { %8816 = vpow2.f32 %v7365_v41 }
0x1d13   :  { %v8815_v1 = vpop.eup %8814 }
0x1d14   :  { %v6780_v26 = vadd.f32 1.0, %v8815_v1 }
0x1d16   :  { %8818 = vrcp.f32 %v6780_v26 }
0x1d1d   :  { %v8817_v30 = vpop.eup %8816 }
0x1d1e   :  { %v6951_v31 = vadd.f32 1.0, %v8817_v30 }
0x1d20   :  { %8820 = vrcp.f32 %v6951_v31 }
0x1d23   :  { %v8819_v43 = vpop.eup %8818 }
0x1d24   :  { %v6783_v14 = vmul.f32 2.0, %v8819_v43  ;;  %v6785_v42 = vmul.f32 %v8819_v43, %v10555_v58 }
0x1d26   :  { %v7362_v2 = vadd.f32 -1.0, %v6783_v14 }
0x1d28   :  { %6787 = vrot.lane.b32.xlu0 %v7362_v2, %s9026_s13 }
0x1d2d   :  { %v8821_v12 = vpop.eup %8820 }
0x1d2e   :  { %v6954_v4 = vmul.f32 2.0, %v8821_v12  ;;  %v6956_v28 = vmul.f32 %v8821_v12, %v10560_v0 }
0x1d30   :  { %v7366_v6 = vadd.f32 -1.0, %v6954_v4 }
0x1d32   :  { %6958 = vrot.lane.b32.xlu1 %v7366_v6, %s9026_s13 }
0x1d9a   :  { %v6788_v5 = vpop.permute.xlu0 %6787 }
0x1d9b   :  { %v6790_v29 = vmul.f32 %v8819_v43, %v6788_v5 }
0x1d9d   :  { %6792 = vrot.lane.b32.xlu0 %v6790_v29, %s9027_s14 }
0x1da4   :  { %v6959_v7 = vpop.permute.xlu1 %6958 }
0x1da5   :  { %v6961_v25 = vmul.f32 %v8821_v12, %v6959_v7 }
0x1da7   :  { %6963 = vrot.lane.b32.xlu1 %v6961_v25, %s9027_s14 }
0x1e0f   :  { %v6793_v8 = vpop.permute.xlu0 %6792 }
0x1e10   :  { %v6795_v3 = vadd.f32 %v6793_v8, %v6785_v42 }
0x1e12   :  { %8822 = vtanh.f32 %v6795_v3 }
0x1e19   :  { %v6964_v32 = vpop.permute.xlu1 %6963 }
0x1e1a   :  { %v6966_v9 = vadd.f32 %v6964_v32, %v6956_v28 }
0x1e1c   :  { %8824 = vtanh.f32 %v6966_v9 }
0x1e1f   :  { %v8823_v56 = vpop.eup %8822 }
0x1e20   :  { %6798 = vrot.lane.b32.xlu0 %v8823_v56, %s9026_s13 }
0x1e29   :  { %v8825_v36 = vpop.eup %8824 }
0x1e2a   :  { %6969 = vrot.lane.b32.xlu1 %v8825_v36, %s9026_s13 }
0x1e92   :  { %v6799_v10 = vpop.permute.xlu0 %6798 }
0x1e93   :  { %v6801_v61 = vmul.f32 %v8819_v43, %v6799_v10 }
0x1e95   :  { %7063 = vrot.lane.b32.xlu1 %v6801_v61, %s9027_s14 }
0x1e9c   :  { %v6970_v34 = vpop.permute.xlu1 %6969 }
0x1e9d   :  { %v6972_v58 = vmul.f32 %v8821_v12, %v6970_v34 }
0x1e9f   :  { %6988 = vrot.lane.b32.xlu0 %v6972_v58, %s9027_s14 }
0x1f07   :  { %v7064_v39 = vpop.permute.xlu1 %7063 }
0x1f08   :  { %8578 = vmatmul.mubr.msk.f32.vlgmr.msra.gmra.mxu0 %vm145_vm2, %v7064_v39 }
0x1f11   :  { %v6989_v0 = vpop.permute.xlu0 %6988 }
0x1f12   :  { %8567 = vmatmul.mubr.msk.f32.vlgmr.msra.gmra.mxu1 %vm145_vm2, %v6989_v0 }
0x1fc8   :  { %v7133_v37 = vpop.f32.mrf.mxu0 }
0x1fca   :  { %v8579_v45 = vpop.f32.mrf.mxu0 }
0x1fd2   :  { %v7058_v16 = vpop.f32.mrf.mxu1 }
0x1fd3   :  { %v7134_v11 = vadd.f32 %v7133_v37, %v7058_v16 }
0x1fd4   :  { %v8568_v57 = vpop.f32.mrf.mxu1 }
0x1fd5   :  { %v7137_v50 = vadd.f32 %v8910_v55, %v7134_v11 }
0x1fd7   :  { %v7369_v52 = vmul.f32 -1.442695, %v7137_v50 }
0x1fd9   :  { %8826 = vpow2.f32 %v7369_v52 }
0x1fe6   :  { %v8827_v13 = vpop.eup %8826 }
0x1fe7   :  { %v7141_v62 = vadd.f32 1.0, %v8827_v13 }
0x1fe9   :  { %8828 = vrcp.f32 %v7141_v62 }
0x1ff6   :  { %v8829_v63 = vpop.eup %8828 }
0x1ff7   :  { %v7144_v51 = vmul.f32 2.0, %v8829_v63  ;;  %v7146_v20 = vmul.f32 %v8829_v63, %v6966_v9 }
0x1ff9   :  { %v7370_v15 = vadd.f32 -1.0, %v7144_v51 }
0x1ffb   :  { %7148 = vrot.lane.b32.xlu0 %v7370_v15, %s9026_s13 }
0x1fff   :  { %2752 = vrot.lane.b32.xlu0 %v138_v49, %s9028_s18 }
0x206d   :  { %v7149_v46 = vpop.permute.xlu0 %7148 }
0x206e   :  { %v7151_v19 = vmul.f32 %v8829_v63, %v7149_v46 }
0x2070   :  { %7153 = vrot.lane.b32.xlu1 %v7151_v19, %s9027_s14 }
0x2071   :  { %v2753_v21 = vpop.permute.xlu0 %2752 }
0x2072   :  { %v2755_v48 = vmul.f32 %v2753_v21, %v9735_v47  ;;  %v3629_v35 = vmul.f32 %v9954_v24, %v2753_v21  ;;  %v4503_v59 = vmul.f32 %v10160_v33, %v2753_v21  ;;  %v6080_v47 = vmul.f32 %v10485_v23, %v2753_v21 }
0x2073   :  { %v6612_v38 = vmul.f32 %v10567_v60, %v2753_v21  ;;  %v6973_v44 = vmul.f32 %v6972_v58, %v2753_v21  ;;  %v5377_v31 = vmul.f32 %v10346_v54, %v2753_v21 }
0x2074   :  { %2757 = vrot.lane.b32.xlu1 %v2755_v48, %s9027_s14 }
0x20e2   :  { %v7154_v53 = vpop.permute.xlu1 %7153 }
0x20e3   :  { %v7156_v17 = vadd.f32 %v7154_v53, %v7146_v20 }
0x20e5   :  { %8830 = vtanh.f32 %v7156_v17 }
0x20e6   :  { %v2758_v22 = vpop.permute.xlu1 %2757 }
0x20e7   :  { %v2760_v40 = vsel %vm145_vm2, %v2758_v22, 0.0 }
0x20e8   :  { %2761 = vadd.xlane.f32.xlu0 %v2760_v40 }
0x20f2   :  { %v8831_v27 = vpop.eup %8830 }
0x20f3   :  { %7159 = vrot.lane.b32.xlu1 %v8831_v27, %s9026_s13 }
0x20f7   :  { %3631 = vrot.lane.b32.xlu1 %v3629_v35, %s9027_s14 }
0x20fe   :  { %4505 = vrot.lane.b32.xlu0 %v4503_v59, %s9027_s14 }
0x2102   :  { %6082 = vrot.lane.b32.xlu0 %v6080_v47, %s9027_s14 }
0x2106   :  { %6614 = vrot.lane.b32.xlu0 %v6612_v38, %s9027_s14 }
0x210a   :  { %6975 = vrot.lane.b32.xlu0 %v6973_v44, %s9027_s14 }
0x2165   :  { %v7160_v18 = vpop.permute.xlu1 %7159 }
0x2166   :  { %v7162_v41 = vmul.f32 %v8829_v63, %v7160_v18 }
0x2168   :  { %v7163_v24 = vmul.f32 %v7162_v41, %v2753_v21 }
0x2169   :  { %v3632_v1 = vpop.permute.xlu1 %3631 }
0x216a   :  { %v3634_v26 = vsel %vm145_vm2, %v3632_v1, 0.0  ;;  %7165 = vrot.lane.b32.xlu0 %v7163_v24, %s9027_s14 }
0x216b   :  { %3635 = vadd.xlane.f32.xlu1 %v3634_v26 }
0x2171   :  { %v2762_v33 = vpop.xlane.xlu0 %2761 }
0x2172   :  { %v2763_v5 = vrot.slane %v2762_v33, 4 }
0x2174   :  { %v2764_v29 = vadd.f32 %v2763_v5, %v2762_v33 }
0x2175   :  { %v4506_v23 = vpop.permute.xlu0 %4505 }
0x2176   :  { %v4508_v30 = vsel %vm145_vm2, %v4506_v23, 0.0  ;;  %v2765_v7 = vrot.slane %v2764_v29, 2 }
0x2177   :  { %4509 = vadd.xlane.f32.xlu1 %v4508_v30 }
0x2178   :  { %v2766_v54 = vadd.f32 %v2765_v7, %v2764_v29 }
0x2179   :  { %v6083_v60 = vpop.permute.xlu0 %6082 }
0x217a   :  { %v6085_v43 = vsel %vm145_vm2, %v6083_v60, 0.0  ;;  %v2767_v28 = vrot.slane %v2766_v54, 1 }
0x217c   :  { %v2768_v56 = vadd.f32 %v2767_v28, %v2766_v54 }
0x217d   :  { %v6615_v14 = vpop.permute.xlu0 %6614 }
0x217e   :  { %v6617_v2 = vsel %vm145_vm2, %v6615_v14, 0.0 }
0x2181   :  { %v6976_v12 = vpop.permute.xlu0 %6975 }
0x2182   :  { %v6978_v16 = vsel %vm145_vm2, %v6976_v12, 0.0 }
0x2188   :  { %5379 = vrot.lane.b32.xlu1 %v5377_v31, %s9027_s14 }
0x2189   :  { %6086 = vadd.xlane.f32.xlu0 %v6085_v43 }
0x218d   :  { %6618 = vadd.xlane.f32.xlu0 %v6617_v2 }
0x21dc   :  { %v7166_v4 = vpop.permute.xlu0 %7165 }
0x21dd   :  { %v7168_v6 = vsel %vm145_vm2, %v7166_v4, 0.0 }
0x21de   :  { %7169 = vadd.xlane.f32.xlu0 %v7168_v6  ;;  %v7371_v6 = vld [vmem:[#allocation2] ss:$0 sm:$0xff] }
0x21f4   :  { %v3636_v25 = vpop.xlane.xlu1 %3635 }
0x21f5   :  { %v3637_v42 = vrot.slane %v3636_v25, 4 }
0x21f7   :  { %v3638_v8 = vadd.f32 %v3637_v42, %v3636_v25 }
0x21f9   :  { %v3639_v3 = vrot.slane %v3638_v8, 2 }
0x21fb   :  { %v3640_v32 = vadd.f32 %v3639_v3, %v3638_v8 }
0x21fd   :  { %v3641_v9 = vrot.slane %v3640_v32, 1 }
0x21ff   :  { %v3642_v36 = vadd.f32 %v3641_v9, %v3640_v32 }
0x2200   :  { %v4510_v10 = vpop.xlane.xlu1 %4509 }
0x2201   :  { %v7178_v61 = vsel %vm7177_vm3, %v2768_v56, %v3642_v36  ;;  %v4511_v34 = vrot.slane %v4510_v10, 4 }
0x2203   :  { %v4512_v58 = vadd.f32 %v4511_v34, %v4510_v10 }
0x2204   :  { %v5380_v39 = vpop.permute.xlu1 %5379 }
0x2205   :  { %v4513_v0 = vrot.slane %v4512_v58, 2  ;;  %v5382_v37 = vsel %vm145_vm2, %v5380_v39, 0.0 }
0x2206   :  { %5383 = vadd.xlane.f32.xlu1 %v5382_v37 }
0x2207   :  { %v4514_v45 = vadd.f32 %v4513_v0, %v4512_v58 }
0x2209   :  { %v4515_v11 = vrot.slane %v4514_v45, 1 }
0x220a   :  { %6979 = vadd.xlane.f32.xlu1 %v6978_v16 }
0x220b   :  { %v4516_v57 = vadd.f32 %v4515_v11, %v4514_v45 }
0x220d   :  { %v7180_v55 = vsel %vm7179_vm4, %v7178_v61, %v4516_v57 }
0x2212   :  { %v6087_v50 = vpop.xlane.xlu0 %6086 }
0x2213   :  { %v6088_v13 = vrot.slane %v6087_v50, 4 }
0x2215   :  { %v6089_v51 = vadd.f32 %v6088_v13, %v6087_v50 }
0x2216   :  { %v6619_v52 = vpop.xlane.xlu0 %6618 }
0x2217   :  { %v6620_v62 = vrot.slane %v6619_v52, 4  ;;  %v6090_v46 = vrot.slane %v6089_v51, 2 }
0x2219   :  { %v6621_v49 = vadd.f32 %v6620_v62, %v6619_v52  ;;  %v6091_v17 = vadd.f32 %v6090_v46, %v6089_v51 }
0x221b   :  { %v6622_v48 = vrot.slane %v6621_v49, 2  ;;  %v6092_v44 = vrot.slane %v6091_v17, 1 }
0x221d   :  { %v6623_v27 = vadd.f32 %v6622_v48, %v6621_v49  ;;  %v6093_v23 = vadd.f32 %v6092_v44, %v6091_v17 }
0x221f   :  { %v6624_v41 = vrot.slane %v6623_v27, 1 }
0x2221   :  { %v6625_v60 = vadd.f32 %v6624_v41, %v6623_v27 }
0x2267   :  { %v7170_v63 = vpop.xlane.xlu0 %7169 }
0x2268   :  { %v7171_v15 = vrot.slane %v7170_v63, 4 }
0x226a   :  { %v7172_v19 = vadd.f32 %v7171_v15, %v7170_v63 }
0x226c   :  { %v7173_v22 = vrot.slane %v7172_v19, 2 }
0x226e   :  { %v7174_v18 = vadd.f32 %v7173_v22, %v7172_v19 }
0x2270   :  { %v7175_v30 = vrot.slane %v7174_v18, 1 }
0x2272   :  { %v7176_v4 = vadd.f32 %v7175_v30, %v7174_v18 }
0x228f   :  { %v5384_v21 = vpop.xlane.xlu1 %5383 }
0x2290   :  { %v5385_v20 = vrot.slane %v5384_v21, 4 }
0x2292   :  { %v5386_v53 = vadd.f32 %v5385_v20, %v5384_v21 }
0x2293   :  { %v6980_v40 = vpop.xlane.xlu1 %6979 }
0x2294   :  { %v5387_v35 = vrot.slane %v5386_v53, 2  ;;  %v6981_v59 = vrot.slane %v6980_v40, 4 }
0x2296   :  { %v5388_v47 = vadd.f32 %v5387_v35, %v5386_v53  ;;  %v6982_v38 = vadd.f32 %v6981_v59, %v6980_v40 }
0x2298   :  { %v5389_v24 = vrot.slane %v5388_v47, 1  ;;  %v6983_v1 = vrot.slane %v6982_v38, 2 }
0x229a   :  { %v5390_v26 = vadd.f32 %v5389_v24, %v5388_v47  ;;  %v6984_v33 = vadd.f32 %v6983_v1, %v6982_v38 }
0x229c   :  { %v7182_v31 = vsel %vm7181_vm5, %v7180_v55, %v5390_v26  ;;  %v6985_v43 = vrot.slane %v6984_v33, 1 }
0x229d   :  { %v7184_v14 = vsel %vm7183_vm6, %v7182_v31, %v6093_v23 }
0x229e   :  { %v7186_v2 = vsel %vm7185_vm7, %v7184_v14, %v6625_v60  ;;  %v6986_v12 = vadd.f32 %v6985_v43, %v6984_v33 }
0x22a0   :  { %v7188_v5 = vsel %vm7187_vm8, %v7186_v2, %v6986_v12 }
0x22a1   :  { %v7190_v29 = vsel %vm7189_vm9, %v7188_v5, %v7176_v4 }
0x22a2   :  { %v7198_v7 = vadd.f32 %v7371_v6, %v7190_v29 }
0x22a4   :  { %7200 = vst.msk [vmem:[%s10658_s9] sm:$0xff] %vm7199_vm10, %v7198_v7 }
0x22a5   :  { %7205 = vsyncpa [#allocation4], 1 }
0x22a6   :  { %7206 = vsyncpa [#allocation6], 1 }
0x22a7   :  { %7207 = vsyncpa [#allocation9], 1 }

</bundles_post_ra>
